<compile_context>
chip_gen: v5e
topology: v5e:2x2
jax: 0.10.0
libtpu: 0.0.40
codegen_flags: <defaults>
</compile_context>

<pallas_src>
import functools

import numpy as np

import jax
import jax.numpy as jnp
from jax.experimental import pallas as pl
from jax.experimental.pallas import tpu as pltpu


def _round_up(x, m):
    return ((x + m - 1) // m) * m


def _ood_mahalanobis_kernel(mus_ref, precs_ref, sel_ref, e_ref, out_ref, *,
                            num_gaussians, pack, chunk_rows, num_chunks,
                            rows_per_tile, total_samples, mask_padding):
    """Per-tile kernel: partial sum of min-over-Gaussians Mahalanobis distances.

    mus_ref:   (K, W)      f32   means, each repeated `pack` times along lanes
    precs_ref: (K, W, W)   bf16  block-diagonal precisions (pack copies of Sigma^-1)
    sel_ref:   (W, 128)    bf16  per-sample row-sum selector (cols >= pack are zero)
    e_ref:     (TR, W)           `pack` samples packed per row along lanes
    out_ref:   (1, 8, 128) f32   this tile's partial sum, broadcast over the block
    """
    # Hoisted, chunk-invariant loads (avoid per-chunk reloads / redundant broadcasts).
    mus = mus_ref[...]                                   # (K, W)   f32
    sel = sel_ref[...]                                   # (W, 128) bf16

    if mask_padding:
        row_ids = jax.lax.broadcasted_iota(jnp.int32, (chunk_rows, 128), 0)
        col_ids = jax.lax.broadcasted_iota(jnp.int32, (chunk_rows, 128), 1)
        tile_row0 = pl.program_id(0) * rows_per_tile

    def chunk_body(c, acc):
        r0 = c * chunk_rows
        if not isinstance(r0, int):
            r0 = pl.multiple_of(r0, chunk_rows)
        e = e_ref[pl.ds(r0, chunk_rows), :].astype(jnp.float32)        # (CR, W)

        # Per-Gaussian quadratic-form pieces; MXU runs in bf16 with f32 accumulation.
        zs = []
        for k in range(num_gaussians):                                 # K is small & static
            diff = e - mus[k:k + 1, :]                                 # (CR, W)  VPU f32
            y = jnp.dot(diff.astype(jnp.bfloat16), precs_ref[k],
                        preferred_element_type=jnp.float32)            # (CR, W)  MXU bf16
            zs.append((y * diff).astype(jnp.bfloat16))                 # (CR, W)  bf16

        # One selector matmul for all K Gaussians: the (W, 128) RHS weights are
        # pushed once per chunk instead of K times; the per-sample row-sum stays
        # on the MXU and the result stays lane-dense.
        z_all = jnp.concatenate(zs, axis=0)                            # (K*CR, W) bf16
        quad = jnp.dot(z_all, sel, preferred_element_type=jnp.float32)  # (K*CR, 128)
        quad = jnp.maximum(quad, 0.0)                                  # F.relu, as in torch
        min_dist = jnp.min(quad.reshape(num_gaussians, chunk_rows, 128), axis=0)

        if mask_padding:
            g_row = tile_row0 + r0 + row_ids
            valid = (col_ids < pack) & ((g_row * pack + col_ids) < total_samples)
            min_dist = jnp.where(valid, min_dist, 0.0)

        # Columns >= pack are exactly zero (selector is zero there), so a dense
        # full reduction equals the sum over the packed samples only.
        return acc + jnp.sum(min_dist)

    if num_chunks == 1:
        total = chunk_body(0, jnp.float32(0.0))
    else:
        unroll = True if num_chunks <= 8 else 2
        total = jax.lax.fori_loop(0, num_chunks, chunk_body, jnp.float32(0.0),
                                  unroll=unroll)

    out_ref[...] = jnp.full(out_ref.shape, total, dtype=out_ref.dtype)


@functools.partial(jax.jit, static_argnames=("tile_n",))
def ood_mahalanobis_loss(batch_embeddings, mus, covs, *, tile_n=8192):
    """Pallas TPU forward of `ood_mahalanobis_loss`.

    batch_embeddings: (N, D)    float32 or bfloat16
    mus:              (K, D)    Gaussian means
    covs:             (K, D, D) Gaussian covariances (inverted here, as in torch)
    """
    n, d = batch_embeddings.shape
    num_g = mus.shape[0]

    # ---- wrapper-side constant prep (layout plumbing, done once) ----
    precisions = jnp.linalg.inv(covs.astype(jnp.float32))               # (K, D, D)

    pack = max(1, 128 // d)                 # samples packed along the 128-lane axis
    width = pack * d
    n_rows = pl.cdiv(n, pack)

    # ---- tiling: right-size to the actual batch, bound vreg pressure with inner
    #      chunks, keep the e-tile well under VMEM limits, and prefer >= 2 grid
    #      steps so both v7x TensorCores get work ("parallel" grid axis). ----
    max_tile_bytes = 4 * 1024 * 1024
    rows_cap = max(8, min(tile_n // pack, max_tile_bytes // (width * 4)))
    chunk_rows = max(8, min(128, (rows_cap // 8) * 8, _round_up(n_rows, 8)))
    max_rows_per_tile = max(chunk_rows, (rows_cap // chunk_rows) * chunk_rows)
    min_tiles = 2 if n_rows >= 2 * chunk_rows else 1
    target_tiles = max(min_tiles, pl.cdiv(n_rows, max_rows_per_tile))
    rows_per_tile = _round_up(pl.cdiv(n_rows, target_tiles), chunk_rows)
    rows_per_tile = min(max(rows_per_tile, chunk_rows), max_rows_per_tile)
    num_chunks = rows_per_tile // chunk_rows
    grid_rows = pl.cdiv(n_rows, rows_per_tile)
    n_rows_pad = grid_rows * rows_per_tile
    n_pad = n_rows_pad * pack

    e = batch_embeddings
    if n_pad != n:                          # ragged batch: zero-pad only when needed
        e = jnp.pad(e, ((0, n_pad - n), (0, 0)))
    e_packed = e.reshape(n_rows_pad, width)              # free row-major reshape

    eye_p = jnp.eye(pack, dtype=jnp.float32)
    mus_packed = jnp.tile(mus.astype(jnp.float32), (1, pack))            # (K, W) f32
    precs_block = jax.vmap(lambda p: jnp.kron(eye_p, p))(precisions)     # (K, W, W)
    precs_block = precs_block.astype(jnp.bfloat16)                       # MXU in bf16
    sel = jnp.kron(eye_p, jnp.ones((d, 1), jnp.float32))                 # (W, pack)
    sel = jnp.pad(sel, ((0, 0), (0, 128 - pack))).astype(jnp.bfloat16)   # (W, 128)

    kernel = functools.partial(
        _ood_mahalanobis_kernel,
        num_gaussians=num_g, pack=pack, chunk_rows=chunk_rows,
        num_chunks=num_chunks, rows_per_tile=rows_per_tile,
        total_samples=n, mask_padding=(n_pad != n))

    partials = pl.pallas_call(
        kernel,
        out_shape=jax.ShapeDtypeStruct((grid_rows, 8, 128), jnp.float32),
        grid_spec=pltpu.PrefetchScalarGridSpec(
            num_scalar_prefetch=0,
            grid=(grid_rows,),
            in_specs=[
                pl.BlockSpec((num_g, width), lambda i: (0, 0)),            # mus
                pl.BlockSpec((num_g, width, width), lambda i: (0, 0, 0)),  # precisions
                pl.BlockSpec((width, 128), lambda i: (0, 0)),              # selector
                pl.BlockSpec((rows_per_tile, width), lambda i: (i, 0)),    # e tile
            ],
            out_specs=pl.BlockSpec((1, 8, 128), lambda i: (i, 0, 0)),      # tile partial
        ),
        compiler_params=pltpu.CompilerParams(
            dimension_semantics=("parallel",)),
    )(mus_packed, precs_block, sel, e_packed)

    return -jnp.sum(partials[:, 0, 0]) / n / 10000.0


def _reference_numpy(e, mus, covs):
    """float64 numpy reference mirroring the PyTorch forward."""
    e = np.asarray(e, dtype=np.float64)
    mus = np.asarray(mus, dtype=np.float64)
    covs = np.asarray(covs, dtype=np.float64)
    precs = np.linalg.inv(covs)
    n = e.shape[0]
    val = 0.0
    for i in range(n):
        best = np.inf
        for k in range(mus.shape[0]):
            diff = e[i] - mus[k]
            dist = float(diff @ precs[k] @ diff)
            dist = max(dist, 0.0)
            best = min(best, dist)
        val += best
    return -val / n / 10000.0


if __name__ == "__main__":
    key = jax.random.PRNGKey(0)
    k_e, k_mu, k_cov = jax.random.split(key, 3)

    # Small shapes: batch of 384 embeddings, 32-dim features, 4 class Gaussians.
    N, D, K = 384, 32, 4

    batch_embeddings = jax.random.normal(k_e, (N, D), dtype=jnp.float32)
    mus = jax.random.normal(k_mu, (K, D), dtype=jnp.float32)
    a = 0.1 * jax.random.normal(k_cov, (K, D, D), dtype=jnp.float32)
    covs = jnp.einsum("kij,klj->kil", a, a) + jnp.eye(D, dtype=jnp.float32)[None]  # SPD

    # 1) Default (production) tile size: single tile, no padding, no mask path.
    ref = _reference_numpy(batch_embeddings, mus, covs)
    out_default = jax.block_until_ready(ood_mahalanobis_loss(batch_embeddings, mus, covs))
    assert np.isfinite(float(out_default))
    assert np.allclose(float(out_default), ref, rtol=5e-2, atol=1e-6), (float(out_default), ref)

    # 2) Small tiles: exercises a multi-step grid + padded-tile masking path.
    out_small = jax.block_until_ready(
        ood_mahalanobis_loss(batch_embeddings, mus, covs, tile_n=256))
    assert np.allclose(float(out_small), ref, rtol=5e-2, atol=1e-6), (float(out_small), ref)

    # 3) Ragged batch (N not a multiple of the lane-pack factor): in-row masking.
    N2 = 250
    e2 = batch_embeddings[:N2]
    ref2 = _reference_numpy(e2, mus, covs)
    out_ragged = jax.block_until_ready(ood_mahalanobis_loss(e2, mus, covs))
    assert np.allclose(float(out_ragged), ref2, rtol=5e-2, atol=1e-6), (float(out_ragged), ref2)

    print("KERNEL_OK")
</pallas_src>

<mosaic_0001>
module attributes {stable_mosaic.version = 11 : i64} {
  func.func @_ood_mahalanobis_kernel(%arg0: i32, %arg1: memref<4x128xf32, #tpu.memory_space<vmem>>, %arg2: memref<4x128x128xbf16, #tpu.memory_space<vmem>>, %arg3: memref<128x128xbf16, #tpu.memory_space<vmem>>, %arg4: memref<96x128xf32, #tpu.memory_space<vmem>>, %arg5: memref<1x8x128xf32, #tpu.memory_space<vmem>>) attributes {dimension_semantics = [#tpu.dimension_semantics<parallel>], iteration_bounds = array<i64: 1>, scalar_prefetch = 0 : i64, scratch_operands = 0 : i64, tpu.core_type = #tpu.core_type<tc>, window_params = [{pipeline_mode = #tpu.pipeline_mode<synchronous>, transform_indices = @transform_0, window_bounds = array<i64: 4, 128>}, {pipeline_mode = #tpu.pipeline_mode<synchronous>, transform_indices = @transform_1, window_bounds = array<i64: 4, 128, 128>}, {pipeline_mode = #tpu.pipeline_mode<synchronous>, transform_indices = @transform_2, window_bounds = array<i64: 128, 128>}, {transform_indices = @transform_3, window_bounds = array<i64: 96, 128>}, {transform_indices = @transform_4, window_bounds = array<i64: 1, 8, 128>}]} {
    %c0 = arith.constant 0 : index
    %c0_0 = arith.constant 0 : index
    %0 = vector.load %arg1[%c0, %c0_0] : memref<4x128xf32, #tpu.memory_space<vmem>>, vector<4x128xf32>
    %c0_1 = arith.constant 0 : index
    %c0_2 = arith.constant 0 : index
    %1 = vector.load %arg3[%c0_1, %c0_2] : memref<128x128xbf16, #tpu.memory_space<vmem>>, vector<128x128xbf16>
    %c0_3 = arith.constant 0 : index
    %c0_4 = arith.constant 0 : index
    %2 = vector.load %arg4[%c0_3, %c0_4] : memref<96x128xf32, #tpu.memory_space<vmem>>, vector<96x128xf32>
    %3 = vector.extract_strided_slice %0 {offsets = [0, 0], sizes = [1, 128], strides = [1, 1]} : vector<4x128xf32> to vector<1x128xf32>
    %4 = vector.broadcast %3 : vector<1x128xf32> to vector<96x128xf32>
    %5 = arith.subf %2, %4 : vector<96x128xf32>
    %6 = arith.truncf %5 : vector<96x128xf32> to vector<96x128xbf16>
    %c0_5 = arith.constant 0 : index
    %c0_6 = arith.constant 0 : index
    %c0_7 = arith.constant 0 : index
    %7 = vector.load %arg2[%c0_5, %c0_6, %c0_7] : memref<4x128x128xbf16, #tpu.memory_space<vmem>>, vector<1x128x128xbf16>
    %8 = vector.shape_cast %7 : vector<1x128x128xbf16> to vector<128x128xbf16>
    %cst = arith.constant dense<0.000000e+00> : vector<96x128xf32>
    %9 = tpu.matmul %6, %8, %cst {dimension_numbers = #tpu.dot_dimension_numbers<[1], [0], [0], [1], [0, 0, 1, 1], [], []>} : vector<96x128xbf16>, vector<128x128xbf16>, vector<96x128xf32> -> vector<96x128xf32>
    %10 = arith.mulf %9, %5 : vector<96x128xf32>
    %11 = arith.truncf %10 : vector<96x128xf32> to vector<96x128xbf16>
    %12 = vector.extract_strided_slice %0 {offsets = [1, 0], sizes = [1, 128], strides = [1, 1]} : vector<4x128xf32> to vector<1x128xf32>
    %13 = vector.broadcast %12 : vector<1x128xf32> to vector<96x128xf32>
    %14 = arith.subf %2, %13 : vector<96x128xf32>
    %15 = arith.truncf %14 : vector<96x128xf32> to vector<96x128xbf16>
    %c1 = arith.constant 1 : index
    %c0_8 = arith.constant 0 : index
    %c0_9 = arith.constant 0 : index
    %16 = vector.load %arg2[%c1, %c0_8, %c0_9] : memref<4x128x128xbf16, #tpu.memory_space<vmem>>, vector<1x128x128xbf16>
    %17 = vector.shape_cast %16 : vector<1x128x128xbf16> to vector<128x128xbf16>
    %cst_10 = arith.constant dense<0.000000e+00> : vector<96x128xf32>
    %18 = tpu.matmul %15, %17, %cst_10 {dimension_numbers = #tpu.dot_dimension_numbers<[1], [0], [0], [1], [0, 0, 1, 1], [], []>} : vector<96x128xbf16>, vector<128x128xbf16>, vector<96x128xf32> -> vector<96x128xf32>
    %19 = arith.mulf %18, %14 : vector<96x128xf32>
    %20 = arith.truncf %19 : vector<96x128xf32> to vector<96x128xbf16>
    %21 = vector.extract_strided_slice %0 {offsets = [2, 0], sizes = [1, 128], strides = [1, 1]} : vector<4x128xf32> to vector<1x128xf32>
    %22 = vector.broadcast %21 : vector<1x128xf32> to vector<96x128xf32>
    %23 = arith.subf %2, %22 : vector<96x128xf32>
    %24 = arith.truncf %23 : vector<96x128xf32> to vector<96x128xbf16>
    %c2 = arith.constant 2 : index
    %c0_11 = arith.constant 0 : index
    %c0_12 = arith.constant 0 : index
    %25 = vector.load %arg2[%c2, %c0_11, %c0_12] : memref<4x128x128xbf16, #tpu.memory_space<vmem>>, vector<1x128x128xbf16>
    %26 = vector.shape_cast %25 : vector<1x128x128xbf16> to vector<128x128xbf16>
    %cst_13 = arith.constant dense<0.000000e+00> : vector<96x128xf32>
    %27 = tpu.matmul %24, %26, %cst_13 {dimension_numbers = #tpu.dot_dimension_numbers<[1], [0], [0], [1], [0, 0, 1, 1], [], []>} : vector<96x128xbf16>, vector<128x128xbf16>, vector<96x128xf32> -> vector<96x128xf32>
    %28 = arith.mulf %27, %23 : vector<96x128xf32>
    %29 = arith.truncf %28 : vector<96x128xf32> to vector<96x128xbf16>
    %30 = vector.extract_strided_slice %0 {offsets = [3, 0], sizes = [1, 128], strides = [1, 1]} : vector<4x128xf32> to vector<1x128xf32>
    %31 = vector.broadcast %30 : vector<1x128xf32> to vector<96x128xf32>
    %32 = arith.subf %2, %31 : vector<96x128xf32>
    %33 = arith.truncf %32 : vector<96x128xf32> to vector<96x128xbf16>
    %c3 = arith.constant 3 : index
    %c0_14 = arith.constant 0 : index
    %c0_15 = arith.constant 0 : index
    %34 = vector.load %arg2[%c3, %c0_14, %c0_15] : memref<4x128x128xbf16, #tpu.memory_space<vmem>>, vector<1x128x128xbf16>
    %35 = vector.shape_cast %34 : vector<1x128x128xbf16> to vector<128x128xbf16>
    %cst_16 = arith.constant dense<0.000000e+00> : vector<96x128xf32>
    %36 = tpu.matmul %33, %35, %cst_16 {dimension_numbers = #tpu.dot_dimension_numbers<[1], [0], [0], [1], [0, 0, 1, 1], [], []>} : vector<96x128xbf16>, vector<128x128xbf16>, vector<96x128xf32> -> vector<96x128xf32>
    %37 = arith.mulf %36, %32 : vector<96x128xf32>
    %38 = arith.truncf %37 : vector<96x128xf32> to vector<96x128xbf16>
    %39 = tpu.concatenate %11, %20, %29, %38 in 0 : vector<96x128xbf16>, vector<96x128xbf16>, vector<96x128xbf16>, vector<96x128xbf16> -> vector<384x128xbf16>
    %cst_17 = arith.constant dense<0.000000e+00> : vector<384x128xf32>
    %40 = tpu.matmul %39, %1, %cst_17 {dimension_numbers = #tpu.dot_dimension_numbers<[1], [0], [0], [1], [0, 0, 1, 1], [], []>} : vector<384x128xbf16>, vector<128x128xbf16>, vector<384x128xf32> -> vector<384x128xf32>
    %cst_18 = arith.constant 0.000000e+00 : f32
    %41 = vector.broadcast %cst_18 : f32 to vector<384x128xf32>
    %42 = arith.maximumf %40, %41 : vector<384x128xf32>
    %43 = vector.shape_cast %42 : vector<384x128xf32> to vector<4x96x128xf32>
    %cst_19 = arith.constant dense<0x7F800000> : vector<96x128xf32>
    %44 = vector.multi_reduction <minimumf>, %43, %cst_19 [0] : vector<4x96x128xf32> to vector<96x128xf32>
    %45 = vector.shape_cast %44 : vector<96x128xf32> to vector<1x96x128xf32>
    %cst_20 = arith.constant dense<0.000000e+00> : vector<1xf32>
    %46 = vector.multi_reduction <add>, %45, %cst_20 [1, 2] : vector<1x96x128xf32> to vector<1xf32>
    %47 = vector.shape_cast %46 : vector<1xf32> to vector<1x1x1xf32>
    %48 = vector.extract %47[0, 0, 0] : f32 from vector<1x1x1xf32>
    %cst_21 = arith.constant 0.000000e+00 : f32
    %49 = arith.addf %cst_21, %48 : f32
    %50 = vector.broadcast %49 : f32 to vector<1x8x128xf32>
    %c0_22 = arith.constant 0 : index
    %c0_23 = arith.constant 0 : index
    %c0_24 = arith.constant 0 : index
    %51 = vector.load %arg5[%c0_22, %c0_23, %c0_24] : memref<1x8x128xf32, #tpu.memory_space<vmem>>, vector<1x8x128xf32>
    tpu.vector_store %arg5[%c0_22, %c0_23, %c0_24], %50 {strides = array<i32>} : memref<1x8x128xf32, #tpu.memory_space<vmem>>, vector<1x8x128xf32>,
    return
  }
  func.func @transform_0(%arg0: i32) -> (i32, i32) {
    %c0_i32 = arith.constant 0 : i32
    %c0_i32_0 = arith.constant 0 : i32
    %c0_i32_1 = arith.constant 0 : i32
    return %c0_i32, %c0_i32_0 : i32, i32
  }
  func.func @transform_1(%arg0: i32) -> (i32, i32, i32) {
    %c0_i32 = arith.constant 0 : i32
    %c0_i32_0 = arith.constant 0 : i32
    %c0_i32_1 = arith.constant 0 : i32
    %c0_i32_2 = arith.constant 0 : i32
    return %c0_i32, %c0_i32_0, %c0_i32_1 : i32, i32, i32
  }
  func.func @transform_2(%arg0: i32) -> (i32, i32) {
    %c0_i32 = arith.constant 0 : i32
    %c0_i32_0 = arith.constant 0 : i32
    %c0_i32_1 = arith.constant 0 : i32
    return %c0_i32, %c0_i32_0 : i32, i32
  }
  func.func @transform_3(%arg0: i32) -> (i32, i32) {
    %c0_i32 = arith.constant 0 : i32
    %c0_i32_0 = arith.constant 0 : i32
    return %arg0, %c0_i32 : i32, i32
  }
  func.func @transform_4(%arg0: i32) -> (i32, i32, i32) {
    %c0_i32 = arith.constant 0 : i32
    %c0_i32_0 = arith.constant 0 : i32
    %c0_i32_1 = arith.constant 0 : i32
    return %arg0, %c0_i32, %c0_i32_0 : i32, i32, i32
  }
}

</mosaic_0001>

<bundles_post_ra>
// kernel: custom-call.11
= control target key start
LH: loop header
LB: loop body
LE: loop exit
PB: predicated region body
PF: predicated region fallthrough
CT: control target
= control target key end

     0   :  { %5 = vsyncpa [#allocation1], 0  ;;  %s1229_s0 = inlined_call_operand.hbm [shape: f32[4,32,32], index: 0, kind: input, shape index: {}]   ;;  %s1230_s1 = inlined_call_operand.vmem [shape: f32[4,32,32], index: 1, kind: output, shape index: {0}]   ;;  %s1231_s2 = inlined_call_operand.hbm [shape: s32[4,32], index: 2, kind: output, shape index: {1}]   ;;  %s1232_s3 = inlined_call_operand.vmem [shape: s32[4,32], index: 3, kind: output, shape index: {2}]  }
   0x1   :  { %7 = vsyncpa [#allocation1 + $0x1], 0 }
   0x2   :  { %8 = vsyncpa [#allocation2], 0 }
   0x3   :  { %10 = vsyncpa [#allocation2 + $0x1], 0  ;;  %s925_s12 = smov 0   ;;  %s927_s13 = smov 0  }
   0x4   :  { %s929_s14 = smov 0   ;;  %s931_s15 = smov 0  }
   0x5 LB: > { %s946_s16 = sadd.s32 4294967295, %s894_s15   ;;  %s689_s17 = sadd.s32 4294967294, %s894_s15   ;;  %s894_s15 = sphi %s931_s15, %s1252_s15   ;;  %s890_s14 = sphi %s929_s14, %s1251_s14   ;;  %s886_s13 = sphi %s927_s13, %s1250_s13   ;;  %s882_s12 = sphi %s925_s12, %s1249_s12  }
   0x6   : > { %s950_s18 = sadd.s32 1, %s894_s15   ;;  %s20_s19 = sshrl.u32 %s894_s15, 3 }
   0x7   : > { %s21_s20 = sshrl.u32 %s950_s18, 3  ;;  %s25_s21 = sadd.s32 1, %s890_s14 }
   0x8   : > { %s22_s22 = ssub.s32 %s20_s19, %s21_s20  ;;  %p35_p0 = scmp.ne.s32.totalorder %s890_s14, %s886_s13 }
   0x9   : > { %p23_p1 = scmp.eq.s32.totalorder %s22_s22, 0  ;;  %p36_p2 = scmp.eq.s32.totalorder %s946_s16, 3 }
   0xa   : > { %p41_p3 = scmp.ne.s32.totalorder %s886_s13, %s882_s12  ;;  %p42_p4 = scmp.eq.s32.totalorder %s689_s17, 3 }
   0xb   : > { %s961_s23 = scalar_select %p23_p1, %s890_s14, %s25_s21  }
   0xc   : > { %p963_p5 = por %p36_p2, %p35_p0  ;;  %p967_p6 = por %p42_p4, %p41_p3 }
   0xd   : > { %p735_p7 = scmp.lt.s32.totalorder %s894_s15, 4  ;;  %s87_s26 = sand.u32 1, %s894_s15  }
   0xe   : > { %s693_s27 = sshll.u32 %s894_s15, 5  ;;  %s692_s28 = sshll.u32 %s87_s26, 5 }
   0xf   : > { %s95_s4 = scalar_lea.hbm %s1229_s0, %s693_s27  ;;  %s91_s6 = scalar_lea.vmem [#allocation0], %s692_s28 }
  0x10   : > { %s97_s5 = sshll.u32 %s95_s4, 4  ;;  %s99_s7 = sshll.u32 %s91_s6, 4  ;;  %s98_s5 = int_to_ptr.hbm [resolvable:$true] %s97_s5  ;;  %s100_s7 = int_to_ptr.vmem [resolvable:$true] %s99_s7 }
  0x11   : > { %s88_s8 = scalar_lea.sflag [#allocation1], %s87_s26  ;;  %s794_s9 = sshra.s32 %s98_s5, 4  ;;  %s795_s9 = int_to_ptr.hbm [resolvable:$true] %s794_s9 }
  0x12   : > { %s796_s10 = scalar_lea.hbm %s795_s9, 32  ;;  %s800_s19 = scalar_lea.hbm %s1229_s0, 128 }
  0x13   : > { %p797_p8 = scmp.ne.s32.totalorder %s795_s9, %s796_s10  ;;  %p801_p11 = scmp.lt.s32.totalorder %s795_s9, %s1229_s0 }
  0x14   : > { %p802_p12 = scmp.lt.s32.totalorder %s800_s19, %s796_s10 }
  0x15   : > { %p798_p9 = pnand %p797_p8, %p735_p7 }
  0x16   : > { %p803_p13 = por %p802_p12, %p801_p11 }
  0x17   : > { %p799_p10 = pneg %p798_p9 }
  0x19   : > { %p804_p0 = pnand %p803_p13, %p799_p10 }
  0x1b   : > { %807 = shalt.err (!%p804_p0)
}
  0x1c   : > { %728 = dma.hbm_to_vmem [thread:$0]  (%p735_p7), %s98_s5, 512, %s100_s7, %s88_s8  }
  0x1d   : > { %p694_p1 = scmp.ge.s32.totalorder %s894_s15, 1  ;;  %p104_p2 = scmp.lt.s32.totalorder %s894_s15, 5 }
  0x1f   : > { %p105_p3 = pnand %p694_p1, %p104_p2 }
  0x21   : > { %108 = sbr.rel (%p105_p3) target bundleno = 504 (0x1f8), region = 20 }
  0x26   : > { %s110_s22 = sand.u32 1, %s946_s16  }
  0x27   : > { %s695_s26 = sshll.u32 %s110_s22, 5  ;;  %s111_s27 = scalar_lea.sflag [#allocation1], %s110_s22 }
  0x28   : > { %s114_s28 = scalar_lea.vmem [#allocation0], %s695_s26 }
  0x29   : > { %874 = dma.done.wait %s111_s27, 512  }
  0x2a   : > { %875 = vsyncadd %s111_s27, 4294966784  ;;  %s155_s29 = sand.u32 7, %s946_s16   ;;  %v160_v0 = vlaneseq  ;;  %v904_v1 = vmov 0   ;;  %s130_s4 = sand.u32 1, %s886_s13   ;;  %v141_v3 = vld [vmem:[%s114_s28] sm:$0xff]  ;;  %v699_v4 = vld [vmem:[%s114_s28 + $0x8] sm:$0xff] }
  0x2b   : > { %s991_s30 = scalar_lea.vmem [#allocation4], %s155_s29  ;;  %s1000_s5 = sshll.u32 %s130_s4, 2  ;;  %v701_v5 = vld [vmem:[%s114_s28 + $0x10] sm:$0xff]  ;;  %v703_v6 = vld [vmem:[%s114_s28 + $0x18] sm:$0xff] }
  0x2c   : > { %159 = vst [vmem:[%s991_s30] sm:$0x1] %v904_v1  ;;  %v996_v2 = vshrl.u32 %v160_v0, 7  ;;  %s1002_s6 = scalar_lea.vmem [#allocation3], %s695_s26  ;;  %s132_s7 = scalar_lea.vmem [#allocation5], %s1000_s5 }
  0x2d   : > { %142 = vst [vmem:[%s1002_s6] sm:$0xff] %v141_v3  ;;  %s138_s8 = scalar_lea.vmem [#allocation7], %s1000_s5  ;;  %s1010_s9 = scalar_lea.vmem [#allocation6], %s155_s29 }
  0x2e   : > { %700 = vst [vmem:[%s1002_s6 + $0x8] sm:$0xff] %v699_v4  ;;  %s896_s10 = smov 0  }
  0x2f   : > { %702 = vst [vmem:[%s1002_s6 + $0x10] sm:$0xff] %v701_v5 }
  0x30   : > { %704 = vst [vmem:[%s1002_s6 + $0x18] sm:$0xff] %v703_v6 }
  0x31 LB: >> { %s705_s11 = sshll.u32 %s898_s10, 3  ;;  %s168_s10 = sadd.s32 1, %s898_s10   ;;  %s898_s10 = sphi %s896_s10, %s168_s10  }
  0x32   : >> { %v172_v7 = vstv %s705_s11  ;;  %s170_s17 = scalar_lea.vmem [#allocation8], %s705_s11  ;;  %p165_p4 = scmp.ge.s32.totalorder %s168_s10, 4  }
  0x33   : >> { %v173_v8 = vadd.s32 %v172_v7, %v996_v2  ;;  %s1013_s19 = smov (%p165_p4), 0  }
  0x34   : > { %167 = sbr.rel (!%p165_p4) target bundleno = 49 (0x31), region = 181 }
  0x35   : >> { %174 = vst [vmem:[%s170_s17] sm:$0xff] %v173_v8 }
  0x39 LB: >> { %v185_v9 = vld [vmem:[%s1002_s6] sm:$0xff]  ;;  %v708_v10 = vld [vmem:[%s1002_s6 + $0x8] sm:$0xff]  ;;  %v1021_v11 = vadd.s32 8, %v996_v2  ;;  %v1024_v13 = vstv %s902_s19  ;;  %v709_v15 = vld [vmem:[%s1002_s6 + $0x10] sm:$0xff]  ;;  %v1030_v16 = vadd.s32 16, %v996_v2  ;;  %v1038_v21 = vadd.s32 24, %v996_v2  ;;  %s279_s21 = scalar_lea.vmem %s1002_s6, %s902_s19 [#allocation3]  ;;  %s902_s19 = sphi %s1013_s19, %s180_s19  }
  0x3a   : >> { %v186_v12 = vand.u32 2147483647, %v185_v9  ;;  %v198_v14 = vand.u32 2147483647, %v708_v10  ;;  %vm189_vm0 = vcmp.ge.s32.totalorder %v996_v2, %v1024_v13  ;;  %v210_v19 = vand.u32 2147483647, %v709_v15 }
  0x3b   : >> { %vm201_vm3 = vcmp.ge.s32.totalorder %v1021_v11, %v1024_v13  ;;  %v710_v20 = vld [vmem:[%s1002_s6 + $0x18] sm:$0xff]  ;;  %vm213_vm6 = vcmp.ge.s32.totalorder %v1030_v16, %v1024_v13  ;;  %vm225_vm9 = vcmp.ge.s32.totalorder %v1038_v21, %v1024_v13  ;;  %s267_s20 = ssub.s32 128, %s902_s19  ;;  %v1049_v57 = vand.u32 127, %v160_v0  ;;  %v276_v59 = vld [vmem:[%s991_s30] ss:$0 sm:$0xff]  ;;  %s285_s27 = scalar_lea.vmem [#allocation8], %s902_s19 }
  0x3c   : >> { %vm707_vm1 = vcmp.gt.f32.partialorder %v186_v12, -inf  ;;  %v222_v24 = vand.u32 2147483647, %v710_v20  ;;  %v281_v60 = vld [vmem:[%s279_s21] ss:$0 sm:$0xff]  ;;  %s180_s19 = sadd.s32 1, %s902_s19  }
  0x3d   : >> { %vm193_vm2 = vmand %vm189_vm0, %vm707_vm1  ;;  %v287_v1 = vld [vmem:[%s285_s27] ss:$0 sm:$0xff]  ;;  %p177_p7 = scmp.ge.s32.totalorder %s180_s19, 32  }
  0x3e   : >> { %v194_v17 = vsel %vm193_vm2, %v996_v2, %v1024_v13  ;;  %v195_v18 = vsel %vm193_vm2, %v186_v12, -inf  ;;  %s518_s29 = sshrl.u32 (%p177_p7), %s946_s16, 3  ;;  %s720_s19 = sshll.u32 (%p177_p7), %s946_s16, 5 }
  0x3f   : >> { %vm204_vm4 = vcmp.lt.f32.partialorder %v195_v18, %v198_v14  ;;  %s1171_s10 = sshll.u32 (%p177_p7), %s518_s29, 2  ;;  %s482_s16 = scalar_lea.sflag (%p177_p7), [#allocation2], %s130_s4 }
  0x40   : >> { %vm205_vm5 = vmand %vm201_vm3, %vm204_vm4  ;;  %vm1055_vm3 = vcmp.eq.s32.totalorder %v1049_v57, %v1024_v13  ;;  %s522_s17 = scalar_lea.hbm (%p177_p7), %s1231_s2, %s1171_s10 }
  0x41   : >> { %v206_v22 = vsel %vm205_vm5, %v1021_v11, %v194_v17  ;;  %v207_v23 = vsel %vm205_vm5, %v198_v14, %v195_v18  ;;  %vm389_vm5 = vcmp.gt.s32.totalorder %v1038_v21, %v1024_v13 }
  0x42   : >> { %vm216_vm7 = vcmp.lt.f32.partialorder %v207_v23, %v210_v19 }
  0x43   : >> { %vm217_vm8 = vmand %vm213_vm6, %vm216_vm7  ;;  %vm333_vm6 = vcmp.gt.s32.totalorder %v1021_v11, %v1024_v13  ;;  %vm305_vm7 = vcmp.gt.s32.totalorder %v996_v2, %v1024_v13 }
  0x44   : >> { %v218_v25 = vsel %vm217_vm8, %v1030_v16, %v206_v22  ;;  %v219_v26 = vsel %vm217_vm8, %v210_v19, %v207_v23 }
  0x45   : >> { %vm228_vm10 = vcmp.lt.f32.partialorder %v219_v26, %v222_v24 }
  0x46   : >> { %vm229_vm11 = vmand %vm225_vm9, %vm228_vm10  ;;  %vm1233_vm9 = vcmp.gt.s32.totalorder %v1030_v16, %v1024_v13 }
  0x47   : >> { %v230_v27 = vsel %vm229_vm11, %v1038_v21, %v218_v25  ;;  %v231_v28 = vsel %vm229_vm11, %v222_v24, %v219_v26 }
  0x48   : >> { %v232_v29 = vrot.slane %v231_v28, 1  ;;  %v233_v30 = vrot.slane %v230_v27, 1 }
  0x4a   : >> { %vm234_vm12 = vcmp.ge.f32.partialorder %v232_v29, %v231_v28  ;;  %v237_v31 = vrot.slane %v232_v29, 1  ;;  %v238_v32 = vrot.slane %v233_v30, 1 }
  0x4b   : >> { %v235_v33 = vsel %vm234_vm12, %v232_v29, %v231_v28  ;;  %v236_v34 = vsel %vm234_vm12, %v233_v30, %v230_v27 }
  0x4c   : >> { %vm239_vm13 = vcmp.ge.f32.partialorder %v237_v31, %v235_v33  ;;  %v242_v35 = vrot.slane %v237_v31, 1  ;;  %v243_v36 = vrot.slane %v238_v32, 1 }
  0x4d   : >> { %v240_v37 = vsel %vm239_vm13, %v237_v31, %v235_v33  ;;  %v241_v38 = vsel %vm239_vm13, %v238_v32, %v236_v34 }
  0x4e   : >> { %vm244_vm14 = vcmp.ge.f32.partialorder %v242_v35, %v240_v37  ;;  %v247_v39 = vrot.slane %v242_v35, 1  ;;  %v248_v40 = vrot.slane %v243_v36, 1 }
  0x4f   : >> { %v245_v41 = vsel %vm244_vm14, %v242_v35, %v240_v37  ;;  %v246_v42 = vsel %vm244_vm14, %v243_v36, %v241_v38 }
  0x50   : >> { %vm249_vm15 = vcmp.ge.f32.partialorder %v247_v39, %v245_v41  ;;  %v252_v43 = vrot.slane %v247_v39, 1  ;;  %v253_v44 = vrot.slane %v248_v40, 1 }
  0x51   : >> { %v250_v45 = vsel %vm249_vm15, %v247_v39, %v245_v41  ;;  %v251_v46 = vsel %vm249_vm15, %v248_v40, %v246_v42 }
  0x52   : >> { %vm254_vm0 = vcmp.ge.f32.partialorder %v252_v43, %v250_v45  ;;  %v257_v47 = vrot.slane %v252_v43, 1  ;;  %v258_v48 = vrot.slane %v253_v44, 1 }
  0x53   : >> { %v255_v49 = vsel %vm254_vm0, %v252_v43, %v250_v45  ;;  %v256_v50 = vsel %vm254_vm0, %v253_v44, %v251_v46  ;;  %vm1109_vm0 = vmand %vm389_vm5, %vm1055_vm3 }
  0x54   : >> { %vm259_vm1 = vcmp.ge.f32.partialorder %v257_v47, %v255_v49  ;;  %v262_v51 = vrot.slane %v257_v47, 1  ;;  %v263_v52 = vrot.slane %v258_v48, 1 }
  0x55   : >> { %v260_v53 = vsel %vm259_vm1, %v257_v47, %v255_v49  ;;  %v261_v54 = vsel %vm259_vm1, %v258_v48, %v256_v50 }
  0x56   : >> { %vm264_vm2 = vcmp.ge.f32.partialorder %v262_v51, %v260_v53 }
  0x57   : >> { %v266_v55 = vsel %vm264_vm2, %v263_v52, %v261_v54  ;;  %vm1118_vm2 = vmand %vm333_vm6, %vm1055_vm3 }
  0x58   : >> { %268 = vrot.lane.b32.xlu0 %v266_v55, %s267_s20  ;;  %s524_s20 = sshll.u32 (%p177_p7), %s132_s7, 4  ;;  %s525_s20 = int_to_ptr.vmem [resolvable:$true] %s524_s20 }
  0xca   : >> { %v269_v56 = vpop.permute.xlu0 %268 }
  0xcb   : >> { %725 = vpush %v269_v56 }
  0xfc   : >> { %s726_s22 = spop %725 }
  0xfd   : >> { %v275_v61 = vstv %s726_s22  ;;  %s280_s26 = scalar_lea.vmem %s1002_s6, %s726_s22 [#allocation3]  ;;  %s286_s28 = scalar_lea.vmem [#allocation8], %s726_s22 }
  0xfe   : >> { %v277_v62 = vsel %vm1055_vm3, %v275_v61, %v276_v59  ;;  %v1063_v63 = vld [vmem:[%s280_s26] ss:$0 sm:$0xff] }
  0xff   : >> { %278 = vst [vmem:[%s991_s30] sm:$0x1] %v277_v62  ;;  %v288_v3 = vld [vmem:[%s286_s28] ss:$0 sm:$0xff]  ;;  %vm291_vm4 = vcmp.ne.f32.partialorder %v1063_v63, 0.0 }
 0x100   : >> { %283 = vst [vmem:[%s280_s26] sm:$0x1] %v281_v60  ;;  %vm292_vm8 = vmand %vm1055_vm3, %vm291_vm4 }
 0x101   : >> { %284 = vst [vmem:[%s279_s21] sm:$0x1] %v1063_v63  ;;  %v293_v4 = vsel %vm292_vm8, %v1063_v63, 1.0  ;;  %s526_s21 = sshll.u32 (%p177_p7), %s522_s17, 4  ;;  %s842_s17 = scalar_lea.hbm (%p177_p7), %s1231_s2, 4  ;;  %s527_s21 = int_to_ptr.hbm [resolvable:$true] %s526_s21 }
 0x102   : >> { %289 = vst [vmem:[%s286_s28] sm:$0x1] %v287_v1  ;;  %v390_v5 = vsel %vm389_vm5, %v293_v4, 1.0  ;;  %v334_v6 = vsel %vm333_vm6, %v293_v4, 1.0  ;;  %v306_v7 = vsel %vm305_vm7, %v293_v4, 1.0  ;;  %v1092_v8 = vsel %vm1233_vm9, %v293_v4, 1.0  ;;  %s836_s28 = sshra.s32 (%p177_p7), %s527_s21, 4  ;;  %s837_s28 = int_to_ptr.hbm [resolvable:$true] %s836_s28 }
 0x103   : >> { %290 = vst [vmem:[%s285_s27] sm:$0x1] %v288_v3  ;;  %786 = vrcp.f32 %v390_v5  ;;  %v400_v9 = vand.u32 2147483647, %v390_v5  ;;  %v402_v10 = vand.u32 2147483648, %v390_v5  ;;  %v344_v14 = vand.u32 2147483647, %v334_v6  ;;  %s491_s27 = scalar_lea.vmem (%p177_p7), %s1230_s1, %s720_s19  ;;  %p843_p11 = scmp.lt.s32.totalorder (%p177_p7), %s837_s28, %s1231_s2 }
 0x104   : >> { %788 = vrcp.f32 %v334_v6  ;;  %v346_v15 = vand.u32 2147483648, %v334_v6  ;;  %vm396_vm10 = vweird.f32 %v390_v5  ;;  %vm340_vm11 = vweird.f32 %v334_v6  ;;  %s838_s29 = scalar_lea.hbm (%p177_p7), %s837_s28, 4 }
 0x105   : >> { %790 = vrcp.f32 %v306_v7  ;;  %vm1095_vm12 = vcmp.eq.f32.partialorder %v400_v9, 8.507059e+37  ;;  %v403_v24 = vor.u32 1.1754944e-38, %v402_v10  ;;  %vm1099_vm13 = vcmp.eq.f32.partialorder %v344_v14, 8.507059e+37  ;;  %p839_p8 = scmp.ne.s32.totalorder (%p177_p7), %s837_s28, %s838_s29  ;;  %p844_p12 = scmp.lt.s32.totalorder (%p177_p7), %s842_s17, %s838_s29 }
 0x106   : >> { %792 = vrcp.f32 %v1092_v8  ;;  %v347_v29 = vor.u32 1.1754944e-38, %v346_v15  ;;  %vm312_vm14 = vweird.f32 %v306_v7  ;;  %v316_v35 = vand.u32 2147483647, %v306_v7  ;;  %v467_v0 = vld [vmem:[#allocation4] sm:$0xf] (%p177_p7) }
 0x107   : >> { %v318_v36 = vand.u32 2147483648, %v306_v7  ;;  %vm368_vm8 = vweird.f32 %v1092_v8  ;;  %v372_v41 = vand.u32 2147483647, %v1092_v8  ;;  %v374_v42 = vand.u32 2147483648, %v1092_v8  ;;  %470 = vst [vmem:[%s132_s7] sm:$0xf] (%p177_p7), %v467_v0  ;;  %p840_p9 = pnand (%p177_p7), %p839_p8, %p963_p5  ;;  %p845_p13 = por (%p177_p7), %p844_p12, %p843_p11 }
 0x108   : >> { %v715_v45 = vld [vmem:[%s1002_s6 + $0x18] sm:$0xff]  ;;  %v711_v50 = vld [vmem:[%s1002_s6 + $0x8] sm:$0xff]  ;;  %v302_v56 = vld [vmem:[%s1002_s6] sm:$0xff] }
 0x109   : >> { %v787_v12 = vpop.eup %786  ;;  %v319_v48 = vor.u32 1.1754944e-38, %v318_v36  ;;  %v375_v1 = vor.u32 1.1754944e-38, %v374_v42  ;;  %p841_p10 = pneg (%p177_p7), %p840_p9 }
 0x10a   : >> { %v789_v17 = vpop.eup %788  ;;  %v392_v18 = vmul.f32 %v787_v12, %v390_v5  ;;  %vm397_vm15 = vweird.f32 %v787_v12 }
 0x10b   : >> { %v791_v19 = vpop.eup %790  ;;  %v336_v20 = vmul.f32 %v789_v17, %v334_v6  ;;  %vm341_vm1 = vweird.f32 %v789_v17  ;;  %vm398_vm5 = vmor %vm396_vm10, %vm397_vm15  ;;  %vm317_vm15 = vcmp.eq.f32.partialorder %v316_v35, 8.507059e+37  ;;  %v713_v6 = vld [vmem:[%s1002_s6 + $0x10] sm:$0xff]  ;;  %p846_p0 = pnand (%p177_p7), %p845_p13, %p841_p10 }
 0x10c   : >> { %v393_v22 = vsub.f32 1.0, %v392_v18  ;;  %v308_v25 = vmul.f32 %v791_v19, %v306_v7  ;;  %v793_v26 = vpop.eup %792  ;;  %vm313_vm4 = vweird.f32 %v791_v19  ;;  %vm342_vm9 = vmor %vm340_vm11, %vm341_vm1 }
 0x10d   : >> { %v337_v27 = vsub.f32 1.0, %v336_v20  ;;  %v364_v32 = vmul.f32 %v793_v26, %v1092_v8  ;;  %vm369_vm6 = vweird.f32 %v793_v26  ;;  %vm314_vm10 = vmor %vm312_vm14, %vm313_vm4  ;;  %vm297_vm14 = vcmp.gt.s32.totalorder %v1049_v57, %v1024_v13  ;;  %v415_v57 = vld [vmem:[#allocation8 + $0x8] sm:$0xff] (%p177_p7) }
 0x10e   : >> { %v394_v30 = vmul.f32 %v787_v12, %v393_v22  ;;  %v309_v31 = vsub.f32 1.0, %v308_v25  ;;  %vm1140_vm11 = vmand %vm305_vm7, %vm1055_vm3  ;;  %vm373_vm7 = vcmp.eq.f32.partialorder %v372_v41, 8.507059e+37  ;;  %v298_v9 = vsel %vm297_vm14, %v1063_v63, 0.0  ;;  %v417_v63 = vld [vmem:[#allocation8 + $0x10] sm:$0xff] (%p177_p7) }
 0x10f   : >> { %v338_v34 = vmul.f32 %v789_v17, %v337_v27  ;;  %v365_v39 = vsub.f32 1.0, %v364_v32 }
 0x110   : >> { %v395_v37 = vadd.f32 %v787_v12, %v394_v30  ;;  %v310_v21 = vmul.f32 %v791_v19, %v309_v31 }
 0x111   : >> { %v339_v40 = vadd.f32 %v789_v17, %v338_v34  ;;  %v366_v44 = vmul.f32 %v793_v26, %v365_v39 }
 0x112   : >> { %v399_v43 = vsel %vm398_vm5, %v787_v12, %v395_v37  ;;  %v311_v11 = vadd.f32 %v791_v19, %v310_v21 }
 0x113   : >> { %v404_v46 = vsel %vm1095_vm12, %v403_v24, %v399_v43  ;;  %v343_v47 = vsel %vm342_vm9, %v789_v17, %v339_v40  ;;  %v367_v54 = vadd.f32 %v793_v26, %v366_v44  ;;  %vm370_vm9 = vmor %vm368_vm8, %vm369_vm6  ;;  %vm1248_vm12 = vcmp.gt.s32.totalorder %v1030_v16, %v1024_v13  ;;  %v413_v13 = vld [vmem:[#allocation8] sm:$0xff] (%p177_p7)  ;;  %v419_v24 = vld [vmem:[#allocation8 + $0x18] sm:$0xff] (%p177_p7) }
 0x114   : >> { %v405_v49 = vmul.f32 %v715_v45, %v404_v46  ;;  %v348_v51 = vsel %vm1099_vm13, %v347_v29, %v343_v47  ;;  %v315_v52 = vsel %vm314_vm10, %v791_v19, %v311_v11  ;;  %vm378_vm13 = vmand %vm1248_vm12, %vm1055_vm3 }
 0x115   : >> { %v349_v55 = vmul.f32 %v711_v50, %v348_v51  ;;  %v320_v59 = vsel %vm317_vm15, %v319_v48, %v315_v52  ;;  %v371_v62 = vsel %vm370_vm9, %v793_v26, %v367_v54 }
 0x116   : >> { %v407_v60 = vsel %vm1109_vm0, %v405_v49, 0.0  ;;  %v321_v61 = vmul.f32 %v320_v59, %v302_v56  ;;  %v376_v5 = vsel %vm373_vm7, %v375_v1, %v371_v62 }
 0x117   : >> { %408 = vadd.xlane.f32.xlu2 %v407_v60  ;;  %v351_v3 = vsel %vm1118_vm2, %v349_v55, 0.0  ;;  %v377_v7 = vmul.f32 %v713_v6, %v376_v5 }
 0x118   : >> { %352 = vadd.xlane.f32.xlu1 %v351_v3  ;;  %v323_v4 = vsel %vm1140_vm11, %v321_v61, 0.0 }
 0x119   : >> { %324 = vadd.xlane.f32.xlu0 %v323_v4  ;;  %v379_v8 = vsel %vm378_vm13, %v377_v7, 0.0 }
 0x120   : >> { %380 = vadd.xlane.f32.xlu1 %v379_v8 }
 0x142   : > { %432 = vxpose.xlu0.b32.start [1/4] (short) (narrow) (%p177_p7), %v413_v13, 8 }
 0x14a   : > { %433 = vxpose.xlu0.b32.cont [2/4] (short) (narrow) (%p177_p7), %v415_v57, 8 }
 0x152   : > { %434 = vxpose.xlu0.b32.cont [3/4] (short) (narrow) (%p177_p7), %v417_v63, 8 }
 0x15a   : > { %435 = vxpose.xlu0.b32.end [4/4] (short) (narrow) (%p177_p7), %v419_v24, 8 }
 0x18a   : >> { %v409_v10 = vpop.xlane.xlu2 %408 }
 0x18b   : >> { %v410_v12 = vmul.f32 %v409_v10, %v298_v9  ;;  %v353_v14 = vpop.xlane.xlu1 %352 }
 0x18c   : >> { %v354_v15 = vmul.f32 %v353_v14, %v298_v9  ;;  %v325_v17 = vpop.xlane.xlu0 %324 }
 0x18d   : >> { %v411_v58 = vsub.f32 %v405_v49, %v410_v12  ;;  %v326_v18 = vmul.f32 %v325_v17, %v298_v9 }
 0x18e   : >> { %v355_v19 = vsub.f32 %v349_v55, %v354_v15 }
 0x18f   : >> { %716 = vst [vmem:[%s1002_s6 + $0x18] sm:$0xff] %v411_v58  ;;  %v327_v16 = vsub.f32 %v321_v61, %v326_v18 }
 0x190   : >> { %712 = vst [vmem:[%s1002_s6 + $0x8] sm:$0xff] %v355_v19 }
 0x191   : >> { %328 = vst [vmem:[%s1002_s6] sm:$0xff] %v327_v16 }
 0x193   : >> { %v381_v20 = vpop.xlane.xlu1 %380 }
 0x194   : >> { %v382_v22 = vmul.f32 %v381_v20, %v298_v9 }
 0x196   : >> { %v383_v23 = vsub.f32 %v377_v7, %v382_v22  ;;  %179 = sbr.rel (!%p177_p7) target bundleno = 57 (0x39), region = 192  ;;  %v510_v27 = vld [vmem:[%s1002_s6 + $0x18] sm:$0xff] (%p177_p7) }
 0x197   : > { %v506_v25 = vld [vmem:[%s1002_s6 + $0x8] sm:$0xff] (%p177_p7) }
 0x198   : >> { %714 = vst [vmem:[%s1002_s6 + $0x10] sm:$0xff] %v383_v23  ;;  %v504_v2 = vld [vmem:[%s1002_s6] sm:$0xff] (%p177_p7) }
 0x199   : > { %505 = vst [vmem:[%s491_s27] sm:$0xff] (%p177_p7), %v504_v2 }
 0x19f   : > { %v508_v26 = vld [vmem:[%s1002_s6 + $0x10] sm:$0xff] }
 0x1a0   : > { %849 = shalt.err (!%p846_p0)
}
 0x1a1   : > { %729 = dma.vmem_to_hbm [thread:$0]  (%p963_p5), %s525_s20, 64, %s527_s21, %s482_s16   ;;  %507 = vst [vmem:[%s491_s27 + $0x8] sm:$0xff] %v506_v25 }
 0x1a2   : > { %509 = vst [vmem:[%s491_s27 + $0x10] sm:$0xff] %v508_v26  ;;  %s535_s22 = scalar_lea.vmem (%p963_p5), %s1232_s3, %s1171_s10 }
 0x1a3   : > { %511 = vst [vmem:[%s491_s27 + $0x18] sm:$0xff] %v510_v27 }
 0x1e6   : > { %v448_v28 = vpop.trf.xlu0 }
 0x1e7   : > { %464 = vst [vmem:[%s1010_s9] sm:$0x1] %v448_v28 }
 0x1eb   : > { %532 = sbr.rel (!%p963_p5) target bundleno = 504 (0x1f8), region = 61 }
 0x1ee   : > { %v473_v29 = vld [vmem:[#allocation6] sm:$0xf] }
 0x1ef   : > { %476 = vst [vmem:[%s138_s8] sm:$0xf] %v473_v29 }
 0x1f6   : > { %v552_v30 = vld [vmem:[%s138_s8] sm:$0xf] }
 0x1f7   : > { %553 = vst [vmem:[%s535_s22] sm:$0xf] %v552_v30 }
 0x1f8 PF: > { %p736_p1 = scmp.ge.s32.totalorder %s894_s15, 2  ;;  %s581_s9 = sand.u32 1, %s882_s12  }
 0x1f9   : > { %s582_s24 = scalar_lea.sflag [#allocation2], %s581_s9 }
 0x1fa   : > { %p732_p2 = pnand %p736_p1, %p967_p6 }
 0x1fc   : > { %p733_p3 = pneg %p732_p2 }
 0x1fe   : > { %877 = dma.done.wait (%p733_p3), %s582_s24, 64  }
 0x1ff   : > { %879 = vsyncadd (%p733_p3), %s582_s24, 4294967232  ;;  %p13_p5 = scmp.ge.s32.totalorder %s950_s18, 6   ;;  %s1249_s12 = smov %s886_s13 }
 0x200   : > { %s1250_s13 = smov %s890_s14  ;;  %s1251_s14 = smov %s961_s23 }
 0x201   : > { %s1252_s15 = smov %s950_s18  ;;  %15 = sbr.rel (!%p13_p5) target bundleno = 5 (0x5), region = 203 }
 0x206   :  { %595 = vsyncpa [#allocation1], 1 }
 0x207   :  { %597 = vsyncpa [#allocation1 + $0x1], 1 }
 0x208   :  { %598 = vsyncpa [#allocation2], 1 }
 0x209   :  { %600 = vsyncpa [#allocation2 + $0x1], 1 }

// kernel: custom-call.13
= control target key start
LH: loop header
LB: loop body
LE: loop exit
PB: predicated region body
PF: predicated region fallthrough
CT: control target
= control target key end

     0   :  { %s1060_s6 = smov 0   ;;  %s1062_s7 = smov 0   ;;  %s1274_s0 = inlined_call_operand.vmem [shape: f32[4,1,32,32], index: 0, kind: input, shape index: {}]   ;;  %s1275_s1 = inlined_call_operand.vmem [shape: f32[4,1,32,32], index: 1, kind: output, shape index: {}]  }
   0x1   :  { %s1064_s8 = smov 0  }
   0x2 LB: > { %s968_s9 = sadd.s32 4294967295, %s1046_s8   ;;  %s33_s10 = sadd.s32 1, %s1042_s7  ;;  %s1046_s8 = sphi %s1064_s8, %s7_s8   ;;  %s1042_s7 = sphi %s1062_s7, %s1277_s7   ;;  %s1038_s6 = sphi %s1060_s6, %s1276_s6  }
   0x3   : > { %p35_p0 = scmp.ge.s32.totalorder %s33_s10, 4  ;;  %p970_p1 = scmp.ge.s32.totalorder %s1046_s8, 4 }
   0x4   : > { %s49_s11 = sand.u32 (!%p970_p1), 1, %s1046_s8   ;;  %s988_s12 = sshll.u32 (!%p970_p1), %s1042_s7, 5 }
   0x5   : > { %s1279_s10 = smov (%p35_p0, %s33_s10), 0  ;;  %47 = sbr.rel (%p970_p1) target bundleno = 15 (0xf), region = 16 }
   0x6   : > { %s971_s13 = sshll.u32 (!%p970_p1), %s49_s11, 5  ;;  %s58_s16 = scalar_lea.vmem (!%p970_p1), %s1274_s0, %s988_s12 }
   0x7   : > { %s51_s17 = scalar_lea.vmem (!%p970_p1), [#allocation0], %s971_s13 }
   0xa   : > { %v93_v0 = vld [vmem:[%s58_s16] sm:$0xff]  ;;  %v95_v1 = vld [vmem:[%s58_s16 + $0x8] sm:$0xff]  ;;  %v97_v2 = vld [vmem:[%s58_s16 + $0x10] sm:$0xff] }
   0xb   : > { %94 = vst [vmem:[%s51_s17] sm:$0xff] %v93_v0  ;;  %v99_v3 = vld [vmem:[%s58_s16 + $0x18] sm:$0xff] }
   0xc   : > { %96 = vst [vmem:[%s51_s17 + $0x8] sm:$0xff] %v95_v1 }
   0xd   : > { %98 = vst [vmem:[%s51_s17 + $0x10] sm:$0xff] %v97_v2 }
   0xe   : > { %100 = vst [vmem:[%s51_s17 + $0x18] sm:$0xff] %v99_v3 }
   0xf PF: > { %p974_p2 = scmp.ge.s32.totalorder %s1046_s8, 1  ;;  %p105_p3 = scmp.lt.s32.totalorder %s1046_s8, 5 }
  0x11   : > { %p106_p4 = pnand %p974_p2, %p105_p3 }
  0x13   : > { %109 = sbr.rel (%p106_p4) target bundleno = 3876 (0xf24), region = 54 }
  0x18   : > { %s112_s18 = sand.u32 1, %s968_s9   ;;  %v123_v4 = vlaneseq  ;;  %v1048_v22 = vmov -1.0   ;;  %v1049_v1 = vmov 0.0   ;;  %s989_s21 = sshll.u32 %s1038_s6, 5 }
  0x19   : > { %s975_s19 = sshll.u32 %s112_s18, 5  ;;  %s859_s24 = scalar_lea.vmem %s1275_s1, %s989_s21 }
  0x1a   : > { %v1087_v5 = vand.u32 127, %v123_v4  ;;  %v1089_v6 = vshrl.u32 %v123_v4, 7  ;;  %s1091_s20 = scalar_lea.vmem [#allocation0], %s975_s19 }
  0x1b   : > { %v130_v7 = vld [vmem:[%s1091_s20] sm:$0xff]  ;;  %v977_v44 = vld [vmem:[%s1091_s20 + $0x8] sm:$0xff] }
  0x1c   : > { %vm129_vm0 = vcmp.eq.s32.totalorder %v1089_v6, %v1087_v5  ;;  %vm125_vm1 = vcmp.lt.s32.totalorder %v1087_v5, 32  ;;  %vm134_vm2 = vcmp.ge.s32.totalorder %v1089_v6, %v1087_v5  ;;  %vm248_vm8 = vcmp.eq.s32.totalorder %v1087_v5, 0 }
  0x1d   : > { %v131_v8 = vsel %vm129_vm0, %v130_v7, 0.0  ;;  %vm135_vm3 = vmand %vm134_vm2, %vm125_vm1  ;;  %vm245_vm9 = vcmp.eq.s32.totalorder %v1087_v5, %v1089_v6  ;;  %v249_v23 = vsel %vm248_vm8, 1.0, %v1048_v22  ;;  %vm277_vm10 = vcmp.eq.s32.totalorder %v1087_v5, 1 }
  0x1e   : > { %132 = vadd.xlane.f32.xlu0 %v131_v8  ;;  %v136_v17 = vsel %vm135_vm3, %v130_v7, 0.0  ;;  %v250_v24 = vsel %vm245_vm9, %v249_v23, 0.0  ;;  %vm287_vm11 = vcmp.eq.s32.totalorder %v1087_v5, 2  ;;  %vm297_vm12 = vcmp.eq.s32.totalorder %v1087_v5, 3 }
  0x1f   : > { %v157_v43 = vadd.s32 8, %v1089_v6  ;;  %vm307_vm14 = vcmp.eq.s32.totalorder %v1087_v5, 4  ;;  %vm317_vm8 = vcmp.eq.s32.totalorder %v1087_v5, 5  ;;  %vm327_vm9 = vcmp.eq.s32.totalorder %v1087_v5, 6 }
  0x21   : > { %vm158_vm13 = vcmp.eq.s32.totalorder %v157_v43, %v1087_v5  ;;  %vm163_vm15 = vcmp.ge.s32.totalorder %v157_v43, %v1087_v5 }
  0x22   : > { %v160_v45 = vsel %vm158_vm13, %v977_v44, 0.0  ;;  %vm164_vm3 = vmand %vm163_vm15, %vm125_vm1  ;;  %vm375_vm13 = vcmp.eq.s32.totalorder %v1087_v5, 10  ;;  %vm403_vm15 = vcmp.eq.s32.totalorder %v1087_v5, 12 }
  0x23   : > { %v165_v60 = vsel %vm164_vm3, %v977_v44, 0.0  ;;  %vm417_vm3 = vcmp.eq.s32.totalorder %v1087_v5, 13 }
  0x91   : > { %v1096_v9 = vpop.xlane.xlu0 %132 }
  0x92   : > { %1016 = vrcp.f32 %v1096_v9  ;;  %v148_v13 = vand.u32 2147483648, %v1096_v9  ;;  %v146_v15 = vand.u32 2147483647, %v1096_v9  ;;  %vm142_vm5 = vweird.f32 %v1096_v9 }
  0x94   : > { %v149_v18 = vor.u32 1.1754944e-38, %v148_v13  ;;  %vm147_vm7 = vcmp.eq.f32.partialorder %v146_v15, 8.507059e+37 }
  0x98   : > { %v1017_v10 = vpop.eup %1016 }
  0x99   : > { %v138_v11 = vmul.f32 %v1017_v10, %v1096_v9  ;;  %vm143_vm4 = vweird.f32 %v1017_v10 }
  0x9a   : > { %vm144_vm6 = vmor %vm142_vm5, %vm143_vm4 }
  0x9b   : > { %v139_v12 = vsub.f32 1.0, %v138_v11 }
  0x9d   : > { %v140_v14 = vmul.f32 %v1017_v10, %v139_v12 }
  0x9f   : > { %v141_v16 = vadd.f32 %v1017_v10, %v140_v14 }
  0xa1   : > { %v145_v19 = vsel %vm144_vm6, %v1017_v10, %v141_v16 }
  0xa2   : > { %v1110_v20 = vsel %vm147_vm7, %v149_v18, %v145_v19  ;;  %vm256_vm7 = vcmp.eq.s32.totalorder %v1087_v5, %v157_v43 }
  0xa3   : > { %v151_v21 = vmul.f32 %v1110_v20, %v136_v17  ;;  %v257_v2 = vsel %vm256_vm7, -1.0, %v1049_v1 }
  0xa5   : > { %152 = vst [vmem:[#allocation2] sm:$0xff] %v151_v21 }
  0xac   : > { %v273_v25 = vld [vmem:[#allocation2 + $0x1] ss:$0 sm:$0xff]  ;;  %v283_v28 = vld [vmem:[#allocation2 + $0x2] ss:$0 sm:$0xff]  ;;  %v293_v33 = vld [vmem:[#allocation2 + $0x3] ss:$0 sm:$0xff] }
  0xad   : > { %v274_v26 = vxor.u32 2147483648, %v273_v25  ;;  %v284_v30 = vxor.u32 2147483648, %v283_v28  ;;  %v294_v35 = vxor.u32 2147483648, %v293_v33  ;;  %v303_v38 = vld [vmem:[#allocation2 + $0x4] ss:$0 sm:$0xff] }
  0xae   : > { %v304_v40 = vxor.u32 2147483648, %v303_v38  ;;  %v313_v46 = vld [vmem:[#allocation2 + $0x5] ss:$0 sm:$0xff]  ;;  %v323_v0 = vld [vmem:[#allocation2 + $0x6] ss:$0 sm:$0xff] }
  0xaf   : > { %v278_v27 = vmul.f32 %v274_v26, %v250_v24  ;;  %v314_v48 = vxor.u32 2147483648, %v313_v46  ;;  %v324_v7 = vxor.u32 2147483648, %v323_v0  ;;  %v333_v13 = vld [vmem:[#allocation2 + $0x7] ss:$0 sm:$0xff] }
  0xb0   : > { %v334_v15 = vxor.u32 2147483648, %v333_v13 }
  0xb1   : > { %279 = vadd.xlane.f32.xlu0 %v278_v27 }
 0x124   : > { %v280_v29 = vpop.xlane.xlu0 %279 }
 0x125   : > { %v281_v31 = vsel %vm277_vm10, %v280_v29, %v250_v24  ;;  %vm337_vm10 = vcmp.eq.s32.totalorder %v1087_v5, 7 }
 0x126   : > { %v288_v32 = vmul.f32 %v284_v30, %v281_v31 }
 0x128   : > { %289 = vadd.xlane.f32.xlu1 %v288_v32 }
 0x19b   : > { %v290_v34 = vpop.xlane.xlu1 %289 }
 0x19c   : > { %v291_v36 = vsel %vm287_vm11, %v290_v34, %v281_v31  ;;  %vm347_vm11 = vcmp.eq.s32.totalorder %v1087_v5, 8 }
 0x19d   : > { %v298_v37 = vmul.f32 %v294_v35, %v291_v36 }
 0x19f   : > { %299 = vadd.xlane.f32.xlu1 %v298_v37 }
 0x1a7   : > { %161 = vadd.xlane.f32.xlu1 %v160_v45 }
 0x212   : > { %v300_v39 = vpop.xlane.xlu1 %299 }
 0x213   : > { %v301_v41 = vsel %vm297_vm12, %v300_v39, %v291_v36  ;;  %vm361_vm12 = vcmp.eq.s32.totalorder %v1087_v5, 9 }
 0x214   : > { %v308_v42 = vmul.f32 %v304_v40, %v301_v41 }
 0x216   : > { %309 = vadd.xlane.f32.xlu2 %v308_v42 }
 0x21a   : > { %v1123_v51 = vpop.xlane.xlu1 %161 }
 0x21b   : > { %1018 = vrcp.f32 %v1123_v51  ;;  %v177_v54 = vand.u32 2147483648, %v1123_v51  ;;  %vm171_vm0 = vweird.f32 %v1123_v51  ;;  %v175_v56 = vand.u32 2147483647, %v1123_v51 }
 0x21d   : > { %v178_v58 = vor.u32 1.1754944e-38, %v177_v54  ;;  %vm176_vm6 = vcmp.eq.f32.partialorder %v175_v56, 8.507059e+37 }
 0x221   : > { %v1019_v52 = vpop.eup %1018 }
 0x222   : > { %v167_v53 = vmul.f32 %v1019_v52, %v1123_v51  ;;  %vm172_vm2 = vweird.f32 %v1019_v52 }
 0x223   : > { %vm173_vm4 = vmor %vm171_vm0, %vm172_vm2 }
 0x224   : > { %v168_v55 = vsub.f32 1.0, %v167_v53 }
 0x226   : > { %v169_v57 = vmul.f32 %v1019_v52, %v168_v55 }
 0x228   : > { %v170_v59 = vadd.f32 %v1019_v52, %v169_v57 }
 0x22a   : > { %v174_v61 = vsel %vm173_vm4, %v1019_v52, %v170_v59 }
 0x22b   : > { %v1135_v62 = vsel %vm176_vm6, %v178_v58, %v174_v61  ;;  %v978_v61 = vld [vmem:[%s1091_s20 + $0x10] sm:$0xff] }
 0x22c   : > { %v180_v63 = vmul.f32 %v1135_v62, %v165_v60  ;;  %v186_v60 = vadd.s32 16, %v1089_v6 }
 0x22e   : > { %181 = vst [vmem:[#allocation2 + $0x8] sm:$0xff] %v180_v63  ;;  %vm187_vm2 = vcmp.eq.s32.totalorder %v186_v60, %v1087_v5  ;;  %vm192_vm4 = vcmp.ge.s32.totalorder %v186_v60, %v1087_v5 }
 0x22f   : > { %v189_v63 = vsel %vm187_vm2, %v978_v61, 0.0  ;;  %vm495_vm2 = vcmp.eq.s32.totalorder %v1087_v5, 18 }
 0x235   : > { %v343_v3 = vld [vmem:[#allocation2 + $0x8] ss:$0 sm:$0xff]  ;;  %v357_v22 = vld [vmem:[#allocation2 + $0x9] ss:$0 sm:$0xff]  ;;  %v371_v30 = vld [vmem:[#allocation2 + $0xa] ss:$0 sm:$0xff] }
 0x236   : > { %v344_v8 = vxor.u32 2147483648, %v343_v3  ;;  %v358_v24 = vxor.u32 2147483648, %v357_v22  ;;  %v372_v32 = vxor.u32 2147483648, %v371_v30  ;;  %v385_v38 = vld [vmem:[#allocation2 + $0xb] ss:$0 sm:$0xff] }
 0x237   : > { %v386_v40 = vxor.u32 2147483648, %v385_v38  ;;  %v399_v46 = vld [vmem:[#allocation2 + $0xc] ss:$0 sm:$0xff]  ;;  %v413_v55 = vld [vmem:[#allocation2 + $0xd] ss:$0 sm:$0xff] }
 0x238   : > { %v352_v12 = vmul.f32 %v344_v8, %v257_v2  ;;  %v414_v57 = vxor.u32 2147483648, %v413_v55 }
 0x23a   : > { %353 = vadd.xlane.f32.xlu1 %v352_v12 }
 0x289   : > { %v310_v47 = vpop.xlane.xlu2 %309 }
 0x28a   : > { %v311_v49 = vsel %vm307_vm14, %v310_v47, %v301_v41  ;;  %vm389_vm14 = vcmp.eq.s32.totalorder %v1087_v5, 11 }
 0x28b   : > { %v318_v50 = vmul.f32 %v314_v48, %v311_v49  ;;  %v400_v48 = vxor.u32 2147483648, %v399_v46 }
 0x28d   : > { %319 = vadd.xlane.f32.xlu2 %v318_v50 }
 0x2ad   : > { %v354_v23 = vpop.xlane.xlu1 %353 }
 0x2ae   : > { %v355_v25 = vsel %vm347_vm11, %v354_v23, %v257_v2 }
 0x2af   : > { %v366_v26 = vmul.f32 %v358_v24, %v355_v25 }
 0x300   : > { %v320_v4 = vpop.xlane.xlu2 %319 }
 0x301   : > { %v321_v10 = vsel %vm317_vm8, %v320_v4, %v311_v49  ;;  %v427_v4 = vld [vmem:[#allocation2 + $0xe] ss:$0 sm:$0xff]  ;;  %vm193_vm8 = vmand %vm192_vm4, %vm125_vm1  ;;  %vm531_vm4 = vcmp.eq.s32.totalorder %v1087_v5, 20 }
 0x302   : > { %v328_v11 = vmul.f32 %v324_v7, %v321_v10  ;;  %v194_v22 = vsel %vm193_vm8, %v978_v61, 0.0 }
 0x304   : > { %329 = vadd.xlane.f32.xlu0 %v328_v11 }
 0x377   : > { %v330_v14 = vpop.xlane.xlu0 %329 }
 0x378   : > { %v331_v16 = vsel %vm327_vm9, %v330_v14, %v321_v10 }
 0x379   : > { %v338_v17 = vmul.f32 %v334_v15, %v331_v16 }
 0x37b   : > { %339 = vadd.xlane.f32.xlu2 %v338_v17 }
 0x3ee   : > { %v340_v18 = vpop.xlane.xlu2 %339 }
 0x3ef   : > { %v341_v19 = vsel %vm337_vm10, %v340_v18, %v331_v16 }
 0x3f0   : > { %v348_v21 = vmul.f32 %v344_v8, %v341_v19  ;;  %v428_v8 = vxor.u32 2147483648, %v427_v4 }
 0x3f2   : > { %349 = vadd.xlane.f32.xlu0 %v348_v21 }
 0x3fa   : > { %367 = vadd.xlane.f32.xlu0 %v366_v26 }
 0x465   : > { %v350_v27 = vpop.xlane.xlu0 %349 }
 0x466   : > { %v351_v28 = vsel %vm347_vm11, %v350_v27, %v341_v19  ;;  %vm431_vm11 = vcmp.eq.s32.totalorder %v1087_v5, 14 }
 0x467   : > { %v362_v29 = vmul.f32 %v358_v24, %v351_v28 }
 0x469   : > { %363 = vadd.xlane.f32.xlu2 %v362_v29  ;;  %v441_v29 = vld [vmem:[#allocation2 + $0xf] ss:$0 sm:$0xff] }
 0x46d   : > { %v368_v31 = vpop.xlane.xlu0 %367 }
 0x46e   : > { %v369_v33 = vsel %vm361_vm12, %v368_v31, %v355_v25  ;;  %v442_v31 = vxor.u32 2147483648, %v441_v29 }
 0x46f   : > { %v380_v34 = vmul.f32 %v372_v32, %v369_v33 }
 0x471   : > { %381 = vadd.xlane.f32.xlu2 %v380_v34 }
 0x4dc   : > { %v364_v35 = vpop.xlane.xlu2 %363 }
 0x4dd   : > { %v365_v36 = vsel %vm361_vm12, %v364_v35, %v351_v28  ;;  %vm263_vm12 = vcmp.eq.s32.totalorder %v1087_v5, %v186_v60 }
 0x4de   : > { %v376_v37 = vmul.f32 %v372_v32, %v365_v36 }
 0x4e0   : > { %377 = vadd.xlane.f32.xlu1 %v376_v37 }
 0x4e4   : > { %v382_v39 = vpop.xlane.xlu2 %381 }
 0x4e5   : > { %v383_v41 = vsel %vm375_vm13, %v382_v39, %v369_v33 }
 0x4e6   : > { %v394_v42 = vmul.f32 %v386_v40, %v383_v41 }
 0x4e8   : > { %395 = vadd.xlane.f32.xlu1 %v394_v42 }
 0x553   : > { %v378_v43 = vpop.xlane.xlu1 %377 }
 0x554   : > { %v379_v44 = vsel %vm375_vm13, %v378_v43, %v365_v36  ;;  %v264_v36 = vsel %vm263_vm12, -1.0, %v1049_v1  ;;  %vm445_vm13 = vcmp.eq.s32.totalorder %v1087_v5, 15 }
 0x555   : > { %v390_v45 = vmul.f32 %v386_v40, %v379_v44 }
 0x557   : > { %391 = vadd.xlane.f32.xlu0 %v390_v45 }
 0x55b   : > { %v396_v47 = vpop.xlane.xlu1 %395 }
 0x55c   : > { %v397_v49 = vsel %vm389_vm14, %v396_v47, %v383_v41 }
 0x55d   : > { %v408_v50 = vmul.f32 %v400_v48, %v397_v49 }
 0x55f   : > { %409 = vadd.xlane.f32.xlu0 %v408_v50 }
 0x5ca   : > { %v392_v52 = vpop.xlane.xlu0 %391 }
 0x5cb   : > { %v393_v53 = vsel %vm389_vm14, %v392_v52, %v379_v44  ;;  %vm459_vm14 = vcmp.eq.s32.totalorder %v1087_v5, 16 }
 0x5cc   : > { %v404_v54 = vmul.f32 %v400_v48, %v393_v53 }
 0x5ce   : > { %405 = vadd.xlane.f32.xlu2 %v404_v54 }
 0x5d2   : > { %v410_v56 = vpop.xlane.xlu0 %409 }
 0x5d3   : > { %v411_v58 = vsel %vm403_vm15, %v410_v56, %v397_v49 }
 0x5d4   : > { %v422_v59 = vmul.f32 %v414_v57, %v411_v58 }
 0x5d6   : > { %423 = vadd.xlane.f32.xlu2 %v422_v59 }
 0x5de   : > { %190 = vadd.xlane.f32.xlu2 %v189_v63 }
 0x641   : > { %v406_v0 = vpop.xlane.xlu2 %405 }
 0x642   : > { %v407_v2 = vsel %vm403_vm15, %v406_v0, %v393_v53  ;;  %vm477_vm15 = vcmp.eq.s32.totalorder %v1087_v5, 17 }
 0x643   : > { %v418_v3 = vmul.f32 %v414_v57, %v407_v2 }
 0x645   : > { %419 = vadd.xlane.f32.xlu1 %v418_v3 }
 0x649   : > { %v424_v7 = vpop.xlane.xlu2 %423 }
 0x64a   : > { %v425_v10 = vsel %vm417_vm3, %v424_v7, %v411_v58 }
 0x64b   : > { %v436_v11 = vmul.f32 %v428_v8, %v425_v10 }
 0x64d   : > { %437 = vadd.xlane.f32.xlu1 %v436_v11 }
 0x651   : > { %v1154_v12 = vpop.xlane.xlu2 %190 }
 0x652   : > { %1020 = vrcp.f32 %v1154_v12  ;;  %v206_v15 = vand.u32 2147483648, %v1154_v12  ;;  %vm200_vm6 = vweird.f32 %v1154_v12  ;;  %v204_v17 = vand.u32 2147483647, %v1154_v12 }
 0x654   : > { %v207_v19 = vor.u32 1.1754944e-38, %v206_v15  ;;  %vm205_vm10 = vcmp.eq.f32.partialorder %v204_v17, 8.507059e+37 }
 0x658   : > { %v1021_v13 = vpop.eup %1020 }
 0x659   : > { %v196_v14 = vmul.f32 %v1021_v13, %v1154_v12  ;;  %vm201_vm7 = vweird.f32 %v1021_v13 }
 0x65a   : > { %vm202_vm9 = vmor %vm200_vm6, %vm201_vm7  ;;  %vm549_vm7 = vcmp.eq.s32.totalorder %v1087_v5, 21 }
 0x65b   : > { %v197_v16 = vsub.f32 1.0, %v196_v14 }
 0x65d   : > { %v198_v18 = vmul.f32 %v1021_v13, %v197_v16 }
 0x65f   : > { %v199_v21 = vadd.f32 %v1021_v13, %v198_v18 }
 0x661   : > { %v203_v23 = vsel %vm202_vm9, %v1021_v13, %v199_v21  ;;  %vm567_vm9 = vcmp.eq.s32.totalorder %v1087_v5, 22 }
 0x662   : > { %v1166_v24 = vsel %vm205_vm10, %v207_v19, %v203_v23 }
 0x663   : > { %v209_v25 = vmul.f32 %v1166_v24, %v194_v22 }
 0x665   : > { %210 = vst [vmem:[#allocation2 + $0x10] sm:$0xff] %v209_v25 }
 0x66c   : > { %v455_v33 = vld [vmem:[#allocation2 + $0x10] ss:$0 sm:$0xff]  ;;  %v473_v44 = vld [vmem:[#allocation2 + $0x11] ss:$0 sm:$0xff]  ;;  %v491_v56 = vld [vmem:[#allocation2 + $0x12] ss:$0 sm:$0xff] }
 0x66d   : > { %v456_v35 = vxor.u32 2147483648, %v455_v33  ;;  %v474_v45 = vxor.u32 2147483648, %v473_v44  ;;  %v492_v58 = vxor.u32 2147483648, %v491_v56  ;;  %v509_v7 = vld [vmem:[#allocation2 + $0x13] ss:$0 sm:$0xff] }
 0x66e   : > { %v527_v21 = vld [vmem:[#allocation2 + $0x14] ss:$0 sm:$0xff]  ;;  %v545_v33 = vld [vmem:[#allocation2 + $0x15] ss:$0 sm:$0xff]  ;;  %v563_v44 = vld [vmem:[#allocation2 + $0x16] ss:$0 sm:$0xff] }
 0x66f   : > { %v468_v37 = vmul.f32 %v456_v35, %v264_v36  ;;  %v528_v23 = vxor.u32 2147483648, %v527_v21 }
 0x6b8   : > { %v420_v26 = vpop.xlane.xlu1 %419 }
 0x6b9   : > { %v421_v27 = vsel %vm417_vm3, %v420_v26, %v407_v2  ;;  %vm513_vm3 = vcmp.eq.s32.totalorder %v1087_v5, 19 }
 0x6ba   : > { %v432_v28 = vmul.f32 %v428_v8, %v421_v27 }
 0x6bc   : > { %433 = vadd.xlane.f32.xlu0 %v432_v28 }
 0x6c0   : > { %v438_v30 = vpop.xlane.xlu1 %437 }
 0x6c1   : > { %v439_v32 = vsel %vm431_vm11, %v438_v30, %v425_v10  ;;  %v510_v10 = vxor.u32 2147483648, %v509_v7 }
 0x6c2   : > { %v450_v34 = vmul.f32 %v442_v31, %v439_v32 }
 0x6c4   : > { %451 = vadd.xlane.f32.xlu1 %v450_v34 }
 0x6cc   : > { %469 = vadd.xlane.f32.xlu1 %v468_v37 }
 0x72f   : > { %v434_v38 = vpop.xlane.xlu0 %433 }
 0x730   : > { %v435_v39 = vsel %vm431_vm11, %v434_v38, %v421_v27 }
 0x731   : > { %v446_v40 = vmul.f32 %v442_v31, %v435_v39 }
 0x733   : > { %447 = vadd.xlane.f32.xlu0 %v446_v40 }
 0x737   : > { %v452_v41 = vpop.xlane.xlu1 %451 }
 0x738   : > { %v453_v42 = vsel %vm445_vm13, %v452_v41, %v439_v32 }
 0x739   : > { %v464_v43 = vmul.f32 %v456_v35, %v453_v42 }
 0x73b   : > { %465 = vadd.xlane.f32.xlu0 %v464_v43 }
 0x73f   : > { %v470_v46 = vpop.xlane.xlu1 %469 }
 0x740   : > { %v471_v47 = vsel %vm459_vm14, %v470_v46, %v264_v36  ;;  %v564_v46 = vxor.u32 2147483648, %v563_v44 }
 0x741   : > { %v486_v48 = vmul.f32 %v474_v45, %v471_v47 }
 0x743   : > { %487 = vadd.xlane.f32.xlu1 %v486_v48 }
 0x7a6   : > { %v448_v49 = vpop.xlane.xlu0 %447 }
 0x7a7   : > { %v449_v50 = vsel %vm445_vm13, %v448_v49, %v435_v39 }
 0x7a8   : > { %v460_v52 = vmul.f32 %v456_v35, %v449_v50  ;;  %v546_v35 = vxor.u32 2147483648, %v545_v33 }
 0x7aa   : > { %461 = vadd.xlane.f32.xlu2 %v460_v52 }
 0x7ae   : > { %v466_v53 = vpop.xlane.xlu0 %465 }
 0x7af   : > { %v467_v54 = vsel %vm459_vm14, %v466_v53, %v453_v42 }
 0x7b0   : > { %v482_v55 = vmul.f32 %v474_v45, %v467_v54 }
 0x7b2   : > { %483 = vadd.xlane.f32.xlu0 %v482_v55 }
 0x7b6   : > { %v488_v57 = vpop.xlane.xlu1 %487 }
 0x7b7   : > { %v489_v59 = vsel %vm477_vm15, %v488_v57, %v471_v47 }
 0x7b8   : > { %v504_v60 = vmul.f32 %v492_v58, %v489_v59 }
 0x7ba   : > { %505 = vadd.xlane.f32.xlu1 %v504_v60  ;;  %v581_v60 = vld [vmem:[#allocation2 + $0x17] ss:$0 sm:$0xff] }
 0x81d   : > { %v462_v61 = vpop.xlane.xlu2 %461 }
 0x81e   : > { %v463_v63 = vsel %vm459_vm14, %v462_v61, %v449_v50  ;;  %v979_v61 = vld [vmem:[%s1091_s20 + $0x18] sm:$0xff] }
 0x81f   : > { %v478_v0 = vmul.f32 %v474_v45, %v463_v63 }
 0x821   : > { %479 = vadd.xlane.f32.xlu2 %v478_v0  ;;  %v582_v0 = vxor.u32 2147483648, %v581_v60 }
 0x825   : > { %v484_v2 = vpop.xlane.xlu0 %483 }
 0x826   : > { %v485_v3 = vsel %vm477_vm15, %v484_v2, %v467_v54 }
 0x827   : > { %v500_v4 = vmul.f32 %v492_v58, %v485_v3 }
 0x829   : > { %501 = vadd.xlane.f32.xlu0 %v500_v4 }
 0x82d   : > { %v506_v8 = vpop.xlane.xlu1 %505 }
 0x82e   : > { %v507_v11 = vsel %vm495_vm2, %v506_v8, %v489_v59  ;;  %v215_v59 = vadd.s32 24, %v1089_v6 }
 0x82f   : > { %v522_v13 = vmul.f32 %v510_v10, %v507_v11 }
 0x830   : > { %vm216_vm8 = vcmp.eq.s32.totalorder %v215_v59, %v1087_v5  ;;  %vm221_vm10 = vcmp.ge.s32.totalorder %v215_v59, %v1087_v5 }
 0x831   : > { %523 = vadd.xlane.f32.xlu1 %v522_v13  ;;  %vm222_vm13 = vmand %vm221_vm10, %vm125_vm1  ;;  %vm270_vm1 = vcmp.eq.s32.totalorder %v1087_v5, %v215_v59  ;;  %vm713_vm10 = vcmp.eq.s32.totalorder %v1087_v5, 29 }
 0x894   : > { %v480_v14 = vpop.xlane.xlu2 %479 }
 0x895   : > { %v481_v15 = vsel %vm477_vm15, %v480_v14, %v463_v63 }
 0x896   : > { %v496_v16 = vmul.f32 %v492_v58, %v481_v15 }
 0x898   : > { %497 = vadd.xlane.f32.xlu2 %v496_v16 }
 0x89c   : > { %v502_v17 = vpop.xlane.xlu0 %501 }
 0x89d   : > { %v503_v18 = vsel %vm495_vm2, %v502_v17, %v485_v3  ;;  %v218_v3 = vsel %vm216_vm8, %v979_v61, 0.0  ;;  %vm669_vm8 = vcmp.eq.s32.totalorder %v1087_v5, 27 }
 0x89e   : > { %v518_v19 = vmul.f32 %v510_v10, %v503_v18 }
 0x8a0   : > { %519 = vadd.xlane.f32.xlu0 %v518_v19 }
 0x8a4   : > { %v524_v22 = vpop.xlane.xlu1 %523 }
 0x8a5   : > { %v525_v25 = vsel %vm513_vm3, %v524_v22, %v507_v11 }
 0x8a6   : > { %v540_v26 = vmul.f32 %v528_v23, %v525_v25 }
 0x8a8   : > { %541 = vadd.xlane.f32.xlu1 %v540_v26 }
 0x90b   : > { %v498_v27 = vpop.xlane.xlu2 %497 }
 0x90c   : > { %v499_v28 = vsel %vm495_vm2, %v498_v27, %v481_v15  ;;  %vm585_vm2 = vcmp.eq.s32.totalorder %v1087_v5, 23 }
 0x90d   : > { %v514_v29 = vmul.f32 %v510_v10, %v499_v28 }
 0x90f   : > { %515 = vadd.xlane.f32.xlu2 %v514_v29 }
 0x913   : > { %v520_v30 = vpop.xlane.xlu0 %519 }
 0x914   : > { %v521_v31 = vsel %vm513_vm3, %v520_v30, %v503_v18 }
 0x915   : > { %v536_v32 = vmul.f32 %v528_v23, %v521_v31 }
 0x917   : > { %537 = vadd.xlane.f32.xlu0 %v536_v32 }
 0x91b   : > { %v542_v34 = vpop.xlane.xlu1 %541 }
 0x91c   : > { %v543_v36 = vsel %vm531_vm4, %v542_v34, %v525_v25  ;;  %v223_v25 = vsel %vm222_vm13, %v979_v61, 0.0  ;;  %vm757_vm13 = vcmp.eq.s32.totalorder %v1087_v5, 31 }
 0x91d   : > { %v558_v37 = vmul.f32 %v546_v35, %v543_v36 }
 0x91f   : > { %559 = vadd.xlane.f32.xlu1 %v558_v37 }
 0x982   : > { %v516_v38 = vpop.xlane.xlu2 %515 }
 0x983   : > { %v517_v39 = vsel %vm513_vm3, %v516_v38, %v499_v28  ;;  %vm603_vm3 = vcmp.eq.s32.totalorder %v1087_v5, 24 }
 0x984   : > { %v532_v40 = vmul.f32 %v528_v23, %v517_v39 }
 0x986   : > { %533 = vadd.xlane.f32.xlu2 %v532_v40  ;;  %v271_v40 = vsel %vm270_vm1, -1.0, %v1049_v1 }
 0x98a   : > { %v538_v41 = vpop.xlane.xlu0 %537 }
 0x98b   : > { %v539_v42 = vsel %vm531_vm4, %v538_v41, %v521_v31 }
 0x98c   : > { %v554_v43 = vmul.f32 %v546_v35, %v539_v42 }
 0x98e   : > { %555 = vadd.xlane.f32.xlu0 %v554_v43 }
 0x992   : > { %v560_v45 = vpop.xlane.xlu1 %559 }
 0x993   : > { %v561_v47 = vsel %vm549_vm7, %v560_v45, %v543_v36 }
 0x994   : > { %v576_v48 = vmul.f32 %v564_v46, %v561_v47 }
 0x996   : > { %577 = vadd.xlane.f32.xlu1 %v576_v48 }
 0x9f9   : > { %v534_v49 = vpop.xlane.xlu2 %533 }
 0x9fa   : > { %v535_v50 = vsel %vm531_vm4, %v534_v49, %v517_v39  ;;  %vm625_vm4 = vcmp.eq.s32.totalorder %v1087_v5, 25 }
 0x9fb   : > { %v550_v52 = vmul.f32 %v546_v35, %v535_v50 }
 0x9fd   : > { %551 = vadd.xlane.f32.xlu2 %v550_v52 }
 0xa01   : > { %v556_v53 = vpop.xlane.xlu0 %555 }
 0xa02   : > { %v557_v54 = vsel %vm549_vm7, %v556_v53, %v539_v42 }
 0xa03   : > { %v572_v55 = vmul.f32 %v564_v46, %v557_v54 }
 0xa05   : > { %573 = vadd.xlane.f32.xlu0 %v572_v55 }
 0xa09   : > { %v578_v7 = vpop.xlane.xlu1 %577 }
 0xa0a   : > { %v579_v8 = vsel %vm567_vm9, %v578_v7, %v561_v47 }
 0xa0b   : > { %v594_v10 = vmul.f32 %v582_v0, %v579_v8 }
 0xa70   : > { %v552_v56 = vpop.xlane.xlu2 %551 }
 0xa71   : > { %v553_v57 = vsel %vm549_vm7, %v552_v56, %v535_v50  ;;  %vm647_vm7 = vcmp.eq.s32.totalorder %v1087_v5, 26 }
 0xa72   : > { %v568_v58 = vmul.f32 %v564_v46, %v553_v57 }
 0xa74   : > { %569 = vadd.xlane.f32.xlu2 %v568_v58 }
 0xa78   : > { %v574_v63 = vpop.xlane.xlu0 %573 }
 0xa79   : > { %v575_v2 = vsel %vm567_vm9, %v574_v63, %v557_v54 }
 0xa7a   : > { %v590_v4 = vmul.f32 %v582_v0, %v575_v2 }
 0xa7c   : > { %219 = vadd.xlane.f32.xlu2 %v218_v3  ;;  %591 = vadd.xlane.f32.xlu1 %v590_v4 }
 0xa84   : > { %595 = vadd.xlane.f32.xlu2 %v594_v10 }
 0xae7   : > { %v570_v11 = vpop.xlane.xlu2 %569 }
 0xae8   : > { %v571_v6 = vsel %vm567_vm9, %v570_v11, %v553_v57  ;;  %vm691_vm9 = vcmp.eq.s32.totalorder %v1087_v5, 28 }
 0xae9   : > { %v586_v13 = vmul.f32 %v582_v0, %v571_v6 }
 0xaeb   : > { %587 = vadd.xlane.f32.xlu0 %v586_v13 }
 0xaef   : > { %v1215_v14 = vpop.xlane.xlu2 %219  ;;  %v592_v29 = vpop.xlane.xlu1 %591 }
 0xaf0   : > { %1022 = vrcp.f32 %v1215_v14  ;;  %v235_v17 = vand.u32 2147483648, %v1215_v14  ;;  %vm229_vm11 = vweird.f32 %v1215_v14  ;;  %v233_v19 = vand.u32 2147483647, %v1215_v14 }
 0xaf1   : > { %v593_v33 = vsel %vm585_vm2, %v592_v29, %v575_v2 }
 0xaf2   : > { %v236_v22 = vor.u32 1.1754944e-38, %v235_v17  ;;  %vm234_vm15 = vcmp.eq.f32.partialorder %v233_v19, 8.507059e+37 }
 0xaf6   : > { %v1023_v15 = vpop.eup %1022 }
 0xaf7   : > { %v225_v16 = vmul.f32 %v1023_v15, %v1215_v14  ;;  %vm230_vm12 = vweird.f32 %v1023_v15  ;;  %v596_v30 = vpop.xlane.xlu2 %595 }
 0xaf8   : > { %vm231_vm14 = vmor %vm229_vm11, %vm230_vm12  ;;  %v597_v34 = vsel %vm585_vm2, %v596_v30, %v579_v8  ;;  %vm735_vm12 = vcmp.eq.s32.totalorder %v1087_v5, 30 }
 0xaf9   : > { %v226_v18 = vsub.f32 1.0, %v225_v16 }
 0xafb   : > { %v227_v21 = vmul.f32 %v1023_v15, %v226_v18 }
 0xafd   : > { %v228_v23 = vadd.f32 %v1023_v15, %v227_v21 }
 0xaff   : > { %v232_v26 = vsel %vm231_vm14, %v1023_v15, %v228_v23 }
 0xb00   : > { %v1227_v27 = vsel %vm234_vm15, %v236_v22, %v232_v26 }
 0xb01   : > { %v238_v28 = vmul.f32 %v1227_v27, %v223_v25 }
 0xb03   : > { %239 = vst [vmem:[#allocation2 + $0x18] sm:$0xff] %v238_v28 }
 0xb0a   : > { %v599_v31 = vld [vmem:[#allocation2 + $0x18] ss:$0 sm:$0xff]  ;;  %v621_v42 = vld [vmem:[#allocation2 + $0x19] ss:$0 sm:$0xff]  ;;  %v643_v56 = vld [vmem:[#allocation2 + $0x1a] ss:$0 sm:$0xff] }
 0xb0b   : > { %v600_v32 = vxor.u32 2147483648, %v599_v31  ;;  %v622_v45 = vxor.u32 2147483648, %v621_v42  ;;  %v644_v59 = vxor.u32 2147483648, %v643_v56  ;;  %v665_v11 = vld [vmem:[#allocation2 + $0x1b] ss:$0 sm:$0xff] }
 0xb0c   : > { %v666_v15 = vxor.u32 2147483648, %v665_v11  ;;  %v687_v29 = vld [vmem:[#allocation2 + $0x1c] ss:$0 sm:$0xff] }
 0xb0d   : > { %v612_v35 = vmul.f32 %v600_v32, %v597_v34  ;;  %v608_v36 = vmul.f32 %v600_v32, %v593_v33  ;;  %v616_v41 = vmul.f32 %v600_v32, %v271_v40 }
 0xb0f   : > { %613 = vadd.xlane.f32.xlu2 %v612_v35  ;;  %609 = vadd.xlane.f32.xlu1 %v608_v36 }
 0xb5e   : > { %v588_v37 = vpop.xlane.xlu0 %587 }
 0xb5f   : > { %v589_v38 = vsel %vm585_vm2, %v588_v37, %v571_v6 }
 0xb60   : > { %v604_v39 = vmul.f32 %v600_v32, %v589_v38  ;;  %v688_v32 = vxor.u32 2147483648, %v687_v29 }
 0xb62   : > { %605 = vadd.xlane.f32.xlu0 %v604_v39 }
 0xb6a   : > { %617 = vadd.xlane.f32.xlu0 %v616_v41 }
 0xb82   : > { %v614_v43 = vpop.xlane.xlu2 %613  ;;  %v610_v44 = vpop.xlane.xlu1 %609 }
 0xb83   : > { %v615_v46 = vsel %vm603_vm3, %v614_v43, %v597_v34  ;;  %v611_v47 = vsel %vm603_vm3, %v610_v44, %v593_v33  ;;  %v709_v43 = vld [vmem:[#allocation2 + $0x1d] ss:$0 sm:$0xff] }
 0xb84   : > { %v630_v48 = vmul.f32 %v622_v45, %v611_v47  ;;  %v634_v49 = vmul.f32 %v622_v45, %v615_v46 }
 0xb86   : > { %631 = vadd.xlane.f32.xlu2 %v630_v48  ;;  %635 = vadd.xlane.f32.xlu0 %v634_v49 }
 0xbd5   : > { %v606_v50 = vpop.xlane.xlu0 %605 }
 0xbd6   : > { %v607_v52 = vsel %vm603_vm3, %v606_v50, %v589_v38 }
 0xbd7   : > { %v626_v53 = vmul.f32 %v622_v45, %v607_v52 }
 0xbd9   : > { %627 = vadd.xlane.f32.xlu1 %v626_v53 }
 0xbdd   : > { %v618_v54 = vpop.xlane.xlu0 %617 }
 0xbde   : > { %v619_v1 = vsel %vm603_vm3, %v618_v54, %v271_v40 }
 0xbdf   : > { %v638_v55 = vmul.f32 %v622_v45, %v619_v1 }
 0xbe1   : > { %639 = vadd.xlane.f32.xlu1 %v638_v55 }
 0xbf9   : > { %v632_v57 = vpop.xlane.xlu2 %631  ;;  %v636_v58 = vpop.xlane.xlu0 %635 }
 0xbfa   : > { %v633_v60 = vsel %vm625_vm4, %v632_v57, %v611_v47  ;;  %v637_v61 = vsel %vm625_vm4, %v636_v58, %v615_v46  ;;  %v710_v46 = vxor.u32 2147483648, %v709_v43  ;;  %v731_v57 = vld [vmem:[#allocation2 + $0x1e] ss:$0 sm:$0xff] }
 0xbfb   : > { %v652_v63 = vmul.f32 %v644_v59, %v633_v60  ;;  %v656_v0 = vmul.f32 %v644_v59, %v637_v61 }
 0xbfd   : > { %653 = vadd.xlane.f32.xlu0 %v652_v63  ;;  %657 = vadd.xlane.f32.xlu1 %v656_v0 }
 0xc4c   : > { %v628_v2 = vpop.xlane.xlu1 %627 }
 0xc4d   : > { %v629_v3 = vsel %vm625_vm4, %v628_v2, %v607_v52 }
 0xc4e   : > { %v648_v4 = vmul.f32 %v644_v59, %v629_v3 }
 0xc50   : > { %649 = vadd.xlane.f32.xlu2 %v648_v4 }
 0xc54   : > { %v640_v7 = vpop.xlane.xlu1 %639 }
 0xc55   : > { %v641_v8 = vsel %vm625_vm4, %v640_v7, %v619_v1 }
 0xc56   : > { %v660_v10 = vmul.f32 %v644_v59, %v641_v8 }
 0xc58   : > { %661 = vadd.xlane.f32.xlu2 %v660_v10 }
 0xc70   : > { %v658_v6 = vpop.xlane.xlu1 %657  ;;  %v654_v13 = vpop.xlane.xlu0 %653 }
 0xc71   : > { %v659_v16 = vsel %vm647_vm7, %v658_v6, %v637_v61  ;;  %v655_v17 = vsel %vm647_vm7, %v654_v13, %v633_v60  ;;  %v732_v60 = vxor.u32 2147483648, %v731_v57  ;;  %v753_v6 = vld [vmem:[#allocation2 + $0x1f] ss:$0 sm:$0xff] }
 0xc72   : > { %v678_v18 = vmul.f32 %v666_v15, %v659_v16  ;;  %v674_v19 = vmul.f32 %v666_v15, %v655_v17 }
 0xc74   : > { %679 = vadd.xlane.f32.xlu2 %v678_v18  ;;  %675 = vadd.xlane.f32.xlu1 %v674_v19 }
 0xcc3   : > { %v650_v21 = vpop.xlane.xlu2 %649 }
 0xcc4   : > { %v651_v22 = vsel %vm647_vm7, %v650_v21, %v629_v3 }
 0xcc5   : > { %v670_v23 = vmul.f32 %v666_v15, %v651_v22 }
 0xcc7   : > { %671 = vadd.xlane.f32.xlu0 %v670_v23 }
 0xccb   : > { %v662_v25 = vpop.xlane.xlu2 %661 }
 0xccc   : > { %v663_v26 = vsel %vm647_vm7, %v662_v25, %v641_v8 }
 0xccd   : > { %v682_v28 = vmul.f32 %v666_v15, %v663_v26 }
 0xccf   : > { %683 = vadd.xlane.f32.xlu0 %v682_v28 }
 0xce7   : > { %v680_v30 = vpop.xlane.xlu2 %679  ;;  %v676_v31 = vpop.xlane.xlu1 %675 }
 0xce8   : > { %v681_v33 = vsel %vm669_vm8, %v680_v30, %v659_v16  ;;  %v677_v34 = vsel %vm669_vm8, %v676_v31, %v655_v17  ;;  %v754_v16 = vxor.u32 2147483648, %v753_v6 }
 0xce9   : > { %v700_v35 = vmul.f32 %v688_v32, %v681_v33  ;;  %v696_v36 = vmul.f32 %v688_v32, %v677_v34 }
 0xceb   : > { %701 = vadd.xlane.f32.xlu0 %v700_v35  ;;  %697 = vadd.xlane.f32.xlu2 %v696_v36 }
 0xd3a   : > { %v672_v37 = vpop.xlane.xlu0 %671 }
 0xd3b   : > { %v673_v38 = vsel %vm669_vm8, %v672_v37, %v651_v22 }
 0xd3c   : > { %v692_v39 = vmul.f32 %v688_v32, %v673_v38 }
 0xd3e   : > { %693 = vadd.xlane.f32.xlu1 %v692_v39 }
 0xd42   : > { %v684_v40 = vpop.xlane.xlu0 %683 }
 0xd43   : > { %v685_v41 = vsel %vm669_vm8, %v684_v40, %v663_v26 }
 0xd44   : > { %v704_v42 = vmul.f32 %v688_v32, %v685_v41 }
 0xd46   : > { %705 = vadd.xlane.f32.xlu1 %v704_v42 }
 0xd5e   : > { %v698_v44 = vpop.xlane.xlu2 %697  ;;  %v702_v45 = vpop.xlane.xlu0 %701 }
 0xd5f   : > { %v699_v47 = vsel %vm691_vm9, %v698_v44, %v677_v34  ;;  %v703_v48 = vsel %vm691_vm9, %v702_v45, %v681_v33 }
 0xd60   : > { %v718_v49 = vmul.f32 %v710_v46, %v699_v47  ;;  %v722_v50 = vmul.f32 %v710_v46, %v703_v48 }
 0xd62   : > { %719 = vadd.xlane.f32.xlu0 %v718_v49  ;;  %723 = vadd.xlane.f32.xlu1 %v722_v50 }
 0xdb1   : > { %v694_v52 = vpop.xlane.xlu1 %693 }
 0xdb2   : > { %v695_v53 = vsel %vm691_vm9, %v694_v52, %v673_v38 }
 0xdb3   : > { %v714_v54 = vmul.f32 %v710_v46, %v695_v53 }
 0xdb5   : > { %715 = vadd.xlane.f32.xlu2 %v714_v54 }
 0xdb9   : > { %v706_v1 = vpop.xlane.xlu1 %705 }
 0xdba   : > { %v707_v55 = vsel %vm691_vm9, %v706_v1, %v685_v41 }
 0xdbb   : > { %v726_v56 = vmul.f32 %v710_v46, %v707_v55 }
 0xdbd   : > { %727 = vadd.xlane.f32.xlu2 %v726_v56 }
 0xdd5   : > { %v724_v58 = vpop.xlane.xlu1 %723  ;;  %v720_v59 = vpop.xlane.xlu0 %719 }
 0xdd6   : > { %v725_v61 = vsel %vm713_vm10, %v724_v58, %v703_v48  ;;  %v721_v63 = vsel %vm713_vm10, %v720_v59, %v699_v47 }
 0xdd7   : > { %v744_v0 = vmul.f32 %v732_v60, %v725_v61  ;;  %v740_v2 = vmul.f32 %v732_v60, %v721_v63 }
 0xdd9   : > { %745 = vadd.xlane.f32.xlu2 %v744_v0  ;;  %741 = vadd.xlane.f32.xlu1 %v740_v2 }
 0xe28   : > { %v716_v3 = vpop.xlane.xlu2 %715 }
 0xe29   : > { %v717_v4 = vsel %vm713_vm10, %v716_v3, %v695_v53 }
 0xe2a   : > { %v736_v7 = vmul.f32 %v732_v60, %v717_v4 }
 0xe2c   : > { %737 = vadd.xlane.f32.xlu0 %v736_v7 }
 0xe30   : > { %v728_v8 = vpop.xlane.xlu2 %727 }
 0xe31   : > { %v729_v10 = vsel %vm713_vm10, %v728_v8, %v707_v55 }
 0xe32   : > { %v748_v11 = vmul.f32 %v732_v60, %v729_v10 }
 0xe34   : > { %749 = vadd.xlane.f32.xlu0 %v748_v11 }
 0xe4c   : > { %v746_v13 = vpop.xlane.xlu2 %745  ;;  %v742_v15 = vpop.xlane.xlu1 %741 }
 0xe4d   : > { %v747_v17 = vsel %vm735_vm12, %v746_v13, %v725_v61  ;;  %v743_v18 = vsel %vm735_vm12, %v742_v15, %v721_v63 }
 0xe4e   : > { %v766_v19 = vmul.f32 %v754_v16, %v747_v17  ;;  %v762_v21 = vmul.f32 %v754_v16, %v743_v18 }
 0xe50   : > { %767 = vadd.xlane.f32.xlu0 %v766_v19  ;;  %763 = vadd.xlane.f32.xlu2 %v762_v21 }
 0xe9f   : > { %v738_v22 = vpop.xlane.xlu0 %737 }
 0xea0   : > { %v739_v23 = vsel %vm735_vm12, %v738_v22, %v717_v4 }
 0xea1   : > { %v758_v25 = vmul.f32 %v754_v16, %v739_v23 }
 0xea3   : > { %759 = vadd.xlane.f32.xlu1 %v758_v25 }
 0xea7   : > { %v750_v26 = vpop.xlane.xlu0 %749 }
 0xea8   : > { %v751_v28 = vsel %vm735_vm12, %v750_v26, %v729_v10 }
 0xea9   : > { %v770_v29 = vmul.f32 %v754_v16, %v751_v28 }
 0xeab   : > { %771 = vadd.xlane.f32.xlu1 %v770_v29 }
 0xec3   : > { %v764_v30 = vpop.xlane.xlu2 %763  ;;  %v768_v31 = vpop.xlane.xlu0 %767 }
 0xec4   : > { %v765_v32 = vsel %vm757_vm13, %v764_v30, %v743_v18  ;;  %v769_v33 = vsel %vm757_vm13, %v768_v31, %v747_v17 }
 0xec5   : > { %v806_v34 = vmul.f32 %v765_v32, %v1135_v62  ;;  %v825_v35 = vmul.f32 %v769_v33, %v1166_v24 }
 0xec7   : > { %v808_v36 = vsel %vm171_vm0, %v765_v32, %v806_v34  ;;  %v827_v37 = vsel %vm200_vm6, %v769_v33, %v825_v35 }
 0xec8   : > { %897 = vst [vmem:[%s859_s24 + $0x8] sm:$0xff] %v808_v36 }
 0xec9   : > { %899 = vst [vmem:[%s859_s24 + $0x10] sm:$0xff] %v827_v37 }
 0xf16   : > { %v760_v38 = vpop.xlane.xlu1 %759 }
 0xf17   : > { %v761_v39 = vsel %vm757_vm13, %v760_v38, %v739_v23 }
 0xf18   : > { %v788_v62 = vmul.f32 %v761_v39, %v1110_v20 }
 0xf1a   : > { %v790_v24 = vsel %vm142_vm5, %v761_v39, %v788_v62 }
 0xf1b   : > { %895 = vst [vmem:[%s859_s24] sm:$0xff] %v790_v24 }
 0xf1e   : > { %v772_v40 = vpop.xlane.xlu1 %771 }
 0xf1f   : > { %v773_v51 = vsel %vm757_vm13, %v772_v40, %v751_v28 }
 0xf20   : > { %v844_v41 = vmul.f32 %v773_v51, %v1227_v27 }
 0xf22   : > { %v846_v12 = vsel %vm229_vm11, %v773_v51, %v844_v41 }
 0xf23   : > { %901 = vst [vmem:[%s859_s24 + $0x18] sm:$0xff] %v846_v12 }
 0xf24 PF: > { %s7_s8 = sadd.s32 1, %s1046_s8   ;;  %s1276_s6 = smov %s1042_s7 }
 0xf25   : > { %p4_p5 = scmp.ge.s32.totalorder %s7_s8, 6   ;;  %s1277_s7 = smov %s1279_s10 }
 0xf27   :  { %6 = sbr.rel (!%p4_p5) target bundleno = 2 (0x2), region = 158 }

// kernel: custom-call.12
= control target key start
LH: loop header
LB: loop body
LE: loop exit
PB: predicated region body
PF: predicated region fallthrough
CT: control target
= control target key end

     0   :  { %s1059_s6 = smov 0   ;;  %s1061_s7 = smov 0   ;;  %s1375_s0 = inlined_call_operand.vmem [shape: f32[4,1,32,32], index: 0, kind: input, shape index: {}]   ;;  %s1376_s1 = inlined_call_operand.vmem [shape: f32[4,1,32,32], index: 1, kind: output, shape index: {}]  }
   0x1   :  { %s1063_s8 = smov 0  }
   0x2 LB: > { %s967_s9 = sadd.s32 4294967295, %s1045_s8   ;;  %s33_s10 = sadd.s32 1, %s1041_s7  ;;  %s1045_s8 = sphi %s1063_s8, %s7_s8   ;;  %s1041_s7 = sphi %s1061_s7, %s1378_s7   ;;  %s1037_s6 = sphi %s1059_s6, %s1377_s6  }
   0x3   : > { %p35_p0 = scmp.ge.s32.totalorder %s33_s10, 4  ;;  %p969_p1 = scmp.ge.s32.totalorder %s1045_s8, 4 }
   0x4   : > { %s49_s11 = sand.u32 (!%p969_p1), 1, %s1045_s8   ;;  %s987_s12 = sshll.u32 (!%p969_p1), %s1041_s7, 5 }
   0x5   : > { %s1380_s10 = smov (%p35_p0, %s33_s10), 0  ;;  %47 = sbr.rel (%p969_p1) target bundleno = 15 (0xf), region = 16 }
   0x6   : > { %s970_s13 = sshll.u32 (!%p969_p1), %s49_s11, 5  ;;  %s58_s16 = scalar_lea.vmem (!%p969_p1), %s1375_s0, %s987_s12 }
   0x7   : > { %s51_s17 = scalar_lea.vmem (!%p969_p1), [#allocation0], %s970_s13 }
   0xa   : > { %v93_v0 = vld [vmem:[%s58_s16] sm:$0xff]  ;;  %v95_v1 = vld [vmem:[%s58_s16 + $0x8] sm:$0xff]  ;;  %v97_v2 = vld [vmem:[%s58_s16 + $0x10] sm:$0xff] }
   0xb   : > { %94 = vst [vmem:[%s51_s17] sm:$0xff] %v93_v0  ;;  %v99_v3 = vld [vmem:[%s58_s16 + $0x18] sm:$0xff] }
   0xc   : > { %96 = vst [vmem:[%s51_s17 + $0x8] sm:$0xff] %v95_v1 }
   0xd   : > { %98 = vst [vmem:[%s51_s17 + $0x10] sm:$0xff] %v97_v2 }
   0xe   : > { %100 = vst [vmem:[%s51_s17 + $0x18] sm:$0xff] %v99_v3 }
   0xf PF: > { %p973_p2 = scmp.ge.s32.totalorder %s1045_s8, 1  ;;  %p105_p3 = scmp.lt.s32.totalorder %s1045_s8, 5 }
  0x11   : > { %p106_p4 = pnand %p973_p2, %p105_p3 }
  0x13   : > { %109 = sbr.rel (%p106_p4) target bundleno = 3870 (0xf1e), region = 54 }
  0x18   : > { %s112_s18 = sand.u32 1, %s967_s9   ;;  %v123_v4 = vlaneseq  ;;  %v1047_v23 = vmov -1.0   ;;  %s988_s21 = sshll.u32 %s1037_s6, 5 }
  0x19   : > { %s974_s19 = sshll.u32 %s112_s18, 5  ;;  %s858_s24 = scalar_lea.vmem %s1376_s1, %s988_s21 }
  0x1a   : > { %v1086_v5 = vand.u32 127, %v123_v4  ;;  %v1088_v6 = vshrl.u32 %v123_v4, 7  ;;  %s1091_s20 = scalar_lea.vmem [#allocation0], %s974_s19 }
  0x1b   : > { %v978_v8 = vld [vmem:[%s1091_s20 + $0x18] sm:$0xff]  ;;  %v977_v40 = vld [vmem:[%s1091_s20 + $0x10] sm:$0xff] }
  0x1c   : > { %v215_v7 = vadd.s32 24, %v1088_v6  ;;  %vm125_vm1 = vcmp.lt.s32.totalorder %v1086_v5, 32  ;;  %vm269_vm8 = vcmp.eq.s32.totalorder %v1086_v5, 31  ;;  %vm277_vm10 = vcmp.eq.s32.totalorder %v1086_v5, 30 }
  0x1d   : > { %v270_v24 = vsel %vm269_vm8, 1.0, %v1047_v23  ;;  %vm287_vm11 = vcmp.eq.s32.totalorder %v1086_v5, 29  ;;  %v186_v39 = vadd.s32 16, %v1088_v6  ;;  %vm297_vm13 = vcmp.eq.s32.totalorder %v1086_v5, 28 }
  0x1e   : > { %vm216_vm0 = vcmp.eq.s32.totalorder %v215_v7, %v1086_v5  ;;  %vm221_vm2 = vcmp.le.s32.totalorder %v215_v7, %v1086_v5  ;;  %vm266_vm9 = vcmp.eq.s32.totalorder %v1086_v5, %v215_v7 }
  0x1f   : > { %v218_v9 = vsel %vm216_vm0, %v978_v8, 0.0  ;;  %vm222_vm3 = vmand %vm221_vm2, %vm125_vm1  ;;  %v271_v25 = vsel %vm266_vm9, %v270_v24, 0.0  ;;  %vm187_vm12 = vcmp.eq.s32.totalorder %v186_v39, %v1086_v5  ;;  %vm192_vm14 = vcmp.le.s32.totalorder %v186_v39, %v1086_v5 }
  0x20   : > { %219 = vadd.xlane.f32.xlu0 %v218_v9  ;;  %v223_v18 = vsel %vm222_vm3, %v978_v8, 0.0  ;;  %v189_v41 = vsel %vm187_vm12, %v977_v40, 0.0  ;;  %vm193_vm2 = vmand %vm192_vm14, %vm125_vm1  ;;  %vm259_vm8 = vcmp.eq.s32.totalorder %v1086_v5, %v186_v39  ;;  %vm327_vm9 = vcmp.eq.s32.totalorder %v1086_v5, 25 }
  0x21   : > { %v194_v56 = vsel %vm193_vm2, %v977_v40, 0.0  ;;  %vm361_vm12 = vcmp.eq.s32.totalorder %v1086_v5, 22  ;;  %vm389_vm14 = vcmp.eq.s32.totalorder %v1086_v5, 20  ;;  %vm417_vm2 = vcmp.eq.s32.totalorder %v1086_v5, 18 }
  0x93   : > { %v1095_v10 = vpop.xlane.xlu0 %219 }
  0x94   : > { %1015 = vrcp.f32 %v1095_v10  ;;  %v235_v14 = vand.u32 2147483648, %v1095_v10  ;;  %v233_v16 = vand.u32 2147483647, %v1095_v10  ;;  %vm229_vm5 = vweird.f32 %v1095_v10 }
  0x96   : > { %v236_v19 = vor.u32 1.1754944e-38, %v235_v14  ;;  %vm234_vm7 = vcmp.eq.f32.partialorder %v233_v16, 8.507059e+37 }
  0x9a   : > { %v1016_v11 = vpop.eup %1015 }
  0x9b   : > { %v225_v12 = vmul.f32 %v1016_v11, %v1095_v10  ;;  %vm230_vm4 = vweird.f32 %v1016_v11 }
  0x9c   : > { %vm231_vm6 = vmor %vm229_vm5, %vm230_vm4 }
  0x9d   : > { %v226_v13 = vsub.f32 1.0, %v225_v12 }
  0x9f   : > { %v227_v15 = vmul.f32 %v1016_v11, %v226_v13 }
  0xa1   : > { %v228_v17 = vadd.f32 %v1016_v11, %v227_v15 }
  0xa3   : > { %v232_v20 = vsel %vm231_vm6, %v1016_v11, %v228_v17  ;;  %vm307_vm6 = vcmp.eq.s32.totalorder %v1086_v5, 27  ;;  %v1048_v11 = vmov 0.0  }
  0xa4   : > { %v1108_v21 = vsel %vm234_vm7, %v236_v19, %v232_v20  ;;  %vm317_vm7 = vcmp.eq.s32.totalorder %v1086_v5, 26  ;;  %v260_v12 = vsel %vm259_vm8, -1.0, %v1048_v11 }
  0xa5   : > { %v238_v22 = vmul.f32 %v1108_v21, %v223_v18 }
  0xa7   : > { %239 = vst [vmem:[#allocation2 + $0x18] sm:$0xff] %v238_v22 }
  0xae   : > { %v273_v26 = vld [vmem:[#allocation2 + $0x1e] ss:$0 sm:$0xff]  ;;  %v283_v29 = vld [vmem:[#allocation2 + $0x1d] ss:$0 sm:$0xff]  ;;  %v293_v34 = vld [vmem:[#allocation2 + $0x1c] ss:$0 sm:$0xff] }
  0xaf   : > { %v274_v27 = vxor.u32 2147483648, %v273_v26  ;;  %v284_v31 = vxor.u32 2147483648, %v283_v29  ;;  %v294_v36 = vxor.u32 2147483648, %v293_v34  ;;  %v303_v42 = vld [vmem:[#allocation2 + $0x1b] ss:$0 sm:$0xff] }
  0xb0   : > { %v304_v44 = vxor.u32 2147483648, %v303_v42  ;;  %v313_v60 = vld [vmem:[#allocation2 + $0x1a] ss:$0 sm:$0xff]  ;;  %v323_v1 = vld [vmem:[#allocation2 + $0x19] ss:$0 sm:$0xff] }
  0xb1   : > { %v278_v28 = vmul.f32 %v274_v27, %v271_v25  ;;  %v314_v62 = vxor.u32 2147483648, %v313_v60  ;;  %v324_v3 = vxor.u32 2147483648, %v323_v1  ;;  %v333_v14 = vld [vmem:[#allocation2 + $0x18] ss:$0 sm:$0xff] }
  0xb2   : > { %v334_v16 = vxor.u32 2147483648, %v333_v14 }
  0xb3   : > { %279 = vadd.xlane.f32.xlu0 %v278_v28 }
 0x126   : > { %v280_v30 = vpop.xlane.xlu0 %279 }
 0x127   : > { %v281_v32 = vsel %vm277_vm10, %v280_v30, %v271_v25  ;;  %vm347_vm10 = vcmp.eq.s32.totalorder %v1086_v5, 23 }
 0x128   : > { %v288_v33 = vmul.f32 %v284_v31, %v281_v32 }
 0x12a   : > { %289 = vadd.xlane.f32.xlu1 %v288_v33 }
 0x19d   : > { %v290_v35 = vpop.xlane.xlu1 %289 }
 0x19e   : > { %v291_v37 = vsel %vm287_vm11, %v290_v35, %v281_v32  ;;  %vm337_vm11 = vcmp.eq.s32.totalorder %v1086_v5, 24 }
 0x19f   : > { %v298_v38 = vmul.f32 %v294_v36, %v291_v37 }
 0x1a1   : > { %299 = vadd.xlane.f32.xlu1 %v298_v38 }
 0x1a9   : > { %190 = vadd.xlane.f32.xlu1 %v189_v41 }
 0x214   : > { %v300_v43 = vpop.xlane.xlu1 %299 }
 0x215   : > { %v301_v45 = vsel %vm297_vm13, %v300_v43, %v291_v37  ;;  %vm375_vm13 = vcmp.eq.s32.totalorder %v1086_v5, 21 }
 0x216   : > { %v308_v46 = vmul.f32 %v304_v44, %v301_v45 }
 0x218   : > { %309 = vadd.xlane.f32.xlu2 %v308_v46 }
 0x21c   : > { %v1119_v47 = vpop.xlane.xlu1 %190 }
 0x21d   : > { %1017 = vrcp.f32 %v1119_v47  ;;  %v206_v50 = vand.u32 2147483648, %v1119_v47  ;;  %vm200_vm15 = vweird.f32 %v1119_v47  ;;  %v204_v52 = vand.u32 2147483647, %v1119_v47 }
 0x21f   : > { %v207_v54 = vor.u32 1.1754944e-38, %v206_v50  ;;  %vm205_vm4 = vcmp.eq.f32.partialorder %v204_v52, 8.507059e+37 }
 0x223   : > { %v1018_v48 = vpop.eup %1017 }
 0x224   : > { %v196_v49 = vmul.f32 %v1018_v48, %v1119_v47  ;;  %vm201_vm0 = vweird.f32 %v1018_v48 }
 0x225   : > { %vm202_vm3 = vmor %vm200_vm15, %vm201_vm0  ;;  %vm403_vm0 = vcmp.eq.s32.totalorder %v1086_v5, 19 }
 0x226   : > { %v197_v51 = vsub.f32 1.0, %v196_v49 }
 0x228   : > { %v198_v53 = vmul.f32 %v1018_v48, %v197_v51 }
 0x22a   : > { %v199_v55 = vadd.f32 %v1018_v48, %v198_v53 }
 0x22c   : > { %v203_v57 = vsel %vm202_vm3, %v1018_v48, %v199_v55  ;;  %vm431_vm3 = vcmp.eq.s32.totalorder %v1086_v5, 17 }
 0x22d   : > { %v1131_v58 = vsel %vm205_vm4, %v207_v54, %v203_v57 }
 0x22e   : > { %v209_v59 = vmul.f32 %v1131_v58, %v194_v56 }
 0x230   : > { %210 = vst [vmem:[#allocation2 + $0x10] sm:$0xff] %v209_v59 }
 0x237   : > { %v343_v7 = vld [vmem:[#allocation2 + $0x17] ss:$0 sm:$0xff]  ;;  %v357_v19 = vld [vmem:[#allocation2 + $0x16] ss:$0 sm:$0xff]  ;;  %v371_v28 = vld [vmem:[#allocation2 + $0x15] ss:$0 sm:$0xff] }
 0x238   : > { %v344_v9 = vxor.u32 2147483648, %v343_v7  ;;  %v358_v20 = vxor.u32 2147483648, %v357_v19  ;;  %v372_v30 = vxor.u32 2147483648, %v371_v28  ;;  %v385_v36 = vld [vmem:[#allocation2 + $0x14] ss:$0 sm:$0xff] }
 0x239   : > { %v386_v38 = vxor.u32 2147483648, %v385_v36  ;;  %v399_v44 = vld [vmem:[#allocation2 + $0x13] ss:$0 sm:$0xff]  ;;  %v413_v53 = vld [vmem:[#allocation2 + $0x12] ss:$0 sm:$0xff] }
 0x23a   : > { %v348_v13 = vmul.f32 %v344_v9, %v260_v12  ;;  %v400_v46 = vxor.u32 2147483648, %v399_v44  ;;  %v414_v55 = vxor.u32 2147483648, %v413_v53 }
 0x28b   : > { %v310_v61 = vpop.xlane.xlu2 %309 }
 0x28c   : > { %v311_v63 = vsel %vm307_vm6, %v310_v61, %v301_v45 }
 0x28d   : > { %v318_v0 = vmul.f32 %v314_v62, %v311_v63  ;;  %v427_v62 = vld [vmem:[#allocation2 + $0x11] ss:$0 sm:$0xff] }
 0x28f   : > { %319 = vadd.xlane.f32.xlu2 %v318_v0  ;;  %v428_v0 = vxor.u32 2147483648, %v427_v62 }
 0x302   : > { %v320_v2 = vpop.xlane.xlu2 %319 }
 0x303   : > { %v321_v4 = vsel %vm317_vm7, %v320_v2, %v311_v63 }
 0x304   : > { %v328_v8 = vmul.f32 %v324_v3, %v321_v4 }
 0x306   : > { %329 = vadd.xlane.f32.xlu0 %v328_v8  ;;  %v157_v8 = vadd.s32 8, %v1088_v6 }
 0x308   : > { %vm158_vm4 = vcmp.eq.s32.totalorder %v157_v8, %v1086_v5  ;;  %vm163_vm6 = vcmp.le.s32.totalorder %v157_v8, %v1086_v5 }
 0x30e   : > { %349 = vadd.xlane.f32.xlu0 %v348_v13 }
 0x379   : > { %v330_v15 = vpop.xlane.xlu0 %329 }
 0x37a   : > { %v331_v17 = vsel %vm327_vm9, %v330_v15, %v321_v4  ;;  %vm164_vm9 = vmand %vm163_vm6, %vm125_vm1  ;;  %vm549_vm6 = vcmp.eq.s32.totalorder %v1086_v5, 10 }
 0x37b   : > { %v338_v18 = vmul.f32 %v334_v16, %v331_v17 }
 0x37d   : > { %339 = vadd.xlane.f32.xlu2 %v338_v18 }
 0x381   : > { %v350_v22 = vpop.xlane.xlu0 %349 }
 0x382   : > { %v351_v23 = vsel %vm347_vm10, %v350_v22, %v260_v12  ;;  %v976_v12 = vld [vmem:[%s1091_s20 + $0x8] sm:$0xff] }
 0x383   : > { %v362_v24 = vmul.f32 %v358_v20, %v351_v23  ;;  %v160_v16 = vsel %vm158_vm4, %v976_v12, 0.0  ;;  %vm531_vm4 = vcmp.eq.s32.totalorder %v1086_v5, 11 }
 0x385   : > { %363 = vadd.xlane.f32.xlu2 %v362_v24 }
 0x3f0   : > { %v340_v25 = vpop.xlane.xlu2 %339 }
 0x3f1   : > { %v341_v26 = vsel %vm337_vm11, %v340_v25, %v331_v17 }
 0x3f2   : > { %v352_v27 = vmul.f32 %v344_v9, %v341_v26  ;;  %v441_v9 = vld [vmem:[#allocation2 + $0x10] ss:$0 sm:$0xff] }
 0x3f3   : > { %v442_v14 = vxor.u32 2147483648, %v441_v9 }
 0x3f4   : > { %353 = vadd.xlane.f32.xlu1 %v352_v27 }
 0x3f8   : > { %v364_v29 = vpop.xlane.xlu2 %363 }
 0x3f9   : > { %v365_v31 = vsel %vm361_vm12, %v364_v29, %v351_v23 }
 0x3fa   : > { %v376_v32 = vmul.f32 %v372_v30, %v365_v31 }
 0x3fc   : > { %377 = vadd.xlane.f32.xlu1 %v376_v32 }
 0x467   : > { %v354_v33 = vpop.xlane.xlu1 %353 }
 0x468   : > { %v355_v34 = vsel %vm347_vm10, %v354_v33, %v341_v26 }
 0x469   : > { %v366_v35 = vmul.f32 %v358_v20, %v355_v34 }
 0x46b   : > { %367 = vadd.xlane.f32.xlu0 %v366_v35 }
 0x46f   : > { %v378_v37 = vpop.xlane.xlu1 %377 }
 0x470   : > { %v379_v39 = vsel %vm375_vm13, %v378_v37, %v365_v31  ;;  %v165_v31 = vsel %vm164_vm9, %v976_v12, 0.0  ;;  %vm567_vm9 = vcmp.eq.s32.totalorder %v1086_v5, 9 }
 0x471   : > { %v390_v40 = vmul.f32 %v386_v38, %v379_v39 }
 0x473   : > { %391 = vadd.xlane.f32.xlu0 %v390_v40 }
 0x4de   : > { %v368_v41 = vpop.xlane.xlu0 %367 }
 0x4df   : > { %v369_v42 = vsel %vm361_vm12, %v368_v41, %v355_v34  ;;  %vm252_vm12 = vcmp.eq.s32.totalorder %v1086_v5, %v157_v8 }
 0x4e0   : > { %v380_v43 = vmul.f32 %v372_v30, %v369_v42  ;;  %v253_v37 = vsel %vm252_vm12, -1.0, %v1048_v11 }
 0x4e2   : > { %381 = vadd.xlane.f32.xlu2 %v380_v43 }
 0x4e6   : > { %v392_v45 = vpop.xlane.xlu0 %391 }
 0x4e7   : > { %v393_v48 = vsel %vm389_vm14, %v392_v45, %v379_v39 }
 0x4e8   : > { %v404_v49 = vmul.f32 %v400_v46, %v393_v48 }
 0x4ea   : > { %405 = vadd.xlane.f32.xlu2 %v404_v49 }
 0x555   : > { %v382_v50 = vpop.xlane.xlu2 %381 }
 0x556   : > { %v383_v51 = vsel %vm375_vm13, %v382_v50, %v369_v42  ;;  %vm445_vm13 = vcmp.eq.s32.totalorder %v1086_v5, 16 }
 0x557   : > { %v394_v52 = vmul.f32 %v386_v38, %v383_v51 }
 0x559   : > { %395 = vadd.xlane.f32.xlu1 %v394_v52 }
 0x55d   : > { %v406_v54 = vpop.xlane.xlu2 %405 }
 0x55e   : > { %v407_v56 = vsel %vm403_vm0, %v406_v54, %v393_v48 }
 0x55f   : > { %v418_v57 = vmul.f32 %v414_v55, %v407_v56 }
 0x561   : > { %419 = vadd.xlane.f32.xlu1 %v418_v57 }
 0x5cc   : > { %v396_v59 = vpop.xlane.xlu1 %395 }
 0x5cd   : > { %v397_v60 = vsel %vm389_vm14, %v396_v59, %v383_v51  ;;  %vm459_vm14 = vcmp.eq.s32.totalorder %v1086_v5, 15 }
 0x5ce   : > { %v408_v61 = vmul.f32 %v400_v46, %v397_v60 }
 0x5d0   : > { %409 = vadd.xlane.f32.xlu0 %v408_v61 }
 0x5d4   : > { %v420_v63 = vpop.xlane.xlu1 %419 }
 0x5d5   : > { %v421_v1 = vsel %vm417_vm2, %v420_v63, %v407_v56 }
 0x5d6   : > { %v432_v2 = vmul.f32 %v428_v0, %v421_v1 }
 0x5d8   : > { %433 = vadd.xlane.f32.xlu0 %v432_v2 }
 0x643   : > { %v410_v3 = vpop.xlane.xlu0 %409 }
 0x644   : > { %v411_v4 = vsel %vm403_vm0, %v410_v3, %v397_v60  ;;  %vm477_vm0 = vcmp.eq.s32.totalorder %v1086_v5, 14 }
 0x645   : > { %v422_v7 = vmul.f32 %v414_v55, %v411_v4 }
 0x647   : > { %423 = vadd.xlane.f32.xlu2 %v422_v7 }
 0x64b   : > { %v434_v13 = vpop.xlane.xlu0 %433 }
 0x64c   : > { %v435_v15 = vsel %vm431_vm3, %v434_v13, %v421_v1 }
 0x64d   : > { %v446_v17 = vmul.f32 %v442_v14, %v435_v15 }
 0x64f   : > { %447 = vadd.xlane.f32.xlu0 %v446_v17  ;;  %161 = vadd.xlane.f32.xlu2 %v160_v16 }
 0x6ba   : > { %v424_v18 = vpop.xlane.xlu2 %423 }
 0x6bb   : > { %v425_v19 = vsel %vm417_vm2, %v424_v18, %v411_v4  ;;  %vm495_vm2 = vcmp.eq.s32.totalorder %v1086_v5, 13 }
 0x6bc   : > { %v436_v20 = vmul.f32 %v428_v0, %v425_v19 }
 0x6be   : > { %437 = vadd.xlane.f32.xlu1 %v436_v20 }
 0x6c2   : > { %v1176_v22 = vpop.xlane.xlu2 %161  ;;  %v448_v35 = vpop.xlane.xlu0 %447 }
 0x6c3   : > { %1019 = vrcp.f32 %v1176_v22  ;;  %v177_v25 = vand.u32 2147483648, %v1176_v22  ;;  %vm171_vm7 = vweird.f32 %v1176_v22  ;;  %v175_v27 = vand.u32 2147483647, %v1176_v22 }
 0x6c4   : > { %v449_v39 = vsel %vm445_vm13, %v448_v35, %v435_v15 }
 0x6c5   : > { %v178_v29 = vor.u32 1.1754944e-38, %v177_v25  ;;  %vm176_vm11 = vcmp.eq.f32.partialorder %v175_v27, 8.507059e+37 }
 0x6c9   : > { %v1020_v23 = vpop.eup %1019 }
 0x6ca   : > { %v167_v24 = vmul.f32 %v1020_v23, %v1176_v22  ;;  %vm172_vm8 = vweird.f32 %v1020_v23 }
 0x6cb   : > { %vm173_vm10 = vmor %vm171_vm7, %vm172_vm8  ;;  %vm129_vm8 = vcmp.eq.s32.totalorder %v1088_v6, %v1086_v5 }
 0x6cc   : > { %v168_v26 = vsub.f32 1.0, %v167_v24 }
 0x6ce   : > { %v169_v28 = vmul.f32 %v1020_v23, %v168_v26 }
 0x6d0   : > { %v170_v30 = vadd.f32 %v1020_v23, %v169_v28 }
 0x6d2   : > { %v174_v32 = vsel %vm173_vm10, %v1020_v23, %v170_v30  ;;  %vm134_vm10 = vcmp.le.s32.totalorder %v1088_v6, %v1086_v5 }
 0x6d3   : > { %v1188_v33 = vsel %vm176_vm11, %v178_v29, %v174_v32 }
 0x6d4   : > { %v180_v34 = vmul.f32 %v1188_v33, %v165_v31 }
 0x6d6   : > { %181 = vst [vmem:[#allocation2 + $0x8] sm:$0xff] %v180_v34 }
 0x6dd   : > { %v455_v36 = vld [vmem:[#allocation2 + $0xf] ss:$0 sm:$0xff]  ;;  %v473_v45 = vld [vmem:[#allocation2 + $0xe] ss:$0 sm:$0xff]  ;;  %v491_v57 = vld [vmem:[#allocation2 + $0xd] ss:$0 sm:$0xff] }
 0x6de   : > { %v456_v38 = vxor.u32 2147483648, %v455_v36  ;;  %v474_v46 = vxor.u32 2147483648, %v473_v45  ;;  %v492_v61 = vxor.u32 2147483648, %v491_v57  ;;  %v509_v7 = vld [vmem:[#allocation2 + $0xc] ss:$0 sm:$0xff] }
 0x6df   : > { %v510_v12 = vxor.u32 2147483648, %v509_v7  ;;  %v527_v20 = vld [vmem:[#allocation2 + $0xb] ss:$0 sm:$0xff]  ;;  %v545_v34 = vld [vmem:[#allocation2 + $0xa] ss:$0 sm:$0xff] }
 0x6e0   : > { %v464_v40 = vmul.f32 %v456_v38, %v449_v39  ;;  %v460_v41 = vmul.f32 %v456_v38, %v253_v37  ;;  %v528_v25 = vxor.u32 2147483648, %v527_v20  ;;  %v563_v45 = vld [vmem:[#allocation2 + $0x9] ss:$0 sm:$0xff] }
 0x6e2   : > { %465 = vadd.xlane.f32.xlu0 %v464_v40  ;;  %461 = vadd.xlane.f32.xlu2 %v460_v41 }
 0x731   : > { %v438_v42 = vpop.xlane.xlu1 %437 }
 0x732   : > { %v439_v43 = vsel %vm431_vm3, %v438_v42, %v425_v19  ;;  %vm513_vm3 = vcmp.eq.s32.totalorder %v1086_v5, 12 }
 0x733   : > { %v450_v44 = vmul.f32 %v442_v14, %v439_v43 }
 0x735   : > { %451 = vadd.xlane.f32.xlu1 %v450_v44 }
 0x755   : > { %v466_v48 = vpop.xlane.xlu0 %465  ;;  %v462_v49 = vpop.xlane.xlu2 %461 }
 0x756   : > { %v467_v50 = vsel %vm459_vm14, %v466_v48, %v449_v39  ;;  %v463_v51 = vsel %vm459_vm14, %v462_v49, %v253_v37  ;;  %v546_v37 = vxor.u32 2147483648, %v545_v34  ;;  %v564_v49 = vxor.u32 2147483648, %v563_v45 }
 0x757   : > { %v482_v52 = vmul.f32 %v474_v46, %v467_v50  ;;  %v478_v53 = vmul.f32 %v474_v46, %v463_v51 }
 0x759   : > { %483 = vadd.xlane.f32.xlu0 %v482_v52  ;;  %479 = vadd.xlane.f32.xlu2 %v478_v53 }
 0x7a8   : > { %v452_v54 = vpop.xlane.xlu1 %451 }
 0x7a9   : > { %v453_v55 = vsel %vm445_vm13, %v452_v54, %v439_v43  ;;  %v130_v54 = vld [vmem:[%s1091_s20] sm:$0xff]  ;;  %vm135_vm13 = vmand %vm134_vm10, %vm125_vm1  ;;  %vm585_vm1 = vcmp.eq.s32.totalorder %v1086_v5, 8  ;;  %vm713_vm10 = vcmp.eq.s32.totalorder %v1086_v5, 2 }
 0x7aa   : > { %v468_v56 = vmul.f32 %v456_v38, %v453_v55 }
 0x7ac   : > { %469 = vadd.xlane.f32.xlu1 %v468_v56 }
 0x7cc   : > { %v484_v59 = vpop.xlane.xlu0 %483  ;;  %v480_v60 = vpop.xlane.xlu2 %479 }
 0x7cd   : > { %v485_v62 = vsel %vm477_vm0, %v484_v59, %v467_v50  ;;  %v481_v63 = vsel %vm477_vm0, %v480_v60, %v463_v51  ;;  %v581_v60 = vld [vmem:[#allocation2 + $0x8] ss:$0 sm:$0xff] }
 0x7ce   : > { %v500_v0 = vmul.f32 %v492_v61, %v485_v62  ;;  %v496_v1 = vmul.f32 %v492_v61, %v481_v63 }
 0x7d0   : > { %501 = vadd.xlane.f32.xlu0 %v500_v0  ;;  %497 = vadd.xlane.f32.xlu2 %v496_v1 }
 0x81f   : > { %v470_v2 = vpop.xlane.xlu1 %469 }
 0x820   : > { %v471_v3 = vsel %vm459_vm14, %v470_v2, %v453_v55  ;;  %v131_v55 = vsel %vm129_vm8, %v130_v54, 0.0  ;;  %vm669_vm8 = vcmp.eq.s32.totalorder %v1086_v5, 4 }
 0x821   : > { %v486_v4 = vmul.f32 %v474_v46, %v471_v3 }
 0x823   : > { %487 = vadd.xlane.f32.xlu1 %v486_v4 }
 0x843   : > { %v502_v8 = vpop.xlane.xlu0 %501  ;;  %v498_v9 = vpop.xlane.xlu2 %497 }
 0x844   : > { %v503_v13 = vsel %vm495_vm2, %v502_v8, %v485_v62  ;;  %v499_v14 = vsel %vm495_vm2, %v498_v9, %v481_v63  ;;  %v582_v62 = vxor.u32 2147483648, %v581_v60 }
 0x845   : > { %v518_v15 = vmul.f32 %v510_v12, %v503_v13  ;;  %v514_v16 = vmul.f32 %v510_v12, %v499_v14 }
 0x847   : > { %519 = vadd.xlane.f32.xlu0 %v518_v15  ;;  %515 = vadd.xlane.f32.xlu2 %v514_v16 }
 0x896   : > { %v488_v17 = vpop.xlane.xlu1 %487 }
 0x897   : > { %v489_v18 = vsel %vm477_vm0, %v488_v17, %v471_v3 }
 0x898   : > { %v504_v19 = vmul.f32 %v492_v61, %v489_v18 }
 0x89a   : > { %505 = vadd.xlane.f32.xlu1 %v504_v19 }
 0x8ba   : > { %v520_v23 = vpop.xlane.xlu0 %519  ;;  %v516_v24 = vpop.xlane.xlu2 %515 }
 0x8bb   : > { %v521_v26 = vsel %vm513_vm3, %v520_v23, %v503_v13  ;;  %v517_v27 = vsel %vm513_vm3, %v516_v24, %v499_v14  ;;  %v136_v14 = vsel %vm135_vm13, %v130_v54, 0.0  ;;  %vm756_vm13 = vcmp.eq.s32.totalorder %v1086_v5, 0 }
 0x8bc   : > { %v536_v28 = vmul.f32 %v528_v25, %v521_v26  ;;  %v532_v29 = vmul.f32 %v528_v25, %v517_v27 }
 0x8be   : > { %537 = vadd.xlane.f32.xlu0 %v536_v28  ;;  %533 = vadd.xlane.f32.xlu2 %v532_v29 }
 0x90d   : > { %v506_v30 = vpop.xlane.xlu1 %505 }
 0x90e   : > { %v507_v31 = vsel %vm495_vm2, %v506_v30, %v489_v18  ;;  %vm245_vm2 = vcmp.eq.s32.totalorder %v1086_v5, %v1088_v6 }
 0x90f   : > { %v522_v32 = vmul.f32 %v510_v12, %v507_v31  ;;  %v246_v18 = vsel %vm245_vm2, -1.0, %v1048_v11 }
 0x911   : > { %523 = vadd.xlane.f32.xlu1 %v522_v32 }
 0x931   : > { %v538_v35 = vpop.xlane.xlu0 %537  ;;  %v534_v36 = vpop.xlane.xlu2 %533 }
 0x932   : > { %v539_v38 = vsel %vm531_vm4, %v538_v35, %v521_v26  ;;  %v535_v39 = vsel %vm531_vm4, %v534_v36, %v517_v27 }
 0x933   : > { %v554_v40 = vmul.f32 %v546_v37, %v539_v38  ;;  %v550_v41 = vmul.f32 %v546_v37, %v535_v39 }
 0x935   : > { %555 = vadd.xlane.f32.xlu0 %v554_v40  ;;  %551 = vadd.xlane.f32.xlu2 %v550_v41 }
 0x984   : > { %v524_v42 = vpop.xlane.xlu1 %523 }
 0x985   : > { %v525_v43 = vsel %vm513_vm3, %v524_v42, %v507_v31  ;;  %vm603_vm3 = vcmp.eq.s32.totalorder %v1086_v5, 7 }
 0x986   : > { %v540_v44 = vmul.f32 %v528_v25, %v525_v43 }
 0x988   : > { %541 = vadd.xlane.f32.xlu1 %v540_v44 }
 0x9a8   : > { %v556_v46 = vpop.xlane.xlu0 %555  ;;  %v552_v48 = vpop.xlane.xlu2 %551 }
 0x9a9   : > { %v557_v50 = vsel %vm549_vm6, %v556_v46, %v539_v38  ;;  %v553_v51 = vsel %vm549_vm6, %v552_v48, %v535_v39 }
 0x9aa   : > { %v572_v52 = vmul.f32 %v564_v49, %v557_v50  ;;  %v568_v53 = vmul.f32 %v564_v49, %v553_v51 }
 0x9ac   : > { %573 = vadd.xlane.f32.xlu0 %v572_v52  ;;  %569 = vadd.xlane.f32.xlu2 %v568_v53 }
 0x9b4   : > { %132 = vadd.xlane.f32.xlu2 %v131_v55 }
 0x9fb   : > { %v542_v56 = vpop.xlane.xlu1 %541 }
 0x9fc   : > { %v543_v57 = vsel %vm531_vm4, %v542_v56, %v525_v43  ;;  %vm625_vm4 = vcmp.eq.s32.totalorder %v1086_v5, 6 }
 0x9fd   : > { %v558_v59 = vmul.f32 %v546_v37, %v543_v57 }
 0x9ff   : > { %559 = vadd.xlane.f32.xlu1 %v558_v59 }
 0xa1f   : > { %v570_v61 = vpop.xlane.xlu2 %569  ;;  %v574_v27 = vpop.xlane.xlu0 %573 }
 0xa20   : > { %v571_v63 = vsel %vm567_vm9, %v570_v61, %v553_v51  ;;  %v575_v28 = vsel %vm567_vm9, %v574_v27, %v557_v50 }
 0xa21   : > { %v586_v0 = vmul.f32 %v582_v62, %v571_v63  ;;  %v590_v29 = vmul.f32 %v582_v62, %v575_v28 }
 0xa23   : > { %587 = vadd.xlane.f32.xlu0 %v586_v0 }
 0xa27   : > { %v1246_v1 = vpop.xlane.xlu2 %132 }
 0xa28   : > { %1021 = vrcp.f32 %v1246_v1  ;;  %v148_v4 = vand.u32 2147483648, %v1246_v1  ;;  %vm142_vm11 = vweird.f32 %v1246_v1  ;;  %v146_v8 = vand.u32 2147483647, %v1246_v1 }
 0xa2a   : > { %v149_v12 = vor.u32 1.1754944e-38, %v148_v4  ;;  %vm147_vm0 = vcmp.eq.f32.partialorder %v146_v8, 8.507059e+37 }
 0xa2e   : > { %v1022_v2 = vpop.eup %1021 }
 0xa2f   : > { %v138_v3 = vmul.f32 %v1022_v2, %v1246_v1  ;;  %vm143_vm12 = vweird.f32 %v1022_v2 }
 0xa30   : > { %vm144_vm14 = vmor %vm142_vm11, %vm143_vm12  ;;  %vm735_vm12 = vcmp.eq.s32.totalorder %v1086_v5, 1 }
 0xa31   : > { %v139_v7 = vsub.f32 1.0, %v138_v3 }
 0xa33   : > { %v140_v9 = vmul.f32 %v1022_v2, %v139_v7 }
 0xa35   : > { %v141_v13 = vadd.f32 %v1022_v2, %v140_v9 }
 0xa37   : > { %v145_v15 = vsel %vm144_vm14, %v1022_v2, %v141_v13 }
 0xa38   : > { %v1259_v16 = vsel %vm147_vm0, %v149_v12, %v145_v15 }
 0xa39   : > { %v151_v17 = vmul.f32 %v1259_v16, %v136_v14 }
 0xa3b   : > { %152 = vst [vmem:[#allocation2] sm:$0xff] %v151_v17 }
 0xa42   : > { %v599_v19 = vld [vmem:[#allocation2 + $0x7] ss:$0 sm:$0xff]  ;;  %v621_v31 = vld [vmem:[#allocation2 + $0x6] ss:$0 sm:$0xff]  ;;  %v643_v46 = vld [vmem:[#allocation2 + $0x5] ss:$0 sm:$0xff] }
 0xa43   : > { %v600_v20 = vxor.u32 2147483648, %v599_v19  ;;  %v622_v32 = vxor.u32 2147483648, %v621_v31  ;;  %v644_v48 = vxor.u32 2147483648, %v643_v46 }
 0xa45   : > { %v604_v23 = vmul.f32 %v600_v20, %v246_v18 }
 0xa47   : > { %605 = vadd.xlane.f32.xlu0 %v604_v23 }
 0xa72   : > { %v560_v24 = vpop.xlane.xlu1 %559 }
 0xa73   : > { %v561_v25 = vsel %vm549_vm6, %v560_v24, %v543_v57  ;;  %vm647_vm6 = vcmp.eq.s32.totalorder %v1086_v5, 5 }
 0xa74   : > { %v576_v26 = vmul.f32 %v564_v49, %v561_v25 }
 0xa76   : > { %577 = vadd.xlane.f32.xlu1 %v576_v26 }
 0xa7e   : > { %591 = vadd.xlane.f32.xlu1 %v590_v29 }
 0xa96   : > { %v588_v6 = vpop.xlane.xlu0 %587 }
 0xa97   : > { %v589_v11 = vsel %vm585_vm1, %v588_v6, %v571_v63 }
 0xa98   : > { %v608_v30 = vmul.f32 %v600_v20, %v589_v11 }
 0xa9a   : > { %609 = vadd.xlane.f32.xlu1 %v608_v30 }
 0xaba   : > { %v606_v34 = vpop.xlane.xlu0 %605 }
 0xabb   : > { %v607_v35 = vsel %vm603_vm3, %v606_v34, %v246_v18  ;;  %v687_v18 = vld [vmem:[#allocation2 + $0x3] ss:$0 sm:$0xff] }
 0xabc   : > { %v626_v36 = vmul.f32 %v622_v32, %v607_v35 }
 0xabe   : > { %627 = vadd.xlane.f32.xlu1 %v626_v36 }
 0xae9   : > { %v578_v37 = vpop.xlane.xlu1 %577 }
 0xaea   : > { %v579_v38 = vsel %vm567_vm9, %v578_v37, %v561_v25  ;;  %vm691_vm9 = vcmp.eq.s32.totalorder %v1086_v5, 3 }
 0xaeb   : > { %v594_v39 = vmul.f32 %v582_v62, %v579_v38  ;;  %v665_v62 = vld [vmem:[#allocation2 + $0x4] ss:$0 sm:$0xff] }
 0xaec   : > { %v666_v0 = vxor.u32 2147483648, %v665_v62 }
 0xaed   : > { %595 = vadd.xlane.f32.xlu2 %v594_v39 }
 0xaf1   : > { %v592_v40 = vpop.xlane.xlu1 %591 }
 0xaf2   : > { %v593_v41 = vsel %vm585_vm1, %v592_v40, %v575_v28 }
 0xaf3   : > { %v612_v42 = vmul.f32 %v600_v20, %v593_v41 }
 0xaf5   : > { %613 = vadd.xlane.f32.xlu2 %v612_v42 }
 0xb0d   : > { %v610_v43 = vpop.xlane.xlu1 %609 }
 0xb0e   : > { %v611_v44 = vsel %vm603_vm3, %v610_v43, %v589_v11 }
 0xb0f   : > { %v630_v45 = vmul.f32 %v622_v32, %v611_v44 }
 0xb11   : > { %631 = vadd.xlane.f32.xlu2 %v630_v45 }
 0xb31   : > { %v628_v49 = vpop.xlane.xlu1 %627 }
 0xb32   : > { %v629_v50 = vsel %vm625_vm4, %v628_v49, %v607_v35 }
 0xb33   : > { %v648_v51 = vmul.f32 %v644_v48, %v629_v50 }
 0xb35   : > { %649 = vadd.xlane.f32.xlu2 %v648_v51 }
 0xb60   : > { %v596_v52 = vpop.xlane.xlu2 %595 }
 0xb61   : > { %v597_v53 = vsel %vm585_vm1, %v596_v52, %v579_v38 }
 0xb62   : > { %v616_v54 = vmul.f32 %v600_v20, %v597_v53  ;;  %v688_v20 = vxor.u32 2147483648, %v687_v18 }
 0xb64   : > { %617 = vadd.xlane.f32.xlu0 %v616_v54 }
 0xb68   : > { %v614_v55 = vpop.xlane.xlu2 %613 }
 0xb69   : > { %v615_v56 = vsel %vm603_vm3, %v614_v55, %v593_v41 }
 0xb6a   : > { %v634_v57 = vmul.f32 %v622_v32, %v615_v56 }
 0xb6c   : > { %635 = vadd.xlane.f32.xlu0 %v634_v57 }
 0xb84   : > { %v632_v59 = vpop.xlane.xlu2 %631 }
 0xb85   : > { %v633_v60 = vsel %vm625_vm4, %v632_v59, %v611_v44 }
 0xb86   : > { %v652_v61 = vmul.f32 %v644_v48, %v633_v60 }
 0xb88   : > { %653 = vadd.xlane.f32.xlu0 %v652_v61 }
 0xba8   : > { %v650_v63 = vpop.xlane.xlu2 %649 }
 0xba9   : > { %v651_v2 = vsel %vm647_vm6, %v650_v63, %v629_v50  ;;  %v752_v63 = vld [vmem:[#allocation2] ss:$0 sm:$0xff] }
 0xbaa   : > { %v670_v3 = vmul.f32 %v666_v0, %v651_v2 }
 0xbac   : > { %671 = vadd.xlane.f32.xlu0 %v670_v3 }
 0xbd7   : > { %v618_v4 = vpop.xlane.xlu0 %617 }
 0xbd8   : > { %v619_v7 = vsel %vm603_vm3, %v618_v4, %v597_v53 }
 0xbd9   : > { %v638_v8 = vmul.f32 %v622_v32, %v619_v7  ;;  %v709_v32 = vld [vmem:[#allocation2 + $0x2] ss:$0 sm:$0xff] }
 0xbda   : > { %v710_v35 = vxor.u32 2147483648, %v709_v32 }
 0xbdb   : > { %639 = vadd.xlane.f32.xlu1 %v638_v8 }
 0xbdf   : > { %v636_v9 = vpop.xlane.xlu0 %635 }
 0xbe0   : > { %v637_v12 = vsel %vm625_vm4, %v636_v9, %v615_v56 }
 0xbe1   : > { %v656_v13 = vmul.f32 %v644_v48, %v637_v12 }
 0xbe3   : > { %657 = vadd.xlane.f32.xlu1 %v656_v13 }
 0xbfb   : > { %v654_v14 = vpop.xlane.xlu0 %653 }
 0xbfc   : > { %v655_v15 = vsel %vm647_vm6, %v654_v14, %v633_v60 }
 0xbfd   : > { %v674_v17 = vmul.f32 %v666_v0, %v655_v15 }
 0xbff   : > { %675 = vadd.xlane.f32.xlu1 %v674_v17 }
 0xc1f   : > { %v672_v19 = vpop.xlane.xlu0 %671 }
 0xc20   : > { %v673_v23 = vsel %vm669_vm8, %v672_v19, %v651_v2  ;;  %v753_v2 = vxor.u32 2147483648, %v752_v63 }
 0xc21   : > { %v692_v24 = vmul.f32 %v688_v20, %v673_v23 }
 0xc23   : > { %693 = vadd.xlane.f32.xlu1 %v692_v24 }
 0xc4e   : > { %v640_v25 = vpop.xlane.xlu1 %639 }
 0xc4f   : > { %v641_v26 = vsel %vm625_vm4, %v640_v25, %v619_v7 }
 0xc50   : > { %v660_v27 = vmul.f32 %v644_v48, %v641_v26  ;;  %v731_v48 = vld [vmem:[#allocation2 + $0x1] ss:$0 sm:$0xff] }
 0xc51   : > { %v732_v50 = vxor.u32 2147483648, %v731_v48 }
 0xc52   : > { %661 = vadd.xlane.f32.xlu2 %v660_v27 }
 0xc56   : > { %v658_v28 = vpop.xlane.xlu1 %657 }
 0xc57   : > { %v659_v29 = vsel %vm647_vm6, %v658_v28, %v637_v12 }
 0xc58   : > { %v678_v6 = vmul.f32 %v666_v0, %v659_v29 }
 0xc5a   : > { %679 = vadd.xlane.f32.xlu2 %v678_v6 }
 0xc72   : > { %v676_v11 = vpop.xlane.xlu1 %675 }
 0xc73   : > { %v677_v30 = vsel %vm669_vm8, %v676_v11, %v655_v15 }
 0xc74   : > { %v696_v31 = vmul.f32 %v688_v20, %v677_v30 }
 0xc76   : > { %697 = vadd.xlane.f32.xlu2 %v696_v31 }
 0xc96   : > { %v694_v34 = vpop.xlane.xlu1 %693 }
 0xc97   : > { %v695_v36 = vsel %vm691_vm9, %v694_v34, %v673_v23 }
 0xc98   : > { %v714_v37 = vmul.f32 %v710_v35, %v695_v36 }
 0xc9a   : > { %715 = vadd.xlane.f32.xlu2 %v714_v37 }
 0xcc5   : > { %v662_v38 = vpop.xlane.xlu2 %661 }
 0xcc6   : > { %v663_v39 = vsel %vm647_vm6, %v662_v38, %v641_v26 }
 0xcc7   : > { %v682_v40 = vmul.f32 %v666_v0, %v663_v39 }
 0xcc9   : > { %683 = vadd.xlane.f32.xlu0 %v682_v40 }
 0xccd   : > { %v680_v41 = vpop.xlane.xlu2 %679 }
 0xcce   : > { %v681_v42 = vsel %vm669_vm8, %v680_v41, %v659_v29 }
 0xccf   : > { %v700_v43 = vmul.f32 %v688_v20, %v681_v42 }
 0xcd1   : > { %701 = vadd.xlane.f32.xlu0 %v700_v43 }
 0xce9   : > { %v698_v44 = vpop.xlane.xlu2 %697 }
 0xcea   : > { %v699_v45 = vsel %vm691_vm9, %v698_v44, %v677_v30 }
 0xceb   : > { %v718_v46 = vmul.f32 %v710_v35, %v699_v45 }
 0xced   : > { %719 = vadd.xlane.f32.xlu0 %v718_v46 }
 0xd0d   : > { %v716_v49 = vpop.xlane.xlu2 %715 }
 0xd0e   : > { %v717_v51 = vsel %vm713_vm10, %v716_v49, %v695_v36 }
 0xd0f   : > { %v736_v52 = vmul.f32 %v732_v50, %v717_v51 }
 0xd11   : > { %737 = vadd.xlane.f32.xlu0 %v736_v52 }
 0xd3c   : > { %v684_v53 = vpop.xlane.xlu0 %683 }
 0xd3d   : > { %v685_v54 = vsel %vm669_vm8, %v684_v53, %v663_v39 }
 0xd3e   : > { %v704_v55 = vmul.f32 %v688_v20, %v685_v54 }
 0xd40   : > { %705 = vadd.xlane.f32.xlu1 %v704_v55 }
 0xd44   : > { %v702_v56 = vpop.xlane.xlu0 %701 }
 0xd45   : > { %v703_v57 = vsel %vm691_vm9, %v702_v56, %v681_v42 }
 0xd46   : > { %v722_v59 = vmul.f32 %v710_v35, %v703_v57 }
 0xd48   : > { %723 = vadd.xlane.f32.xlu1 %v722_v59 }
 0xd60   : > { %v720_v60 = vpop.xlane.xlu0 %719 }
 0xd61   : > { %v721_v61 = vsel %vm713_vm10, %v720_v60, %v699_v45 }
 0xd62   : > { %v740_v62 = vmul.f32 %v732_v50, %v721_v61 }
 0xd64   : > { %741 = vadd.xlane.f32.xlu1 %v740_v62 }
 0xd84   : > { %v738_v0 = vpop.xlane.xlu0 %737 }
 0xd85   : > { %v739_v3 = vsel %vm735_vm12, %v738_v0, %v717_v51 }
 0xd86   : > { %v757_v4 = vmul.f32 %v753_v2, %v739_v3 }
 0xd88   : > { %758 = vadd.xlane.f32.xlu1 %v757_v4 }
 0xdb3   : > { %v706_v7 = vpop.xlane.xlu1 %705 }
 0xdb4   : > { %v707_v8 = vsel %vm691_vm9, %v706_v7, %v685_v54 }
 0xdb5   : > { %v726_v9 = vmul.f32 %v710_v35, %v707_v8 }
 0xdb7   : > { %727 = vadd.xlane.f32.xlu2 %v726_v9 }
 0xdbb   : > { %v724_v12 = vpop.xlane.xlu1 %723 }
 0xdbc   : > { %v725_v13 = vsel %vm713_vm10, %v724_v12, %v703_v57 }
 0xdbd   : > { %v744_v14 = vmul.f32 %v732_v50, %v725_v13 }
 0xdbf   : > { %745 = vadd.xlane.f32.xlu2 %v744_v14 }
 0xdd7   : > { %v742_v15 = vpop.xlane.xlu1 %741 }
 0xdd8   : > { %v743_v17 = vsel %vm735_vm12, %v742_v15, %v721_v61 }
 0xdd9   : > { %v761_v18 = vmul.f32 %v753_v2, %v743_v17 }
 0xddb   : > { %762 = vadd.xlane.f32.xlu2 %v761_v18 }
 0xdfb   : > { %v759_v19 = vpop.xlane.xlu1 %758 }
 0xdfc   : > { %v760_v20 = vsel %vm756_vm13, %v759_v19, %v739_v3 }
 0xdfd   : > { %v787_v23 = vmul.f32 %v760_v20, %v1259_v16 }
 0xdff   : > { %v789_v24 = vsel %vm142_vm11, %v760_v20, %v787_v23 }
 0xe00   : > { %894 = vst [vmem:[%s858_s24] sm:$0xff] %v789_v24 }
 0xe2a   : > { %v728_v25 = vpop.xlane.xlu2 %727 }
 0xe2b   : > { %v729_v26 = vsel %vm713_vm10, %v728_v25, %v707_v8 }
 0xe2c   : > { %v748_v27 = vmul.f32 %v732_v50, %v729_v26 }
 0xe2e   : > { %749 = vadd.xlane.f32.xlu0 %v748_v27 }
 0xe32   : > { %v746_v28 = vpop.xlane.xlu2 %745 }
 0xe33   : > { %v747_v29 = vsel %vm735_vm12, %v746_v28, %v725_v13 }
 0xe34   : > { %v765_v6 = vmul.f32 %v753_v2, %v747_v29 }
 0xe36   : > { %766 = vadd.xlane.f32.xlu0 %v765_v6 }
 0xe4e   : > { %v763_v16 = vpop.xlane.xlu2 %762 }
 0xe4f   : > { %v764_v11 = vsel %vm756_vm13, %v763_v16, %v743_v17 }
 0xe50   : > { %v805_v1 = vmul.f32 %v764_v11, %v1188_v33 }
 0xe52   : > { %v807_v30 = vsel %vm171_vm7, %v764_v11, %v805_v1 }
 0xe53   : > { %896 = vst [vmem:[%s858_s24 + $0x8] sm:$0xff] %v807_v30 }
 0xea1   : > { %v750_v31 = vpop.xlane.xlu0 %749 }
 0xea2   : > { %v751_v32 = vsel %vm735_vm12, %v750_v31, %v729_v26 }
 0xea3   : > { %v769_v34 = vmul.f32 %v753_v2, %v751_v32 }
 0xea5   : > { %770 = vadd.xlane.f32.xlu1 %v769_v34 }
 0xea9   : > { %v767_v35 = vpop.xlane.xlu0 %766 }
 0xeaa   : > { %v768_v36 = vsel %vm756_vm13, %v767_v35, %v747_v29 }
 0xeab   : > { %v824_v37 = vmul.f32 %v768_v36, %v1131_v58 }
 0xead   : > { %v826_v38 = vsel %vm200_vm15, %v768_v36, %v824_v37 }
 0xeae   : > { %898 = vst [vmem:[%s858_s24 + $0x10] sm:$0xff] %v826_v38 }
 0xf18   : > { %v771_v33 = vpop.xlane.xlu1 %770 }
 0xf19   : > { %v772_v22 = vsel %vm756_vm13, %v771_v33, %v751_v32 }
 0xf1a   : > { %v843_v39 = vmul.f32 %v772_v22, %v1108_v21 }
 0xf1c   : > { %v845_v40 = vsel %vm229_vm5, %v772_v22, %v843_v39 }
 0xf1d   : > { %900 = vst [vmem:[%s858_s24 + $0x18] sm:$0xff] %v845_v40 }
 0xf1e PF: > { %s7_s8 = sadd.s32 1, %s1045_s8   ;;  %s1377_s6 = smov %s1041_s7 }
 0xf1f   : > { %p4_p5 = scmp.ge.s32.totalorder %s7_s8, 6   ;;  %s1378_s7 = smov %s1380_s10 }
 0xf21   :  { %6 = sbr.rel (!%p4_p5) target bundleno = 2 (0x2), region = 157 }

// kernel: tile.9
= control target key start
LH: loop header
LB: loop body
LE: loop exit
PB: predicated region body
PF: predicated region fallthrough
CT: control target
= control target key end

     0   :  { %s52_s14 = smov 32   ;;  %s53_s15 = smov 64   ;;  %vm19_vm0 = vcmask 261120   ;;  %vm25_vm1 = vcmask 1048320   ;;  %vm31_vm2 = vcmask 785920   ;;  %vm37_vm3 = vcmask 523520   ;;  %s79_s0 = inlined_call_operand.vmem [shape: f32[4,4,32], index: 0, kind: input, shape index: {}]   ;;  %s80_s1 = inlined_call_operand.vmem [shape: f32[4,128], index: 1, kind: output, shape index: {}]  }
   0x1   :  { %v45_v0 = vld [vmem:[%s79_s0 + $0xc] sm:$0xf]  ;;  %v46_v1 = vld [vmem:[%s79_s0 + $0x8] sm:$0xf]  ;;  %v47_v2 = vld [vmem:[%s79_s0 + $0x4] sm:$0xf] }
   0x2   :  { %7 = vst [vmem:[#allocation1 + $0x18] sm:$0xf] %v45_v0  ;;  %v16_v3 = vld [vmem:[%s79_s0] sm:$0xf]  ;;  %s51_s0 = smov 96  }
   0x3   :  { %11 = vst [vmem:[#allocation1 + $0x10] sm:$0xf] %v46_v1 }
   0x4   :  { %15 = vst [vmem:[#allocation1 + $0x8] sm:$0xf] %v47_v2 }
   0x5   :  { %17 = vst [vmem:[#allocation1] sm:$0xf] %v16_v3 }
   0xc   :  { %v22_v4 = vld [vmem:[#allocation1 + $0x3] ss:$8 sm:$0xf]   ;;  %v34_v5 = vld [vmem:[#allocation1 + $0x1] ss:$8 sm:$0xf]  }
   0xd   :  { %23 = vrot.lane.b32.xlu0 %v22_v4, %s51_s0  ;;  %35 = vrot.lane.b32.xlu1 %v34_v5, %s52_s14  ;;  %v28_v6 = vld [vmem:[#allocation1 + $0x2] ss:$8 sm:$0xf]   ;;  %v18_v7 = vld [vmem:[#allocation1] ss:$8 sm:$0xf]  }
   0xe   :  { %20 = vst.msk [vmem:[#allocation0] sm:$0xf] %vm19_vm0, %v18_v7  }
  0x15   :  { %29 = vrot.lane.b32.xlu0 %v28_v6, %s53_s15 }
  0x7f   :  { %v24_v8 = vpop.permute.xlu0 %23   ;;  %v36_v9 = vpop.permute.xlu1 %35  }
  0x80   :  { %26 = vst.msk [vmem:[#allocation0] sm:$0xf] %vm25_vm1, %v24_v8  }
  0x87   :  { %v30_v10 = vpop.permute.xlu0 %29  }
  0x88   :  { %32 = vst.msk [vmem:[#allocation0] sm:$0xf] %vm31_vm2, %v30_v10  }
  0x89   :  { %38 = vst.msk [vmem:[#allocation0] sm:$0xf] %vm37_vm3, %v36_v9  }
  0x90   :  { %v41_v11 = vld [vmem:[#allocation0] sm:$0xf] }
  0x91   :  { %44 = vst [vmem:[%s80_s1] sm:$0xf] %v41_v11 }

// kernel: ood_mahalanobis_loss.1
= control target key start
LH: loop header
LB: loop body
LE: loop exit
PB: predicated region body
PF: predicated region fallthrough
CT: control target
= control target key end

     0   :  { %s1908_s1 = inlined_call_operand.vmem [shape: bf16[4,128,128], index: 1, kind: input, shape index: {}]   ;;  %s1909_s0 = inlined_call_operand.vmem [shape: f32[4,128], index: 0, kind: input, shape index: {}]   ;;  %s1910_s3 = inlined_call_operand.vmem [shape: f32[96,128], index: 3, kind: input, shape index: {}]   ;;  %s1911_s2 = inlined_call_operand.vmem [shape: bf16[128,128], index: 2, kind: input, shape index: {}]   ;;  %s1912_s4 = inlined_call_operand.vmem [shape: f32[1,8,128], index: 4, kind: output, shape index: {}]  }
   0x1   :  { %v1288_v0 = vld [vmem:[%s1908_s1 + $0x38] sm:$0xff]  ;;  %v1287_v2 = vld [vmem:[%s1908_s1 + $0x30] sm:$0xff]  ;;  %v1286_v4 = vld [vmem:[%s1908_s1 + $0x28] sm:$0xff] }
   0x2   :  { %v1304_v1 = vld [vmem:[%s1908_s1 + $0xb8] sm:$0xff]  ;;  %129 = vmatpush.bf16.msra.mxu1 %v1288_v0  ;;  %v1303_v3 = vld [vmem:[%s1908_s1 + $0xb0] sm:$0xff]  ;;  %v1302_v5 = vld [vmem:[%s1908_s1 + $0xa8] sm:$0xff] }
   0x3   :  { %423 = vmatpush.bf16.msra.mxu3 %v1304_v1  ;;  %v1285_v6 = vld [vmem:[%s1908_s1 + $0x20] sm:$0xff]  ;;  %v1284_v8 = vld [vmem:[%s1908_s1 + $0x18] sm:$0xff]  ;;  %v1283_v10 = vld [vmem:[%s1908_s1 + $0x10] sm:$0xff] }
   0x4   :  { %v1301_v7 = vld [vmem:[%s1908_s1 + $0xa0] sm:$0xff]  ;;  %v1300_v9 = vld [vmem:[%s1908_s1 + $0x98] sm:$0xff]  ;;  %v1299_v11 = vld [vmem:[%s1908_s1 + $0x90] sm:$0xff] }
   0x5   :  { %v1387_v12 = vld [vmem:[%s1909_s0] sm:$0xf]  ;;  %v1282_v13 = vld [vmem:[%s1908_s1 + $0x8] sm:$0xff]  ;;  %v1312_v25 = vld [vmem:[%s1908_s1 + $0xf8] sm:$0xff] }
   0x6   :  { %130 = vmatpush.bf16.msra.mxu1 %v1287_v2  ;;  %v1393_v14 = vperm.slane %v1387_v12, 0  ;;  %v1396_v15 = vperm.slane %v1387_v12, 2  ;;  %v1298_v16 = vld [vmem:[%s1908_s1 + $0x88] sm:$0xff]  ;;  %v1404_v17 = vld [vmem:[%s1910_s3] sm:$0xff]  ;;  %v1296_v26 = vld [vmem:[%s1908_s1 + $0x78] sm:$0xff] }
   0x7   :  { %424 = vmatpush.bf16.msra.mxu3 %v1303_v3  ;;  %v1409_v18 = vld [vmem:[%s1910_s3 + $0x8] sm:$0xff]  ;;  %v1281_v23 = vld [vmem:[%s1908_s1] sm:$0xff]  ;;  %v1311_v29 = vld [vmem:[%s1908_s1 + $0xf0] sm:$0xff] }
   0x8   :  { %v1413_v19 = vsub.f32 %v1404_v17, %v1393_v14  ;;  %v1417_v20 = vsub.f32 %v1409_v18, %v1393_v14  ;;  %v1421_v21 = vsub.f32 %v1404_v17, %v1396_v15  ;;  %v1425_v22 = vsub.f32 %v1409_v18, %v1396_v15  ;;  %v1297_v24 = vld [vmem:[%s1908_s1 + $0x80] sm:$0xff]  ;;  %v1295_v30 = vld [vmem:[%s1908_s1 + $0x70] sm:$0xff]  ;;  %v1310_v31 = vld [vmem:[%s1908_s1 + $0xe8] sm:$0xff] }
   0x9   :  { %v1294_v32 = vld [vmem:[%s1908_s1 + $0x68] sm:$0xff]  ;;  %v1458_v33 = vld [vmem:[%s1910_s3 + $0x10] sm:$0xff]  ;;  %v1463_v34 = vld [vmem:[%s1910_s3 + $0x18] sm:$0xff] }
   0xa   :  { %131 = vmatpush.bf16.msra.mxu1 %v1286_v4  ;;  %v59_v27 = vpack.c.bf16 %v1417_v20, %v1413_v19  ;;  %v352_v28 = vpack.c.bf16 %v1425_v22, %v1421_v21  ;;  %v1309_v35 = vld [vmem:[%s1908_s1 + $0xe0] sm:$0xff]  ;;  %v1473_v37 = vsub.f32 %v1458_v33, %v1393_v14  ;;  %v1477_v38 = vsub.f32 %v1463_v34, %v1393_v14  ;;  %v1308_v43 = vld [vmem:[%s1908_s1 + $0xd8] sm:$0xff]  ;;  %v1307_v45 = vld [vmem:[%s1908_s1 + $0xd0] sm:$0xff] }
   0xb   :  { %425 = vmatpush.bf16.msra.mxu3 %v1302_v5  ;;  %v1293_v36 = vld [vmem:[%s1908_s1 + $0x60] sm:$0xff]  ;;  %v1481_v39 = vsub.f32 %v1458_v33, %v1396_v15  ;;  %v1485_v40 = vsub.f32 %v1463_v34, %v1396_v15  ;;  %v1292_v44 = vld [vmem:[%s1908_s1 + $0x58] sm:$0xff]  ;;  %v1508_v47 = vld [vmem:[%s1910_s3 + $0x28] sm:$0xff] }
   0xc   :  { %v60_v41 = vpack.c.bf16 %v1477_v38, %v1473_v37  ;;  %v1503_v46 = vld [vmem:[%s1910_s3 + $0x20] sm:$0xff]  ;;  %v1516_v49 = vsub.f32 %v1508_v47, %v1393_v14  ;;  %v1524_v51 = vsub.f32 %v1508_v47, %v1396_v15  ;;  %v1291_v54 = vld [vmem:[%s1908_s1 + $0x50] sm:$0xff]  ;;  %v1306_v55 = vld [vmem:[%s1908_s1 + $0xc8] sm:$0xff] }
   0xd   :  { %v353_v42 = vpack.c.bf16 %v1485_v40, %v1481_v39  ;;  %v1512_v48 = vsub.f32 %v1503_v46, %v1393_v14  ;;  %v1520_v50 = vsub.f32 %v1503_v46, %v1396_v15  ;;  %v1539_v56 = vld [vmem:[%s1910_s3 + $0x30] sm:$0xff]  ;;  %v1544_v57 = vld [vmem:[%s1910_s3 + $0x38] sm:$0xff]  ;;  %v1290_v0 = vld [vmem:[%s1908_s1 + $0x48] sm:$0xff] }
   0xe   :  { %132 = vmatpush.bf16.msra.mxu1 %v1285_v6  ;;  %v1548_v58 = vsub.f32 %v1539_v56, %v1393_v14  ;;  %v1552_v59 = vsub.f32 %v1544_v57, %v1393_v14  ;;  %v1556_v60 = vsub.f32 %v1539_v56, %v1396_v15  ;;  %v1560_v61 = vsub.f32 %v1544_v57, %v1396_v15  ;;  %v1305_v1 = vld [vmem:[%s1908_s1 + $0xc0] sm:$0xff]  ;;  %v1583_v4 = vld [vmem:[%s1910_s3 + $0x48] sm:$0xff] }
   0xf   :  { %426 = vmatpush.bf16.msra.mxu3 %v1301_v7  ;;  %v61_v52 = vpack.c.bf16 %v1516_v49, %v1512_v48  ;;  %v354_v53 = vpack.c.bf16 %v1524_v51, %v1520_v50  ;;  %v1289_v2 = vld [vmem:[%s1908_s1 + $0x40] sm:$0xff]  ;;  %v1591_v6 = vsub.f32 %v1583_v4, %v1393_v14 }
  0x10   :  { %v62_v62 = vpack.c.bf16 %v1552_v59, %v1548_v58  ;;  %v355_v63 = vpack.c.bf16 %v1560_v61, %v1556_v60  ;;  %v1578_v3 = vld [vmem:[%s1910_s3 + $0x40] sm:$0xff] }
  0x11   :  { %v1587_v5 = vsub.f32 %v1578_v3, %v1393_v14  ;;  %v1595_v7 = vsub.f32 %v1578_v3, %v1396_v15 }
  0x12   :  { %133 = vmatpush.bf16.msra.mxu1 %v1284_v8  ;;  %v1599_v8 = vsub.f32 %v1583_v4, %v1396_v15 }
  0x13   :  { %427 = vmatpush.bf16.msra.mxu3 %v1300_v9  ;;  %v63_v9 = vpack.c.bf16 %v1591_v6, %v1587_v5 }
  0x16   :  { %134 = vmatpush.bf16.msra.mxu1 %v1283_v10  ;;  %v356_v10 = vpack.c.bf16 %v1599_v8, %v1595_v7 }
  0x17   :  { %428 = vmatpush.bf16.msra.mxu3 %v1299_v11  ;;  %v1280_v11 = vld [vmem:[%s1911_s2 + $0x38] sm:$0xff] }
  0x18   :  { %825 = vmatpush.bf16.msra.mxu0 %v1280_v11  ;;  %1313 = vmatpush.bf16.msra.mxu2 %v1280_v11 }
  0x1a   :  { %135 = vmatpush.bf16.msra.mxu1 %v1282_v13  ;;  %v1611_v13 = vld [vmem:[%s1910_s3 + $0x50] sm:$0xff] }
  0x1b   :  { %429 = vmatpush.bf16.msra.mxu3 %v1298_v16  ;;  %v1616_v16 = vld [vmem:[%s1910_s3 + $0x58] sm:$0xff] }
  0x1e   :  { %136 = vmatpush.bf16.msra.mxu1 %v1281_v23  ;;  %v1620_v23 = vsub.f32 %v1611_v13, %v1393_v14 }
  0x1f   :  { %430 = vmatpush.bf16.msra.mxu3 %v1297_v24  ;;  %v1624_v24 = vsub.f32 %v1616_v16, %v1393_v14  ;;  %v1279_v14 = vld [vmem:[%s1911_s2 + $0x30] sm:$0xff] }
  0x20   :  { %826 = vmatpush.bf16.msra.mxu0 %v1279_v14  ;;  %1314 = vmatpush.bf16.msra.mxu2 %v1279_v14 }
  0x21   :  { %137 = vmatmul.bf16.vlgmr.msra.gmra.mxu1 %v59_v27  ;;  %v64_v27 = vpack.c.bf16 %v1624_v24, %v1620_v23 }
  0x22   :  { %276 = vmatpush.bf16.msrb.mxu1 %v1296_v26  ;;  %431 = vmatmul.bf16.vlgmr.msra.gmra.mxu3 %v352_v28  ;;  %v1632_v26 = vsub.f32 %v1616_v16, %v1396_v15 }
  0x23   :  { %570 = vmatpush.bf16.msrb.mxu3 %v1312_v25  ;;  %v1628_v25 = vsub.f32 %v1611_v13, %v1396_v15  ;;  %v1645_v15 = vperm.slane %v1387_v12, 1 }
  0x25   :  { %v357_v28 = vpack.c.bf16 %v1632_v26, %v1628_v25  ;;  %v1733_v14 = vsub.f32 %v1544_v57, %v1645_v15 }
  0x26   :  { %277 = vmatpush.bf16.msrb.mxu1 %v1295_v30  ;;  %v1648_v30 = vperm.slane %v1387_v12, 3 }
  0x27   :  { %571 = vmatpush.bf16.msrb.mxu3 %v1311_v29  ;;  %v1278_v29 = vld [vmem:[%s1911_s2 + $0x28] sm:$0xff] }
  0x28   :  { %827 = vmatpush.bf16.msra.mxu0 %v1278_v29  ;;  %1315 = vmatpush.bf16.msra.mxu2 %v1278_v29  ;;  %v1667_v12 = vsub.f32 %v1409_v18, %v1648_v30  ;;  %v1737_v29 = vsub.f32 %v1539_v56, %v1648_v30 }
  0x2a   :  { %278 = vmatpush.bf16.msrb.mxu1 %v1294_v32  ;;  %v1655_v32 = vsub.f32 %v1404_v17, %v1645_v15 }
  0x2b   :  { %572 = vmatpush.bf16.msrb.mxu3 %v1310_v31  ;;  %v1277_v31 = vld [vmem:[%s1911_s2 + $0x20] sm:$0xff] }
  0x2c   :  { %828 = vmatpush.bf16.msra.mxu0 %v1277_v31  ;;  %1316 = vmatpush.bf16.msra.mxu2 %v1277_v31 }
  0x2e   :  { %279 = vmatpush.bf16.msrb.mxu1 %v1293_v36  ;;  %v1663_v36 = vsub.f32 %v1404_v17, %v1648_v30  ;;  %v1275_v17 = vld [vmem:[%s1911_s2 + $0x10] sm:$0xff] }
  0x2f   :  { %573 = vmatpush.bf16.msrb.mxu3 %v1309_v35  ;;  %v1659_v35 = vsub.f32 %v1409_v18, %v1645_v15  ;;  %v1274_v18 = vld [vmem:[%s1911_s2 + $0x8] sm:$0xff] }
  0x31   :  { %142 = vmatmul.bf16.gmra.mxu1 %v60_v41  ;;  %v205_v41 = vpack.c.bf16 %v1659_v35, %v1655_v32 }
  0x32   :  { %436 = vmatmul.bf16.gmra.mxu3 %v353_v42  ;;  %280 = vmatpush.bf16.msrb.mxu1 %v1292_v44  ;;  %v499_v42 = vpack.c.bf16 %v1667_v12, %v1663_v36  ;;  %v1684_v44 = vsub.f32 %v1458_v33, %v1645_v15 }
  0x33   :  { %574 = vmatpush.bf16.msrb.mxu3 %v1308_v43  ;;  %v1276_v43 = vld [vmem:[%s1911_s2 + $0x18] sm:$0xff] }
  0x34   :  { %829 = vmatpush.bf16.msra.mxu0 %v1276_v43  ;;  %1317 = vmatpush.bf16.msra.mxu2 %v1276_v43 }
  0x36   :  { %281 = vmatpush.bf16.msrb.mxu1 %v1291_v54  ;;  %v1273_v54 = vld [vmem:[%s1911_s2] sm:$0xff] }
  0x37   :  { %575 = vmatpush.bf16.msrb.mxu3 %v1307_v45  ;;  %v1688_v45 = vsub.f32 %v1463_v34, %v1645_v15 }
  0x38   :  { %830 = vmatpush.bf16.msra.mxu0 %v1275_v17  ;;  %1318 = vmatpush.bf16.msra.mxu2 %v1275_v17 }
  0x3a   :  { %282 = vmatpush.bf16.msrb.mxu1 %v1290_v0  ;;  %v1719_v0 = vsub.f32 %v1508_v47, %v1648_v30 }
  0x3b   :  { %576 = vmatpush.bf16.msrb.mxu3 %v1306_v55  ;;  %v206_v55 = vpack.c.bf16 %v1688_v45, %v1684_v44 }
  0x3c   :  { %831 = vmatpush.bf16.msra.mxu0 %v1274_v18  ;;  %1319 = vmatpush.bf16.msra.mxu2 %v1274_v18 }
  0x3e   :  { %283 = vmatpush.bf16.msrb.mxu1 %v1289_v2 }
  0x3f   :  { %577 = vmatpush.bf16.msrb.mxu3 %v1305_v1 }
  0x40   :  { %832 = vmatpush.bf16.msra.mxu0 %v1273_v54  ;;  %1320 = vmatpush.bf16.msra.mxu2 %v1273_v54 }
  0x41   :  { %147 = vmatmul.bf16.gmra.mxu1 %v61_v52  ;;  %v1692_v52 = vsub.f32 %v1458_v33, %v1648_v30  ;;  %v1707_v33 = vsub.f32 %v1503_v46, %v1645_v15 }
  0x42   :  { %441 = vmatmul.bf16.gmra.mxu3 %v354_v53  ;;  %v1696_v53 = vsub.f32 %v1463_v34, %v1648_v30  ;;  %v1711_v34 = vsub.f32 %v1508_v47, %v1645_v15  ;;  %v1729_v47 = vsub.f32 %v1539_v56, %v1645_v15 }
  0x44   :  { %v207_v1 = vpack.c.bf16 %v1711_v34, %v1707_v33  ;;  %v208_v17 = vpack.c.bf16 %v1733_v14, %v1729_v47 }
  0x51   :  { %152 = vmatmul.bf16.gmra.mxu1 %v62_v62  ;;  %v500_v62 = vpack.c.bf16 %v1696_v53, %v1692_v52 }
  0x52   :  { %446 = vmatmul.bf16.gmra.mxu3 %v355_v63  ;;  %v1715_v63 = vsub.f32 %v1503_v46, %v1648_v30 }
  0x54   :  { %v501_v2 = vpack.c.bf16 %v1719_v0, %v1715_v63 }
  0x61   :  { %157 = vmatmul.bf16.gmra.mxu1 %v63_v9 }
  0x62   :  { %451 = vmatmul.bf16.gmra.mxu3 %v356_v10 }
  0x71   :  { %162 = vmatmul.bf16.gmra.mxu1 %v64_v27 }
  0x72   :  { %456 = vmatmul.bf16.gmra.mxu3 %v357_v28 }
  0x81   :  { %284 = vmatmul.bf16.vlgmr.msrb.gmra.mxu1 %v205_v41 }
  0x82   :  { %578 = vmatmul.bf16.vlgmr.msrb.gmra.mxu3 %v499_v42  ;;  %v1742_v42 = vsub.f32 %v1544_v57, %v1648_v30 }
  0x84   :  { %v502_v56 = vpack.c.bf16 %v1742_v42, %v1737_v29 }
  0x91   :  { %289 = vmatmul.bf16.gmra.mxu1 %v206_v55 }
  0x92   :  { %583 = vmatmul.bf16.gmra.mxu3 %v500_v62 }
  0x9e   :  { %v138_v9 = vpop.f32.mrf.mxu1 }
  0x9f   :  { %v168_v10 = vmul.f32 %v138_v9, %v1413_v19 }
  0xa1   :  { %294 = vmatmul.bf16.gmra.mxu1 %v207_v1  ;;  %v180_v27 = vpack.c.bf16 %v168_v10, %v168_v10 }
  0xa2   :  { %588 = vmatmul.bf16.gmra.mxu3 %v501_v2 }
  0xa3   :  { %v645_v19 = vunpack.c.l.b16 %v180_v27 }
  0xa5   :  { %v432_v11 = vpop.f32.mrf.mxu3 }
  0xa6   :  { %v140_v28 = vpop.f32.mrf.mxu1  ;;  %v462_v31 = vmul.f32 %v432_v11, %v1421_v21 }
  0xa7   :  { %v169_v46 = vmul.f32 %v140_v28, %v1417_v20  ;;  %v1753_v28 = vsub.f32 %v1578_v3, %v1645_v15 }
  0xa8   :  { %v474_v18 = vpack.c.bf16 %v462_v31, %v462_v31 }
  0xa9   :  { %v181_v41 = vpack.c.bf16 %v169_v46, %v169_v46  ;;  %v1757_v46 = vsub.f32 %v1583_v4, %v1645_v15 }
  0xaa   :  { %v717_v21 = vunpack.c.l.b16 %v474_v18 }
  0xab   :  { %v646_v20 = vunpack.c.l.b16 %v181_v41 }
  0xad   :  { %v434_v43 = vpop.f32.mrf.mxu3  ;;  %v657_v55 = vpack.c.b16 %v646_v20, %v645_v19  ;;  %v1766_v20 = vsub.f32 %v1583_v4, %v1648_v30 }
  0xae   :  { %v463_v54 = vmul.f32 %v434_v43, %v1425_v22  ;;  %v143_v62 = vpop.f32.mrf.mxu1 }
  0xaf   :  { %833 = vmatmul.bf16.vlgmr.msra.gmra.mxu0 %v657_v55  ;;  %v170_v57 = vmul.f32 %v143_v62, %v1473_v37  ;;  %v1761_v37 = vsub.f32 %v1578_v3, %v1648_v30 }
  0xb0   :  { %v475_v1 = vpack.c.bf16 %v463_v54, %v463_v54 }
  0xb1   :  { %299 = vmatmul.bf16.gmra.mxu1 %v208_v17  ;;  %v182_v11 = vpack.c.bf16 %v170_v57, %v170_v57  ;;  %v209_v17 = vpack.c.bf16 %v1757_v46, %v1753_v28  ;;  %v503_v3 = vpack.c.bf16 %v1766_v20, %v1761_v37 }
  0xb2   :  { %v718_v2 = vunpack.c.l.b16 %v475_v1  ;;  %593 = vmatmul.bf16.gmra.mxu3 %v502_v56 }
  0xb3   :  { %v647_v19 = vunpack.c.l.b16 %v182_v11  ;;  %v1781_v11 = vsub.f32 %v1616_v16, %v1645_v15 }
  0xb4   :  { %v729_v9 = vpack.c.b16 %v718_v2, %v717_v21 }
  0xb5   :  { %v437_v10 = vpop.f32.mrf.mxu3 }
  0xb6   :  { %893 = vmatmul.bf16.vlgmr.msra.gmra.mxu2 %v729_v9  ;;  %v145_v27 = vpop.f32.mrf.mxu1  ;;  %v464_v31 = vmul.f32 %v437_v10, %v1481_v39  ;;  %v1777_v10 = vsub.f32 %v1611_v13, %v1645_v15 }
  0xb7   :  { %v171_v22 = vmul.f32 %v145_v27, %v1477_v38 }
  0xb8   :  { %v476_v18 = vpack.c.bf16 %v464_v31, %v464_v31  ;;  %v1790_v31 = vsub.f32 %v1616_v16, %v1648_v30 }
  0xb9   :  { %v183_v41 = vpack.c.bf16 %v171_v22, %v171_v22 }
  0xba   :  { %v719_v39 = vunpack.c.l.b16 %v476_v18 }
  0xbb   :  { %v648_v38 = vunpack.c.l.b16 %v183_v41 }
  0xbd   :  { %v439_v43 = vpop.f32.mrf.mxu3  ;;  %v658_v55 = vpack.c.b16 %v648_v38, %v647_v19  ;;  %v210_v38 = vpack.c.bf16 %v1781_v11, %v1777_v10 }
  0xbe   :  { %v465_v54 = vmul.f32 %v439_v43, %v1485_v40  ;;  %v148_v56 = vpop.f32.mrf.mxu1 }
  0xbf   :  { %838 = vmatmul.bf16.gmra.mxu0 %v658_v55  ;;  %v172_v4 = vmul.f32 %v148_v56, %v1512_v48  ;;  %v1785_v48 = vsub.f32 %v1611_v13, %v1648_v30 }
  0xc0   :  { %v477_v62 = vpack.c.bf16 %v465_v54, %v465_v54 }
  0xc1   :  { %304 = vmatmul.bf16.gmra.mxu1 %v209_v17  ;;  %v184_v57 = vpack.c.bf16 %v172_v4, %v172_v4  ;;  %v504_v13 = vpack.c.bf16 %v1790_v31, %v1785_v48 }
  0xc2   :  { %v720_v1 = vunpack.c.l.b16 %v477_v62  ;;  %598 = vmatmul.bf16.gmra.mxu3 %v503_v3 }
  0xc3   :  { %v649_v27 = vunpack.c.l.b16 %v184_v57 }
  0xc4   :  { %v730_v21 = vpack.c.b16 %v720_v1, %v719_v39 }
  0xc5   :  { %v442_v2 = vpop.f32.mrf.mxu3 }
  0xc6   :  { %898 = vmatmul.bf16.gmra.mxu2 %v730_v21  ;;  %v150_v9 = vpop.f32.mrf.mxu1  ;;  %v466_v22 = vmul.f32 %v442_v2, %v1520_v50 }
  0xc7   :  { %v173_v40 = vmul.f32 %v150_v9, %v1516_v49 }
  0xc8   :  { %v478_v43 = vpack.c.bf16 %v466_v22, %v466_v22 }
  0xc9   :  { %v185_v19 = vpack.c.bf16 %v173_v40, %v173_v40 }
  0xca   :  { %v721_v50 = vunpack.c.l.b16 %v478_v43 }
  0xcb   :  { %v650_v49 = vunpack.c.l.b16 %v185_v19 }
  0xcd   :  { %v444_v41 = vpop.f32.mrf.mxu3  ;;  %v659_v17 = vpack.c.b16 %v650_v49, %v649_v27 }
  0xce   :  { %v467_v15 = vmul.f32 %v444_v41, %v1524_v51  ;;  %v153_v18 = vpop.f32.mrf.mxu1 }
  0xcf   :  { %843 = vmatmul.bf16.gmra.mxu0 %v659_v17  ;;  %v174_v16 = vmul.f32 %v153_v18, %v1548_v58 }
  0xd0   :  { %v479_v54 = vpack.c.bf16 %v467_v15, %v467_v15 }
  0xd1   :  { %309 = vmatmul.bf16.gmra.mxu1 %v210_v38  ;;  %v186_v56 = vpack.c.bf16 %v174_v16, %v174_v16 }
  0xd2   :  { %v722_v55 = vunpack.c.l.b16 %v479_v54  ;;  %603 = vmatmul.bf16.gmra.mxu3 %v504_v13 }
  0xd3   :  { %v651_v39 = vunpack.c.l.b16 %v186_v56 }
  0xd4   :  { %v731_v30 = vpack.c.b16 %v722_v55, %v721_v50 }
  0xd5   :  { %v447_v3 = vpop.f32.mrf.mxu3 }
  0xd6   :  { %903 = vmatmul.bf16.gmra.mxu2 %v731_v30  ;;  %v155_v62 = vpop.f32.mrf.mxu1  ;;  %v468_v1 = vmul.f32 %v447_v3, %v1556_v60 }
  0xd7   :  { %v175_v51 = vmul.f32 %v155_v62, %v1552_v59 }
  0xd8   :  { %v480_v57 = vpack.c.bf16 %v468_v1, %v468_v1 }
  0xd9   :  { %v187_v4 = vpack.c.bf16 %v175_v51, %v175_v51 }
  0xda   :  { %v723_v22 = vunpack.c.l.b16 %v480_v57 }
  0xdb   :  { %v652_v21 = vunpack.c.l.b16 %v187_v4 }
  0xdd   :  { %v449_v2 = vpop.f32.mrf.mxu3  ;;  %v660_v40 = vpack.c.b16 %v652_v21, %v651_v39 }
  0xde   :  { %v469_v9 = vmul.f32 %v449_v2, %v1560_v61  ;;  %v158_v58 = vpop.f32.mrf.mxu1 }
  0xdf   :  { %848 = vmatmul.bf16.gmra.mxu0 %v660_v40  ;;  %v176_v49 = vmul.f32 %v158_v58, %v1587_v5 }
  0xe0   :  { %v481_v27 = vpack.c.bf16 %v469_v9, %v469_v9 }
  0xe1   :  { %v188_v59 = vpack.c.bf16 %v176_v49, %v176_v49 }
  0xe2   :  { %v724_v19 = vunpack.c.l.b16 %v481_v27 }
  0xe3   :  { %v653_v15 = vunpack.c.l.b16 %v188_v59 }
  0xe4   :  { %v732_v41 = vpack.c.b16 %v724_v19, %v723_v22 }
  0xe5   :  { %v452_v38 = vpop.f32.mrf.mxu3 }
  0xe6   :  { %908 = vmatmul.bf16.gmra.mxu2 %v732_v41  ;;  %v160_v43 = vpop.f32.mrf.mxu1  ;;  %v470_v17 = vmul.f32 %v452_v38, %v1595_v7 }
  0xe7   :  { %v177_v60 = vmul.f32 %v160_v43, %v1591_v6 }
  0xe8   :  { %v482_v54 = vpack.c.bf16 %v470_v17, %v470_v17 }
  0xe9   :  { %v189_v13 = vpack.c.bf16 %v177_v60, %v177_v60 }
  0xea   :  { %v725_v5 = vunpack.c.l.b16 %v482_v54 }
  0xeb   :  { %v654_v61 = vunpack.c.l.b16 %v189_v13 }
  0xed   :  { %v454_v18 = vpop.f32.mrf.mxu3  ;;  %v661_v55 = vpack.c.b16 %v654_v61, %v653_v15 }
  0xee   :  { %v471_v50 = vmul.f32 %v454_v18, %v1599_v8  ;;  %v163_v16 = vpop.f32.mrf.mxu1 }
  0xef   :  { %853 = vmatmul.bf16.gmra.mxu0 %v661_v55  ;;  %v178_v56 = vmul.f32 %v163_v16, %v1620_v23 }
  0xf0   :  { %v483_v30 = vpack.c.bf16 %v471_v50, %v471_v50 }
  0xf1   :  { %v190_v6 = vpack.c.bf16 %v178_v56, %v178_v56 }
  0xf2   :  { %v726_v3 = vunpack.c.l.b16 %v483_v30 }
  0xf3   :  { %v655_v1 = vunpack.c.l.b16 %v190_v6 }
  0xf4   :  { %v733_v62 = vpack.c.b16 %v726_v3, %v725_v5 }
  0xf5   :  { %v457_v51 = vpop.f32.mrf.mxu3 }
  0xf6   :  { %913 = vmatmul.bf16.gmra.mxu2 %v733_v62  ;;  %v165_v39 = vpop.f32.mrf.mxu1  ;;  %v472_v4 = vmul.f32 %v457_v51, %v1628_v25 }
  0xf7   :  { %v179_v7 = vmul.f32 %v165_v39, %v1624_v24 }
  0xf8   :  { %v484_v57 = vpack.c.bf16 %v472_v4, %v472_v4 }
  0xf9   :  { %v191_v21 = vpack.c.bf16 %v179_v7, %v179_v7 }
  0xfa   :  { %v727_v23 = vunpack.c.l.b16 %v484_v57 }
  0xfb   :  { %v656_v8 = vunpack.c.l.b16 %v191_v21 }
  0xfd   :  { %v459_v2 = vpop.f32.mrf.mxu3  ;;  %v662_v40 = vpack.c.b16 %v656_v8, %v655_v1 }
  0xfe   :  { %v473_v9 = vmul.f32 %v459_v2, %v1632_v26  ;;  %v285_v58 = vpop.f32.mrf.mxu1 }
  0xff   :  { %858 = vmatmul.bf16.gmra.mxu0 %v662_v40  ;;  %v315_v19 = vmul.f32 %v285_v58, %v1655_v32 }
 0x100   :  { %v485_v27 = vpack.c.bf16 %v473_v9, %v473_v9 }
 0x101   :  { %v327_v24 = vpack.c.bf16 %v315_v19, %v315_v19 }
 0x102   :  { %v728_v22 = vunpack.c.l.b16 %v485_v27 }
 0x103   :  { %v681_v59 = vunpack.c.l.b16 %v327_v24 }
 0x104   :  { %v734_v49 = vpack.c.b16 %v728_v22, %v727_v23 }
 0x105   :  { %v579_v41 = vpop.f32.mrf.mxu3 }
 0x106   :  { %918 = vmatmul.bf16.gmra.mxu2 %v734_v49  ;;  %v287_v38 = vpop.f32.mrf.mxu1  ;;  %v609_v43 = vmul.f32 %v579_v41, %v1663_v36 }
 0x107   :  { %v316_v25 = vmul.f32 %v287_v38, %v1659_v35 }
 0x108   :  { %v621_v17 = vpack.c.bf16 %v609_v43, %v609_v43 }
 0x109   :  { %v328_v60 = vpack.c.bf16 %v316_v25, %v316_v25 }
 0x10a   :  { %v753_v32 = vunpack.c.l.b16 %v621_v17 }
 0x10b   :  { %v682_v26 = vunpack.c.l.b16 %v328_v60 }
 0x10d   :  { %v581_v15 = vpop.f32.mrf.mxu3  ;;  %v693_v61 = vpack.c.b16 %v682_v26, %v681_v59 }
 0x10e   :  { %v610_v13 = vmul.f32 %v581_v15, %v1667_v12  ;;  %v290_v18 = vpop.f32.mrf.mxu1 }
 0x10f   :  { %863 = vmatmul.bf16.gmra.mxu0 %v693_v61  ;;  %v317_v55 = vmul.f32 %v290_v18, %v1684_v44 }
 0x110   :  { %v622_v54 = vpack.c.bf16 %v610_v13, %v610_v13 }
 0x111   :  { %v329_v35 = vpack.c.bf16 %v317_v55, %v317_v55 }
 0x112   :  { %v754_v50 = vunpack.c.l.b16 %v622_v54 }
 0x113   :  { %v683_v3 = vunpack.c.l.b16 %v329_v35 }
 0x114   :  { %v765_v16 = vpack.c.b16 %v754_v50, %v753_v32 }
 0x115   :  { %v584_v30 = vpop.f32.mrf.mxu3 }
 0x116   :  { %923 = vmatmul.bf16.gmra.mxu2 %v765_v16  ;;  %v292_v5 = vpop.f32.mrf.mxu1  ;;  %v611_v56 = vmul.f32 %v584_v30, %v1692_v52 }
 0x117   :  { %v318_v36 = vmul.f32 %v292_v5, %v1688_v45 }
 0x118   :  { %v623_v6 = vpack.c.bf16 %v611_v56, %v611_v56 }
 0x119   :  { %v330_v62 = vpack.c.bf16 %v318_v36, %v318_v36 }
 0x11a   :  { %v755_v44 = vunpack.c.l.b16 %v623_v6 }
 0x11b   :  { %v684_v12 = vunpack.c.l.b16 %v330_v62 }
 0x11d   :  { %v586_v51 = vpop.f32.mrf.mxu3  ;;  %v694_v7 = vpack.c.b16 %v684_v12, %v683_v3 }
 0x11e   :  { %v612_v39 = vmul.f32 %v586_v51, %v1696_v53  ;;  %v295_v1 = vpop.f32.mrf.mxu1 }
 0x11f   :  { %868 = vmatmul.bf16.gmra.mxu0 %v694_v7  ;;  %v319_v8 = vmul.f32 %v295_v1, %v1707_v33 }
 0x120   :  { %v624_v4 = vpack.c.bf16 %v612_v39, %v612_v39 }
 0x121   :  { %v331_v45 = vpack.c.bf16 %v319_v8, %v319_v8 }
 0x122   :  { %v756_v21 = vunpack.c.l.b16 %v624_v4 }
 0x123   :  { %v685_v40 = vunpack.c.l.b16 %v331_v45 }
 0x124   :  { %v766_v2 = vpack.c.b16 %v756_v21, %v755_v44 }
 0x125   :  { %v589_v57 = vpop.f32.mrf.mxu3 }
 0x126   :  { %928 = vmatmul.bf16.gmra.mxu2 %v766_v2  ;;  %v297_v9 = vpop.f32.mrf.mxu1  ;;  %v613_v58 = vmul.f32 %v589_v57, %v1715_v63 }
 0x127   :  { %v320_v52 = vmul.f32 %v297_v9, %v1711_v34 }
 0x128   :  { %v625_v19 = vpack.c.bf16 %v613_v58, %v613_v58 }
 0x129   :  { %v332_v27 = vpack.c.bf16 %v320_v52, %v320_v52 }
 0x12a   :  { %v757_v38 = vunpack.c.l.b16 %v625_v19 }
 0x12b   :  { %v686_v53 = vunpack.c.l.b16 %v332_v27 }
 0x12c   :  { %v1820_v22 = vpop.f32.mrf.mxu0 }
 0x12d   :  { %v591_v23 = vpop.f32.mrf.mxu3  ;;  %v695_v41 = vpack.c.b16 %v686_v53, %v685_v40 }
 0x12e   :  { %v614_v49 = vmul.f32 %v591_v23, %v1719_v0  ;;  %v300_v33 = vpop.f32.mrf.mxu1 }
 0x12f   :  { %873 = vmatmul.bf16.gmra.mxu0 %v695_v41  ;;  %v321_v59 = vmul.f32 %v300_v33, %v1729_v47 }
 0x130   :  { %v626_v24 = vpack.c.bf16 %v614_v49, %v614_v49 }
 0x131   :  { %v333_v63 = vpack.c.bf16 %v321_v59, %v321_v59 }
 0x132   :  { %v758_v25 = vunpack.c.l.b16 %v626_v24 }
 0x133   :  { %v687_v0 = vunpack.c.l.b16 %v333_v63 }
 0x134   :  { %v767_v34 = vpack.c.b16 %v758_v25, %v757_v38  ;;  %v1824_v60 = vpop.f32.mrf.mxu0 }
 0x135   :  { %v594_v43 = vpop.f32.mrf.mxu3 }
 0x136   :  { %933 = vmatmul.bf16.gmra.mxu2 %v767_v34  ;;  %v302_v26 = vpop.f32.mrf.mxu1  ;;  %v615_v13 = vmul.f32 %v594_v43, %v1737_v29 }
 0x137   :  { %v322_v15 = vmul.f32 %v302_v26, %v1733_v14 }
 0x138   :  { %v627_v47 = vpack.c.bf16 %v615_v13, %v615_v13 }
 0x139   :  { %v1827_v17 = vpop.f32.mrf.mxu2  ;;  %v334_v61 = vpack.c.bf16 %v322_v15, %v322_v15 }
 0x13a   :  { %v759_v14 = vunpack.c.l.b16 %v627_v47 }
 0x13b   :  { %v688_v18 = vunpack.c.l.b16 %v334_v61 }
 0x13c   :  { %v1830_v32 = vpop.f32.mrf.mxu0 }
 0x13d   :  { %v596_v54 = vpop.f32.mrf.mxu3  ;;  %v696_v55 = vpack.c.b16 %v688_v18, %v687_v0 }
 0x13e   :  { %v616_v50 = vmul.f32 %v596_v54, %v1742_v42  ;;  %v305_v16 = vpop.f32.mrf.mxu1 }
 0x13f   :  { %878 = vmatmul.bf16.gmra.mxu0 %v696_v55  ;;  %v323_v36 = vmul.f32 %v305_v16, %v1753_v28  ;;  %v954_v16 = vmax.f32 %v1820_v22, 0.0  ;;  %v956_v22 = vmax.f32 %v1830_v32, 0.0 }
 0x140   :  { %v628_v30 = vpack.c.bf16 %v616_v50, %v616_v50 }
 0x141   :  { %v1833_v35 = vpop.f32.mrf.mxu2  ;;  %v335_v62 = vpack.c.bf16 %v323_v36, %v323_v36 }
 0x142   :  { %v760_v5 = vunpack.c.l.b16 %v628_v30 }
 0x143   :  { %v689_v6 = vunpack.c.l.b16 %v335_v62  ;;  %v955_v62 = vmax.f32 %v1824_v60, 0.0 }
 0x144   :  { %v768_v3 = vpack.c.b16 %v760_v5, %v759_v14  ;;  %v1836_v56 = vpop.f32.mrf.mxu0  ;;  %v978_v14 = vmax.f32 %v1827_v17, 0.0 }
 0x145   :  { %v599_v29 = vpop.f32.mrf.mxu3 }
 0x146   :  { %938 = vmatmul.bf16.gmra.mxu2 %v768_v3  ;;  %v307_v12 = vpop.f32.mrf.mxu1  ;;  %v617_v39 = vmul.f32 %v599_v29, %v1761_v37 }
 0x147   :  { %v324_v51 = vmul.f32 %v307_v12, %v1757_v46 }
 0x148   :  { %v629_v28 = vpack.c.bf16 %v617_v39, %v617_v39 }
 0x149   :  { %v1839_v42 = vpop.f32.mrf.mxu2  ;;  %v336_v7 = vpack.c.bf16 %v324_v51, %v324_v51  ;;  %v979_v51 = vmax.f32 %v1833_v35, 0.0 }
 0x14a   :  { %v761_v46 = vunpack.c.l.b16 %v629_v28  ;;  %v980_v17 = vmax.f32 %v1839_v42, 0.0 }
 0x14b   :  { %v690_v1 = vunpack.c.l.b16 %v336_v7 }
 0x14c   :  { %v1842_v44 = vpop.f32.mrf.mxu0 }
 0x14d   :  { %v601_v4 = vpop.f32.mrf.mxu3  ;;  %v697_v8 = vpack.c.b16 %v690_v1, %v689_v6  ;;  %v958_v42 = vmax.f32 %v1842_v44, 0.0 }
 0x14e   :  { %v618_v21 = vmul.f32 %v601_v4, %v1766_v20  ;;  %v310_v2 = vpop.f32.mrf.mxu1 }
 0x14f   :  { %883 = vmatmul.bf16.gmra.mxu0 %v697_v8  ;;  %v325_v52 = vmul.f32 %v310_v2, %v1777_v10 }
 0x150   :  { %v630_v57 = vpack.c.bf16 %v618_v21, %v618_v21 }
 0x151   :  { %v1845_v45 = vpop.f32.mrf.mxu2  ;;  %v337_v27 = vpack.c.bf16 %v325_v52, %v325_v52  ;;  %v957_v52 = vmax.f32 %v1836_v56, 0.0 }
 0x152   :  { %v762_v9 = vunpack.c.l.b16 %v630_v57 }
 0x153   :  { %v691_v19 = vunpack.c.l.b16 %v337_v27 }
 0x154   :  { %v769_v40 = vpack.c.b16 %v762_v9, %v761_v46  ;;  %v1848_v58 = vpop.f32.mrf.mxu0 }
 0x155   :  { %v604_v37 = vpop.f32.mrf.mxu3 }
 0x156   :  { %943 = vmatmul.bf16.gmra.mxu2 %v769_v40  ;;  %v312_v53 = vpop.f32.mrf.mxu1  ;;  %v619_v49 = vmul.f32 %v604_v37, %v1785_v48  ;;  %v981_v37 = vmax.f32 %v1845_v45, 0.0  ;;  %v959_v45 = vmax.f32 %v1848_v58, 0.0 }
 0x157   :  { %v326_v23 = vmul.f32 %v312_v53, %v1781_v11 }
 0x158   :  { %v631_v10 = vpack.c.bf16 %v619_v49, %v619_v49 }
 0x159   :  { %v1851_v20 = vpop.f32.mrf.mxu2  ;;  %v338_v41 = vpack.c.bf16 %v326_v23, %v326_v23 }
 0x15a   :  { %v763_v63 = vunpack.c.l.b16 %v631_v10 }
 0x15b   :  { %v692_v33 = vunpack.c.l.b16 %v338_v41 }
 0x15c   :  { %v1854_v38 = vpop.f32.mrf.mxu0 }
 0x15d   :  { %v606_v24 = vpop.f32.mrf.mxu3  ;;  %v698_v59 = vpack.c.b16 %v692_v33, %v691_v19 }
 0x15e   :  { %v620_v25 = vmul.f32 %v606_v24, %v1790_v31  ;;  %v982_v24 = vmax.f32 %v1851_v20, 0.0  ;;  %v960_v20 = vmax.f32 %v1854_v38, 0.0 }
 0x15f   :  { %888 = vmatmul.bf16.gmra.mxu0 %v698_v59 }
 0x160   :  { %v632_v34 = vpack.c.bf16 %v620_v25, %v620_v25 }
 0x161   :  { %v1857_v43 = vpop.f32.mrf.mxu2 }
 0x162   :  { %v764_v11 = vunpack.c.l.b16 %v632_v34 }
 0x164   :  { %v770_v26 = vpack.c.b16 %v764_v11, %v763_v63  ;;  %v1859_v15 = vpop.f32.mrf.mxu0 }
 0x166   :  { %948 = vmatmul.bf16.gmra.mxu2 %v770_v26 }
 0x169   :  { %v1861_v48 = vpop.f32.mrf.mxu2 }
 0x16c   :  { %v1863_v0 = vpop.f32.mrf.mxu0 }
 0x171   :  { %v1865_v13 = vpop.f32.mrf.mxu2 }
 0x174   :  { %v1867_v61 = vpop.f32.mrf.mxu0 }
 0x179   :  { %v1869_v31 = vpop.f32.mrf.mxu2 }
 0x17c   :  { %v1871_v18 = vpop.f32.mrf.mxu0 }
 0x181   :  { %v1873_v54 = vpop.f32.mrf.mxu2 }
 0x184   :  { %v1875_v47 = vpop.f32.mrf.mxu0 }
 0x189   :  { %v1877_v50 = vpop.f32.mrf.mxu2 }
 0x18c   :  { %v864_v55 = vpop.f32.mrf.mxu0 }
 0x18d   :  { %v966_v30 = vmax.f32 %v864_v55, 0.0  ;;  %v983_v55 = vmax.f32 %v1857_v43, 0.0  ;;  %v961_v43 = vmax.f32 %v1859_v15, 0.0 }
 0x18f   :  { %v1002_v5 = vmin.f32 %v954_v16, %v966_v30 }
 0x191   :  { %v1881_v36 = vpop.f32.mrf.mxu2  ;;  %v1003_v3 = vmin.f32 %v1002_v5, %v978_v14 }
 0x194   :  { %v866_v29 = vpop.f32.mrf.mxu0 }
 0x195   :  { %v967_v12 = vmax.f32 %v866_v29, 0.0 }
 0x197   :  { %v1005_v6 = vmin.f32 %v955_v62, %v967_v12  ;;  %v984_v12 = vmax.f32 %v1861_v48, 0.0  ;;  %v962_v48 = vmax.f32 %v1863_v0, 0.0 }
 0x199   :  { %v924_v39 = vpop.f32.mrf.mxu2  ;;  %v1006_v1 = vmin.f32 %v1005_v6, %v979_v51 }
 0x19a   :  { %v990_v7 = vmax.f32 %v924_v39, 0.0 }
 0x19c   :  { %v1004_v4 = vmin.f32 %v1003_v3, %v990_v7  ;;  %v869_v28 = vpop.f32.mrf.mxu0 }
 0x19d   :  { %v968_v21 = vmax.f32 %v869_v28, 0.0 }
 0x19f   :  { %v1008_v8 = vmin.f32 %v956_v22, %v968_v21  ;;  %v985_v22 = vmax.f32 %v1865_v13, 0.0  ;;  %v963_v13 = vmax.f32 %v1867_v61, 0.0 }
 0x1a1   :  { %v926_v2 = vpop.f32.mrf.mxu2  ;;  %v1009_v46 = vmin.f32 %v1008_v8, %v980_v17 }
 0x1a2   :  { %v991_v57 = vmax.f32 %v926_v2, 0.0 }
 0x1a4   :  { %v1007_v9 = vmin.f32 %v1006_v1, %v991_v57  ;;  %v871_v60 = vpop.f32.mrf.mxu0 }
 0x1a5   :  { %v969_v40 = vmax.f32 %v871_v60, 0.0  ;;  %v986_v60 = vmax.f32 %v1869_v31, 0.0  ;;  %v964_v31 = vmax.f32 %v1871_v18, 0.0 }
 0x1a6   :  { %v1038_v35 = vadd.f32 %v1007_v9, %v1004_v4 }
 0x1a7   :  { %v1011_v27 = vmin.f32 %v957_v52, %v969_v40 }
 0x1a9   :  { %v929_v53 = vpop.f32.mrf.mxu2  ;;  %v1012_v19 = vmin.f32 %v1011_v27, %v981_v37 }
 0x1aa   :  { %v992_v23 = vmax.f32 %v929_v53, 0.0 }
 0x1ac   :  { %v1010_v32 = vmin.f32 %v1009_v46, %v992_v23  ;;  %v874_v49 = vpop.f32.mrf.mxu0 }
 0x1ad   :  { %v970_v33 = vmax.f32 %v874_v49, 0.0 }
 0x1ae   :  { %v1039_v41 = vadd.f32 %v1038_v35, %v1010_v32 }
 0x1af   :  { %v1014_v10 = vmin.f32 %v958_v42, %v970_v33 }
 0x1b1   :  { %v931_v25 = vpop.f32.mrf.mxu2  ;;  %v1015_v56 = vmin.f32 %v1014_v10, %v982_v24 }
 0x1b2   :  { %v993_v59 = vmax.f32 %v931_v25, 0.0  ;;  %v988_v25 = vmax.f32 %v1877_v50, 0.0 }
 0x1b4   :  { %v1013_v34 = vmin.f32 %v1012_v19, %v993_v59  ;;  %v876_v63 = vpop.f32.mrf.mxu0  ;;  %v987_v19 = vmax.f32 %v1873_v54, 0.0  ;;  %v965_v54 = vmax.f32 %v1875_v47, 0.0 }
 0x1b5   :  { %v971_v26 = vmax.f32 %v876_v63, 0.0 }
 0x1b6   :  { %v1040_v11 = vadd.f32 %v1039_v41, %v1013_v34 }
 0x1b7   :  { %v1017_v16 = vmin.f32 %v959_v45, %v971_v26 }
 0x1b9   :  { %v934_v30 = vpop.f32.mrf.mxu2  ;;  %v1018_v44 = vmin.f32 %v1017_v16, %v983_v55  ;;  %v989_v55 = vmax.f32 %v1881_v36, 0.0 }
 0x1ba   :  { %v994_v14 = vmax.f32 %v934_v30, 0.0 }
 0x1bc   :  { %v1016_v5 = vmin.f32 %v1015_v56, %v994_v14  ;;  %v879_v3 = vpop.f32.mrf.mxu0 }
 0x1bd   :  { %v972_v62 = vmax.f32 %v879_v3, 0.0 }
 0x1be   :  { %v1041_v29 = vadd.f32 %v1040_v11, %v1016_v5 }
 0x1bf   :  { %v1020_v51 = vmin.f32 %v960_v20, %v972_v62 }
 0x1c1   :  { %v936_v6 = vpop.f32.mrf.mxu2  ;;  %v1021_v58 = vmin.f32 %v1020_v51, %v984_v12 }
 0x1c2   :  { %v995_v39 = vmax.f32 %v936_v6, 0.0 }
 0x1c4   :  { %v1019_v7 = vmin.f32 %v1018_v44, %v995_v39  ;;  %v881_v1 = vpop.f32.mrf.mxu0 }
 0x1c5   :  { %v973_v28 = vmax.f32 %v881_v1, 0.0 }
 0x1c6   :  { %v1042_v4 = vadd.f32 %v1041_v29, %v1019_v7 }
 0x1c7   :  { %v1023_v21 = vmin.f32 %v961_v43, %v973_v28 }
 0x1c9   :  { %v939_v17 = vpop.f32.mrf.mxu2  ;;  %v1024_v38 = vmin.f32 %v1023_v21, %v985_v22 }
 0x1ca   :  { %v996_v8 = vmax.f32 %v939_v17, 0.0 }
 0x1cc   :  { %v1022_v2 = vmin.f32 %v1021_v58, %v996_v8  ;;  %v884_v57 = vpop.f32.mrf.mxu0 }
 0x1cd   :  { %v974_v9 = vmax.f32 %v884_v57, 0.0 }
 0x1ce   :  { %v1043_v46 = vadd.f32 %v1042_v4, %v1022_v2 }
 0x1cf   :  { %v1026_v52 = vmin.f32 %v962_v48, %v974_v9 }
 0x1d1   :  { %v941_v35 = vpop.f32.mrf.mxu2  ;;  %v1027_v15 = vmin.f32 %v1026_v52, %v986_v60 }
 0x1d2   :  { %v997_v40 = vmax.f32 %v941_v35, 0.0 }
 0x1d4   :  { %v1025_v37 = vmin.f32 %v1024_v38, %v997_v40  ;;  %v886_v27 = vpop.f32.mrf.mxu0 }
 0x1d5   :  { %v975_v23 = vmax.f32 %v886_v27, 0.0 }
 0x1d6   :  { %v1044_v53 = vadd.f32 %v1043_v46, %v1025_v37 }
 0x1d7   :  { %v1029_v32 = vmin.f32 %v963_v13, %v975_v23 }
 0x1d9   :  { %v944_v49 = vpop.f32.mrf.mxu2  ;;  %v1030_v0 = vmin.f32 %v1029_v32, %v987_v19 }
 0x1da   :  { %v998_v42 = vmax.f32 %v944_v49, 0.0 }
 0x1dc   :  { %v1028_v41 = vmin.f32 %v1027_v15, %v998_v42  ;;  %v889_v33 = vpop.f32.mrf.mxu0 }
 0x1dd   :  { %v976_v10 = vmax.f32 %v889_v33, 0.0 }
 0x1de   :  { %v1045_v24 = vadd.f32 %v1044_v53, %v1028_v41 }
 0x1df   :  { %v1032_v59 = vmin.f32 %v964_v31, %v976_v10 }
 0x1e1   :  { %v946_v56 = vpop.f32.mrf.mxu2  ;;  %v1033_v61 = vmin.f32 %v1032_v59, %v988_v25 }
 0x1e2   :  { %v999_v34 = vmax.f32 %v946_v56, 0.0 }
 0x1e4   :  { %v1031_v63 = vmin.f32 %v1030_v0, %v999_v34  ;;  %v891_v45 = vpop.f32.mrf.mxu0 }
 0x1e5   :  { %v977_v11 = vmax.f32 %v891_v45, 0.0 }
 0x1e6   :  { %v1046_v26 = vadd.f32 %v1045_v24, %v1031_v63 }
 0x1e7   :  { %v1035_v16 = vmin.f32 %v965_v54, %v977_v11 }
 0x1e9   :  { %v949_v30 = vpop.f32.mrf.mxu2  ;;  %v1036_v18 = vmin.f32 %v1035_v16, %v989_v55 }
 0x1ea   :  { %v1000_v14 = vmax.f32 %v949_v30, 0.0 }
 0x1ec   :  { %v1034_v44 = vmin.f32 %v1033_v61, %v1000_v14 }
 0x1ee   :  { %v1047_v5 = vadd.f32 %v1046_v26, %v1034_v44 }
 0x1f1   :  { %v951_v3 = vpop.f32.mrf.mxu2 }
 0x1f2   :  { %v1001_v50 = vmax.f32 %v951_v3, 0.0 }
 0x1f4   :  { %v1037_v20 = vmin.f32 %v1036_v18, %v1001_v50 }
 0x1f6   :  { %v1048_v29 = vadd.f32 %v1047_v5, %v1037_v20 }
 0x1f8   :  { %1049 = vadd.xlane.f32.xlu0 %v1048_v29 }
 0x26b   :  { %v1050_v62 = vpop.xlane.xlu0 %1049 }
 0x26c   :  { %v1051_v12 = vrot.slane %v1050_v62, 4 }
 0x26e   :  { %v1052_v51 = vadd.f32 %v1051_v12, %v1050_v62 }
 0x270   :  { %v1053_v6 = vrot.slane %v1052_v51, 2 }
 0x272   :  { %v1054_v47 = vadd.f32 %v1053_v6, %v1052_v51 }
 0x274   :  { %v1055_v39 = vrot.slane %v1054_v47, 1 }
 0x276   :  { %v1056_v58 = vadd.f32 %v1055_v39, %v1054_v47 }
 0x278   :  { %1321 = vpush %v1056_v58 }
 0x2a9   :  { %s1322_s2 = spop %1321 }
 0x2aa   :  { %v1059_v36 = vstv %s1322_s2 }
 0x2ab   :  { %1060 = vst [vmem:[%s1912_s4] sm:$0xff] %v1059_v36 }

</bundles_post_ra>
